<compile_context>
chip_gen: v6e
topology: v6e:2x2x1
jax: 0.10.0
libtpu: 0.0.40
codegen_flags: <defaults>
</compile_context>

<pallas_src>
import functools
import math

import jax
import jax.numpy as jnp
from jax import lax
from jax.experimental import pallas as pl
from jax.experimental.pallas import tpu as pltpu

_VMEM_LIMIT = 32 * 1024 * 1024  # scoped-VMEM budget, safe on v5e/v6e/v7x


def _gelu_tanh(x):
    # TODO(synk): switch to exact erf GELU if/when Mosaic exposes an erf lowering.
    return 0.5 * x * (1.0 + jnp.tanh(
        0.7978845608028654 * (x + 0.044715 * x * x * x)))


def _layernorm(y, gamma, beta, eps):
    mean = jnp.mean(y, axis=-1, keepdims=True)
    c = y - mean
    var = jnp.mean(c * c, axis=-1, keepdims=True)
    return c * lax.rsqrt(var + eps) * gamma + beta


# ------------------- kernel 1: embeddings add + LayerNorm --------------------

def _emb_ln_kernel(emb_ref, pos_ref, g_ref, b_ref, o_ref, *, eps):
    y = emb_ref[...] + pos_ref[...]                       # (S, H) f32
    o_ref[...] = _layernorm(y, g_ref[...], b_ref[...], eps).astype(o_ref.dtype)


def embed_layernorm(emb, pos, gamma, beta, eps=1e-12):
    """LayerNorm(word_emb_gather + pos_emb) -> bf16, one batch per grid step."""
    B, S, H = emb.shape
    return pl.pallas_call(
        functools.partial(_emb_ln_kernel, eps=eps),
        out_shape=jax.ShapeDtypeStruct((B, S, H), jnp.bfloat16),
        grid=(B,),
        in_specs=[
            pl.BlockSpec((None, S, H), lambda b: (b, 0, 0)),
            pl.BlockSpec((S, H), lambda b: (0, 0)),
            pl.BlockSpec((1, H), lambda b: (0, 0)),
            pl.BlockSpec((1, H), lambda b: (0, 0)),
        ],
        out_specs=pl.BlockSpec((None, S, H), lambda b: (b, 0, 0)),
        compiler_params=pltpu.CompilerParams(
            dimension_semantics=("parallel",), vmem_limit_bytes=_VMEM_LIMIT),
    )(emb, pos, gamma, beta)


# -------- kernel 2: fused QKV + attention + out-proj + residual + LN ---------

def _attn_layer_kernel(x_ref, wqkv_ref, bqkv_ref, wo_ref, bo_ref,
                       g_ref, b_ref, m_ref, o_ref, *, n_heads, scale, eps):
    x = x_ref[...]                                        # (S, H) bf16
    S, H = x.shape
    dh = H // n_heads

    # fused QKV projection, f32 accumulation on the MXU
    qkv = jnp.dot(x, wqkv_ref[...],
                  preferred_element_type=jnp.float32) + bqkv_ref[...]   # (S,3H)
    mask = m_ref[...]                                     # (1, S) additive bias

    ctx_parts = []
    for h in range(n_heads):                              # static unroll
        # fold the softmax scale into Q before the score matmul
        q = (qkv[:, h * dh:(h + 1) * dh] * scale).astype(jnp.bfloat16)
        k = qkv[:, H + h * dh:H + (h + 1) * dh].astype(jnp.bfloat16)
        v = qkv[:, 2 * H + h * dh:2 * H + (h + 1) * dh].astype(jnp.bfloat16)
        # contract last axes directly (no k.T / XLU transpose before the MXU)
        s = lax.dot_general(q, k, dimension_numbers=(((1,), (1,)), ((), ())),
                            preferred_element_type=jnp.float32)
        s = s + mask
        mx = jnp.max(s, axis=-1, keepdims=True)
        p = jnp.exp(s - mx)
        inv = pl.reciprocal(jnp.sum(p, axis=-1, keepdims=True), approx=True)
        # defer the 1/l normalization to the (S, dh) context (flash-style)
        ctx_h = jnp.dot(p.astype(jnp.bfloat16), v,
                        preferred_element_type=jnp.float32) * inv
        ctx_parts.append(ctx_h.astype(jnp.bfloat16))
    ctx = jnp.concatenate(ctx_parts, axis=-1)             # (S, H) bf16

    # output projection + residual + LayerNorm, all in-register
    y = (jnp.dot(ctx, wo_ref[...], preferred_element_type=jnp.float32)
         + bo_ref[...] + x.astype(jnp.float32))
    o_ref[...] = _layernorm(y, g_ref[...], b_ref[...], eps).astype(o_ref.dtype)


def attention_layer(x, w_qkv, b_qkv, wo, bo, gamma, beta, mask_bias,
                    *, n_heads, scale, eps=1e-12):
    B, S, H = x.shape
    kern = functools.partial(_attn_layer_kernel, n_heads=n_heads,
                             scale=scale, eps=eps)
    # TODO(synk): for long sequences, tile over KV blocks (online softmax)
    # instead of materializing the full (S,S) score matrix per head.
    return pl.pallas_call(
        kern,
        out_shape=jax.ShapeDtypeStruct((B, S, H), jnp.bfloat16),
        grid=(B,),
        in_specs=[
            pl.BlockSpec((None, S, H), lambda b: (b, 0, 0)),   # x
            pl.BlockSpec((H, 3 * H), lambda b: (0, 0)),        # w_qkv
            pl.BlockSpec((1, 3 * H), lambda b: (0, 0)),        # b_qkv
            pl.BlockSpec((H, H), lambda b: (0, 0)),            # wo
            pl.BlockSpec((1, H), lambda b: (0, 0)),            # bo
            pl.BlockSpec((1, H), lambda b: (0, 0)),            # ln gamma
            pl.BlockSpec((1, H), lambda b: (0, 0)),            # ln beta
            pl.BlockSpec((None, 1, S), lambda b: (b, 0, 0)),   # mask bias
        ],
        out_specs=pl.BlockSpec((None, S, H), lambda b: (b, 0, 0)),
        compiler_params=pltpu.CompilerParams(
            dimension_semantics=("parallel",), vmem_limit_bytes=_VMEM_LIMIT),
    )(x, w_qkv, b_qkv, wo, bo, gamma, beta, mask_bias)


# ------- kernel 3: FFN + residual + LN + first-token pooler (tanh dense) -----

def _ffn_pool_kernel(x_ref, wi_ref, bi_ref, wo2_ref, bo2_ref,
                     g_ref, b_ref, wp_ref, bp_ref, o_ref, *, eps):
    x = x_ref[...]                                        # (S, H) bf16
    h1 = jnp.dot(x, wi_ref[...],
                 preferred_element_type=jnp.float32) + bi_ref[...]     # (S, I)
    h1 = _gelu_tanh(h1).astype(jnp.bfloat16)
    y = (jnp.dot(h1, wo2_ref[...], preferred_element_type=jnp.float32)
         + bo2_ref[...] + x.astype(jnp.float32))
    h_ln = _layernorm(y, g_ref[...], b_ref[...], eps)     # (S, H) f32
    # pooler: tanh(dense(hidden[:, 0, :])) -- only this ever leaves the chip
    first = h_ln[0:1, :].astype(jnp.bfloat16)             # (1, H)
    pooled = jnp.tanh(jnp.dot(first, wp_ref[...],
                              preferred_element_type=jnp.float32) + bp_ref[...])
    o_ref[...] = pooled.astype(o_ref.dtype)


def ffn_pooler(x, wi, bi, wo2, bo2, gamma, beta, w_pool, b_pool, *, eps=1e-12):
    B, S, H = x.shape
    I = wi.shape[1]
    kern = functools.partial(_ffn_pool_kernel, eps=eps)
    return pl.pallas_call(
        kern,
        out_shape=jax.ShapeDtypeStruct((B, 1, H), jnp.float32),
        grid=(B,),
        in_specs=[
            pl.BlockSpec((None, S, H), lambda b: (b, 0, 0)),   # x
            pl.BlockSpec((H, I), lambda b: (0, 0)),            # wi
            pl.BlockSpec((1, I), lambda b: (0, 0)),            # bi
            pl.BlockSpec((I, H), lambda b: (0, 0)),            # wo2
            pl.BlockSpec((1, H), lambda b: (0, 0)),            # bo2
            pl.BlockSpec((1, H), lambda b: (0, 0)),            # ln gamma
            pl.BlockSpec((1, H), lambda b: (0, 0)),            # ln beta
            pl.BlockSpec((H, H), lambda b: (0, 0)),            # w_pool
            pl.BlockSpec((1, H), lambda b: (0, 0)),            # b_pool
        ],
        out_specs=pl.BlockSpec((None, 1, H), lambda b: (b, 0, 0)),
        compiler_params=pltpu.CompilerParams(
            dimension_semantics=("parallel",), vmem_limit_bytes=_VMEM_LIMIT),
    )(x, wi, bi, wo2, bo2, gamma, beta, w_pool, b_pool)


# ----------------------------- synthetic encoder -----------------------------

def init_params(key, vocab, max_pos, hidden, inter):
    ks = jax.random.split(key, 8)
    n = lambda k, shape: (0.02 * jax.random.normal(k, shape)).astype(jnp.float32)
    return {
        "word_emb": n(ks[0], (vocab, hidden)),
        "pos_emb": n(ks[1], (max_pos, hidden)),
        "emb_ln_g": jnp.ones((hidden,), jnp.float32),
        "emb_ln_b": jnp.zeros((hidden,), jnp.float32),
        "w_qkv": n(ks[2], (hidden, 3 * hidden)),           # [Q | K | V] layout
        "b_qkv": jnp.zeros((3 * hidden,), jnp.float32),
        "wo": n(ks[3], (hidden, hidden)), "bo": jnp.zeros((hidden,), jnp.float32),
        "attn_ln_g": jnp.ones((hidden,), jnp.float32),
        "attn_ln_b": jnp.zeros((hidden,), jnp.float32),
        "wi": n(ks[4], (hidden, inter)), "bi": jnp.zeros((inter,), jnp.float32),
        "wo2": n(ks[5], (inter, hidden)), "bo2": jnp.zeros((hidden,), jnp.float32),
        "ffn_ln_g": jnp.ones((hidden,), jnp.float32),
        "ffn_ln_b": jnp.zeros((hidden,), jnp.float32),
        "w_pool": n(ks[6], (hidden, hidden)),
        "b_pool": jnp.zeros((hidden,), jnp.float32),
    }


def prepare_params(raw):
    """One-off weight prep: bf16 matmul weights, (1, N) f32 biases / LN params."""
    bf16, f32 = jnp.bfloat16, jnp.float32
    H = raw["word_emb"].shape[1]
    I = raw["wi"].shape[1]
    return {
        "word_emb": raw["word_emb"].astype(f32),
        "pos_emb": raw["pos_emb"].astype(f32),
        "emb_ln_g": raw["emb_ln_g"].reshape(1, H).astype(f32),
        "emb_ln_b": raw["emb_ln_b"].reshape(1, H).astype(f32),
        "w_qkv": raw["w_qkv"].astype(bf16),
        "b_qkv": raw["b_qkv"].reshape(1, 3 * H).astype(f32),
        "wo": raw["wo"].astype(bf16),
        "bo": raw["bo"].reshape(1, H).astype(f32),
        "attn_ln_g": raw["attn_ln_g"].reshape(1, H).astype(f32),
        "attn_ln_b": raw["attn_ln_b"].reshape(1, H).astype(f32),
        "wi": raw["wi"].astype(bf16),
        "bi": raw["bi"].reshape(1, I).astype(f32),
        "wo2": raw["wo2"].astype(bf16),
        "bo2": raw["bo2"].reshape(1, H).astype(f32),
        "ffn_ln_g": raw["ffn_ln_g"].reshape(1, H).astype(f32),
        "ffn_ln_b": raw["ffn_ln_b"].reshape(1, H).astype(f32),
        "w_pool": raw["w_pool"].astype(bf16),
        "b_pool": raw["b_pool"].reshape(1, H).astype(f32),
    }


def wrapper_forward(params, input_ids, attention_mask, dummy_tensor, *, n_heads):
    """Equivalent of Wrapper.forward: encoder(input_ids, mask).pooler_output."""
    del dummy_tensor  # only used by torch checkpointing; not part of the math
    B, S = input_ids.shape
    H = params["word_emb"].shape[1]
    dh = H // n_heads

    # embedding gather = glue; pos add + LayerNorm fused in-kernel
    emb = jnp.take(params["word_emb"], input_ids, axis=0)          # (B,S,H) f32
    pos = params["pos_emb"][:S]                                    # (S,H) f32
    x = embed_layernorm(emb, pos, params["emb_ln_g"], params["emb_ln_b"])

    mask_bias = ((1.0 - attention_mask.astype(jnp.float32)) * -10000.0
                 ).reshape(B, 1, S)

    # fused QKV + attention + output-projection + residual + LN (one call)
    x = attention_layer(x, params["w_qkv"], params["b_qkv"],
                        params["wo"], params["bo"],
                        params["attn_ln_g"], params["attn_ln_b"], mask_bias,
                        n_heads=n_heads, scale=1.0 / math.sqrt(dh))

    # fused FFN + residual + LN + first-token pooler (one call)
    pooled = ffn_pooler(x, params["wi"], params["bi"],
                        params["wo2"], params["bo2"],
                        params["ffn_ln_g"], params["ffn_ln_b"],
                        params["w_pool"], params["b_pool"])        # (B,1,H) f32
    return pooled.reshape(B, H)


# ----------------------------------- main -------------------------------------

if __name__ == "__main__":
    # small but TPU-aligned shapes: dh = 128 (lane-dense attention tiles)
    B, S, H, NH, INTER, VOCAB, MAXPOS = 2, 128, 256, 2, 512, 1000, 512

    key = jax.random.PRNGKey(0)
    k_params, k_ids = jax.random.split(key)
    params = prepare_params(init_params(k_params, VOCAB, MAXPOS, H, INTER))

    input_ids = jax.random.randint(k_ids, (B, S), 0, VOCAB, dtype=jnp.int32)
    attention_mask = jnp.ones((B, S), dtype=jnp.int32).at[1, 100:].set(0)
    dummy_tensor = jnp.ones((1,), dtype=jnp.float32)  # matches Wrapper signature

    forward = jax.jit(functools.partial(wrapper_forward, n_heads=NH))
    out = forward(params, input_ids, attention_mask, dummy_tensor)
    jax.block_until_ready(out)
    assert out.shape == (B, H) and out.dtype == jnp.float32
    assert bool(jnp.all(jnp.isfinite(out)))
    print("KERNEL_OK")
</pallas_src>

<mosaic_0001>
module attributes {stable_mosaic.version = 11 : i64} {
  func.func @_emb_ln_kernel(%arg0: i32, %arg1: memref<1x128x256xf32, #tpu.memory_space<vmem>>, %arg2: memref<128x256xf32, #tpu.memory_space<vmem>>, %arg3: memref<1x256xf32, #tpu.memory_space<vmem>>, %arg4: memref<1x256xf32, #tpu.memory_space<vmem>>, %arg5: memref<1x128x256xbf16, #tpu.memory_space<vmem>>) attributes {dimension_semantics = [#tpu.dimension_semantics<parallel>], iteration_bounds = array<i64: 2>, scalar_prefetch = 0 : i64, scratch_operands = 0 : i64, tpu.core_type = #tpu.core_type<tc>, window_params = [{transform_indices = @transform_0, window_bounds = array<i64: 1, 128, 256>}, {pipeline_mode = #tpu.pipeline_mode<synchronous>, transform_indices = @transform_1, window_bounds = array<i64: 128, 256>}, {pipeline_mode = #tpu.pipeline_mode<synchronous>, transform_indices = @transform_2, window_bounds = array<i64: 1, 256>}, {pipeline_mode = #tpu.pipeline_mode<synchronous>, transform_indices = @transform_3, window_bounds = array<i64: 1, 256>}, {transform_indices = @transform_4, window_bounds = array<i64: 1, 128, 256>}]} {
    %c0 = arith.constant 0 : index
    %c0_0 = arith.constant 0 : index
    %c0_1 = arith.constant 0 : index
    %0 = vector.load %arg1[%c0, %c0_0, %c0_1] : memref<1x128x256xf32, #tpu.memory_space<vmem>>, vector<1x128x256xf32>
    %1 = vector.shape_cast %0 : vector<1x128x256xf32> to vector<128x256xf32>
    %c0_2 = arith.constant 0 : index
    %c0_3 = arith.constant 0 : index
    %2 = vector.load %arg2[%c0_2, %c0_3] : memref<128x256xf32, #tpu.memory_space<vmem>>, vector<128x256xf32>
    %3 = arith.addf %1, %2 : vector<128x256xf32>
    %c0_4 = arith.constant 0 : index
    %c0_5 = arith.constant 0 : index
    %4 = vector.load %arg3[%c0_4, %c0_5] : memref<1x256xf32, #tpu.memory_space<vmem>>, vector<1x256xf32>
    %c0_6 = arith.constant 0 : index
    %c0_7 = arith.constant 0 : index
    %5 = vector.load %arg4[%c0_6, %c0_7] : memref<1x256xf32, #tpu.memory_space<vmem>>, vector<1x256xf32>
    %cst = arith.constant dense<0.000000e+00> : vector<128xf32>
    %6 = vector.multi_reduction <add>, %3, %cst [1] : vector<128x256xf32> to vector<128xf32>
    %7 = vector.shape_cast %6 : vector<128xf32> to vector<128x1xf32>
    %cst_8 = arith.constant 2.560000e+02 : f32
    %8 = vector.broadcast %cst_8 : f32 to vector<128x1xf32>
    %9 = arith.divf %7, %8 : vector<128x1xf32>
    %10 = vector.broadcast %9 : vector<128x1xf32> to vector<128x256xf32>
    %11 = arith.subf %3, %10 : vector<128x256xf32>
    %12 = arith.mulf %11, %11 : vector<128x256xf32>
    %cst_9 = arith.constant dense<0.000000e+00> : vector<128xf32>
    %13 = vector.multi_reduction <add>, %12, %cst_9 [1] : vector<128x256xf32> to vector<128xf32>
    %14 = vector.shape_cast %13 : vector<128xf32> to vector<128x1xf32>
    %cst_10 = arith.constant 2.560000e+02 : f32
    %15 = vector.broadcast %cst_10 : f32 to vector<128x1xf32>
    %16 = arith.divf %14, %15 : vector<128x1xf32>
    %cst_11 = arith.constant 9.99999996E-13 : f32
    %17 = vector.broadcast %cst_11 : f32 to vector<128x1xf32>
    %18 = arith.addf %16, %17 : vector<128x1xf32>
    %19 = math.rsqrt %18 : vector<128x1xf32>
    %20 = vector.broadcast %19 : vector<128x1xf32> to vector<128x256xf32>
    %21 = arith.mulf %11, %20 : vector<128x256xf32>
    %22 = vector.broadcast %4 : vector<1x256xf32> to vector<128x256xf32>
    %23 = arith.mulf %21, %22 : vector<128x256xf32>
    %24 = vector.broadcast %5 : vector<1x256xf32> to vector<128x256xf32>
    %25 = arith.addf %23, %24 : vector<128x256xf32>
    %26 = arith.truncf %25 : vector<128x256xf32> to vector<128x256xbf16>
    %c0_12 = arith.constant 0 : index
    %c0_13 = arith.constant 0 : index
    %c0_14 = arith.constant 0 : index
    %27 = vector.load %arg5[%c0_12, %c0_13, %c0_14] : memref<1x128x256xbf16, #tpu.memory_space<vmem>>, vector<1x128x256xbf16>
    %28 = vector.shape_cast %27 : vector<1x128x256xbf16> to vector<128x256xbf16>
    %29 = vector.shape_cast %26 : vector<128x256xbf16> to vector<1x128x256xbf16>
    tpu.vector_store %arg5[%c0_12, %c0_13, %c0_14], %29 {strides = array<i32>} : memref<1x128x256xbf16, #tpu.memory_space<vmem>>, vector<1x128x256xbf16>,
    return
  }
  func.func @transform_0(%arg0: i32) -> (i32, i32, i32) {
    %c0_i32 = arith.constant 0 : i32
    %c0_i32_0 = arith.constant 0 : i32
    %c0_i32_1 = arith.constant 0 : i32
    return %arg0, %c0_i32, %c0_i32_0 : i32, i32, i32
  }
  func.func @transform_1(%arg0: i32) -> (i32, i32) {
    %c0_i32 = arith.constant 0 : i32
    %c0_i32_0 = arith.constant 0 : i32
    %c0_i32_1 = arith.constant 0 : i32
    return %c0_i32, %c0_i32_0 : i32, i32
  }
  func.func @transform_2(%arg0: i32) -> (i32, i32) {
    %c0_i32 = arith.constant 0 : i32
    %c0_i32_0 = arith.constant 0 : i32
    %c0_i32_1 = arith.constant 0 : i32
    return %c0_i32, %c0_i32_0 : i32, i32
  }
  func.func @transform_3(%arg0: i32) -> (i32, i32) {
    %c0_i32 = arith.constant 0 : i32
    %c0_i32_0 = arith.constant 0 : i32
    %c0_i32_1 = arith.constant 0 : i32
    return %c0_i32, %c0_i32_0 : i32, i32
  }
  func.func @transform_4(%arg0: i32) -> (i32, i32, i32) {
    %c0_i32 = arith.constant 0 : i32
    %c0_i32_0 = arith.constant 0 : i32
    %c0_i32_1 = arith.constant 0 : i32
    return %arg0, %c0_i32, %c0_i32_0 : i32, i32, i32
  }
}

module attributes {stable_mosaic.version = 11 : i64} {
  func.func @_attn_layer_kernel(%arg0: i32, %arg1: memref<1x128x256xbf16, #tpu.memory_space<vmem>>, %arg2: memref<256x768xbf16, #tpu.memory_space<vmem>>, %arg3: memref<1x768xf32, #tpu.memory_space<vmem>>, %arg4: memref<256x256xbf16, #tpu.memory_space<vmem>>, %arg5: memref<1x256xf32, #tpu.memory_space<vmem>>, %arg6: memref<1x256xf32, #tpu.memory_space<vmem>>, %arg7: memref<1x256xf32, #tpu.memory_space<vmem>>, %arg8: memref<1x1x128xf32, #tpu.memory_space<vmem>>, %arg9: memref<1x128x256xbf16, #tpu.memory_space<vmem>>) attributes {dimension_semantics = [#tpu.dimension_semantics<parallel>], iteration_bounds = array<i64: 2>, scalar_prefetch = 0 : i64, scratch_operands = 0 : i64, tpu.core_type = #tpu.core_type<tc>, window_params = [{transform_indices = @transform_0, window_bounds = array<i64: 1, 128, 256>}, {pipeline_mode = #tpu.pipeline_mode<synchronous>, transform_indices = @transform_1, window_bounds = array<i64: 256, 768>}, {pipeline_mode = #tpu.pipeline_mode<synchronous>, transform_indices = @transform_2, window_bounds = array<i64: 1, 768>}, {pipeline_mode = #tpu.pipeline_mode<synchronous>, transform_indices = @transform_3, window_bounds = array<i64: 256, 256>}, {pipeline_mode = #tpu.pipeline_mode<synchronous>, transform_indices = @transform_4, window_bounds = array<i64: 1, 256>}, {pipeline_mode = #tpu.pipeline_mode<synchronous>, transform_indices = @transform_5, window_bounds = array<i64: 1, 256>}, {pipeline_mode = #tpu.pipeline_mode<synchronous>, transform_indices = @transform_6, window_bounds = array<i64: 1, 256>}, {transform_indices = @transform_7, window_bounds = array<i64: 1, 1, 128>}, {transform_indices = @transform_8, window_bounds = array<i64: 1, 128, 256>}]} {
    %c0 = arith.constant 0 : index
    %c0_0 = arith.constant 0 : index
    %c0_1 = arith.constant 0 : index
    %0 = vector.load %arg1[%c0, %c0_0, %c0_1] : memref<1x128x256xbf16, #tpu.memory_space<vmem>>, vector<1x128x256xbf16>
    %1 = vector.shape_cast %0 : vector<1x128x256xbf16> to vector<128x256xbf16>
    %c0_2 = arith.constant 0 : index
    %c0_3 = arith.constant 0 : index
    %2 = vector.load %arg2[%c0_2, %c0_3] : memref<256x768xbf16, #tpu.memory_space<vmem>>, vector<256x768xbf16>
    %cst = arith.constant dense<0.000000e+00> : vector<128x768xf32>
    %3 = tpu.matmul %1, %2, %cst {dimension_numbers = #tpu.dot_dimension_numbers<[1], [0], [0], [1], [0, 0, 1, 1], [], []>} : vector<128x256xbf16>, vector<256x768xbf16>, vector<128x768xf32> -> vector<128x768xf32>
    %c0_4 = arith.constant 0 : index
    %c0_5 = arith.constant 0 : index
    %4 = vector.load %arg3[%c0_4, %c0_5] : memref<1x768xf32, #tpu.memory_space<vmem>>, vector<1x768xf32>
    %5 = vector.broadcast %4 : vector<1x768xf32> to vector<128x768xf32>
    %6 = arith.addf %3, %5 : vector<128x768xf32>
    %c0_6 = arith.constant 0 : index
    %c0_7 = arith.constant 0 : index
    %c0_8 = arith.constant 0 : index
    %7 = vector.load %arg8[%c0_6, %c0_7, %c0_8] : memref<1x1x128xf32, #tpu.memory_space<vmem>>, vector<1x1x128xf32>
    %8 = vector.shape_cast %7 : vector<1x1x128xf32> to vector<1x128xf32>
    %9 = vector.extract_strided_slice %6 {offsets = [0, 0], sizes = [128, 128], strides = [1, 1]} : vector<128x768xf32> to vector<128x128xf32>
    %cst_9 = arith.constant 0.0883883461 : f32
    %10 = vector.broadcast %cst_9 : f32 to vector<128x128xf32>
    %11 = arith.mulf %9, %10 : vector<128x128xf32>
    %12 = arith.truncf %11 : vector<128x128xf32> to vector<128x128xbf16>
    %13 = vector.extract_strided_slice %6 {offsets = [0, 256], sizes = [128, 128], strides = [1, 1]} : vector<128x768xf32> to vector<128x128xf32>
    %14 = arith.truncf %13 : vector<128x128xf32> to vector<128x128xbf16>
    %15 = vector.extract_strided_slice %6 {offsets = [0, 512], sizes = [128, 128], strides = [1, 1]} : vector<128x768xf32> to vector<128x128xf32>
    %16 = arith.truncf %15 : vector<128x128xf32> to vector<128x128xbf16>
    %cst_10 = arith.constant dense<0.000000e+00> : vector<128x128xf32>
    %17 = tpu.matmul %12, %14, %cst_10 {dimension_numbers = #tpu.dot_dimension_numbers<[1], [1], [0], [0], [0, 0, 1, 0], [], []>} : vector<128x128xbf16>, vector<128x128xbf16>, vector<128x128xf32> -> vector<128x128xf32>
    %18 = vector.broadcast %8 : vector<1x128xf32> to vector<128x128xf32>
    %19 = arith.addf %17, %18 : vector<128x128xf32>
    %cst_11 = arith.constant dense<0xFF800000> : vector<128xf32>
    %20 = vector.multi_reduction <maximumf>, %19, %cst_11 [1] : vector<128x128xf32> to vector<128xf32>
    %21 = vector.shape_cast %20 : vector<128xf32> to vector<128x1xf32>
    %22 = vector.broadcast %21 : vector<128x1xf32> to vector<128x128xf32>
    %23 = arith.subf %19, %22 : vector<128x128xf32>
    %24 = math.exp %23 : vector<128x128xf32>
    %cst_12 = arith.constant dense<0.000000e+00> : vector<128xf32>
    %25 = vector.multi_reduction <add>, %24, %cst_12 [1] : vector<128x128xf32> to vector<128xf32>
    %26 = vector.shape_cast %25 : vector<128xf32> to vector<128x1xf32>
    %27 = tpu.reciprocal %26 {approx = true} : vector<128x1xf32> -> vector<128x1xf32>
    %28 = arith.truncf %24 : vector<128x128xf32> to vector<128x128xbf16>
    %cst_13 = arith.constant dense<0.000000e+00> : vector<128x128xf32>
    %29 = tpu.matmul %28, %16, %cst_13 {dimension_numbers = #tpu.dot_dimension_numbers<[1], [0], [0], [1], [0, 0, 1, 1], [], []>} : vector<128x128xbf16>, vector<128x128xbf16>, vector<128x128xf32> -> vector<128x128xf32>
    %30 = vector.broadcast %27 : vector<128x1xf32> to vector<128x128xf32>
    %31 = arith.mulf %29, %30 : vector<128x128xf32>
    %32 = arith.truncf %31 : vector<128x128xf32> to vector<128x128xbf16>
    %33 = vector.extract_strided_slice %6 {offsets = [0, 128], sizes = [128, 128], strides = [1, 1]} : vector<128x768xf32> to vector<128x128xf32>
    %cst_14 = arith.constant 0.0883883461 : f32
    %34 = vector.broadcast %cst_14 : f32 to vector<128x128xf32>
    %35 = arith.mulf %33, %34 : vector<128x128xf32>
    %36 = arith.truncf %35 : vector<128x128xf32> to vector<128x128xbf16>
    %37 = vector.extract_strided_slice %6 {offsets = [0, 384], sizes = [128, 128], strides = [1, 1]} : vector<128x768xf32> to vector<128x128xf32>
    %38 = arith.truncf %37 : vector<128x128xf32> to vector<128x128xbf16>
    %39 = vector.extract_strided_slice %6 {offsets = [0, 640], sizes = [128, 128], strides = [1, 1]} : vector<128x768xf32> to vector<128x128xf32>
    %40 = arith.truncf %39 : vector<128x128xf32> to vector<128x128xbf16>
    %cst_15 = arith.constant dense<0.000000e+00> : vector<128x128xf32>
    %41 = tpu.matmul %36, %38, %cst_15 {dimension_numbers = #tpu.dot_dimension_numbers<[1], [1], [0], [0], [0, 0, 1, 0], [], []>} : vector<128x128xbf16>, vector<128x128xbf16>, vector<128x128xf32> -> vector<128x128xf32>
    %42 = vector.broadcast %8 : vector<1x128xf32> to vector<128x128xf32>
    %43 = arith.addf %41, %42 : vector<128x128xf32>
    %cst_16 = arith.constant dense<0xFF800000> : vector<128xf32>
    %44 = vector.multi_reduction <maximumf>, %43, %cst_16 [1] : vector<128x128xf32> to vector<128xf32>
    %45 = vector.shape_cast %44 : vector<128xf32> to vector<128x1xf32>
    %46 = vector.broadcast %45 : vector<128x1xf32> to vector<128x128xf32>
    %47 = arith.subf %43, %46 : vector<128x128xf32>
    %48 = math.exp %47 : vector<128x128xf32>
    %cst_17 = arith.constant dense<0.000000e+00> : vector<128xf32>
    %49 = vector.multi_reduction <add>, %48, %cst_17 [1] : vector<128x128xf32> to vector<128xf32>
    %50 = vector.shape_cast %49 : vector<128xf32> to vector<128x1xf32>
    %51 = tpu.reciprocal %50 {approx = true} : vector<128x1xf32> -> vector<128x1xf32>
    %52 = arith.truncf %48 : vector<128x128xf32> to vector<128x128xbf16>
    %cst_18 = arith.constant dense<0.000000e+00> : vector<128x128xf32>
    %53 = tpu.matmul %52, %40, %cst_18 {dimension_numbers = #tpu.dot_dimension_numbers<[1], [0], [0], [1], [0, 0, 1, 1], [], []>} : vector<128x128xbf16>, vector<128x128xbf16>, vector<128x128xf32> -> vector<128x128xf32>
    %54 = vector.broadcast %51 : vector<128x1xf32> to vector<128x128xf32>
    %55 = arith.mulf %53, %54 : vector<128x128xf32>
    %56 = arith.truncf %55 : vector<128x128xf32> to vector<128x128xbf16>
    %57 = tpu.concatenate %32, %56 in 1 : vector<128x128xbf16>, vector<128x128xbf16> -> vector<128x256xbf16>
    %c0_19 = arith.constant 0 : index
    %c0_20 = arith.constant 0 : index
    %58 = vector.load %arg4[%c0_19, %c0_20] : memref<256x256xbf16, #tpu.memory_space<vmem>>, vector<256x256xbf16>
    %cst_21 = arith.constant dense<0.000000e+00> : vector<128x256xf32>
    %59 = tpu.matmul %57, %58, %cst_21 {dimension_numbers = #tpu.dot_dimension_numbers<[1], [0], [0], [1], [0, 0, 1, 1], [], []>} : vector<128x256xbf16>, vector<256x256xbf16>, vector<128x256xf32> -> vector<128x256xf32>
    %c0_22 = arith.constant 0 : index
    %c0_23 = arith.constant 0 : index
    %60 = vector.load %arg5[%c0_22, %c0_23] : memref<1x256xf32, #tpu.memory_space<vmem>>, vector<1x256xf32>
    %61 = vector.broadcast %60 : vector<1x256xf32> to vector<128x256xf32>
    %62 = arith.addf %59, %61 : vector<128x256xf32>
    %63 = arith.extf %1 : vector<128x256xbf16> to vector<128x256xf32>
    %64 = arith.addf %62, %63 : vector<128x256xf32>
    %c0_24 = arith.constant 0 : index
    %c0_25 = arith.constant 0 : index
    %65 = vector.load %arg6[%c0_24, %c0_25] : memref<1x256xf32, #tpu.memory_space<vmem>>, vector<1x256xf32>
    %c0_26 = arith.constant 0 : index
    %c0_27 = arith.constant 0 : index
    %66 = vector.load %arg7[%c0_26, %c0_27] : memref<1x256xf32, #tpu.memory_space<vmem>>, vector<1x256xf32>
    %cst_28 = arith.constant dense<0.000000e+00> : vector<128xf32>
    %67 = vector.multi_reduction <add>, %64, %cst_28 [1] : vector<128x256xf32> to vector<128xf32>
    %68 = vector.shape_cast %67 : vector<128xf32> to vector<128x1xf32>
    %cst_29 = arith.constant 2.560000e+02 : f32
    %69 = vector.broadcast %cst_29 : f32 to vector<128x1xf32>
    %70 = arith.divf %68, %69 : vector<128x1xf32>
    %71 = vector.broadcast %70 : vector<128x1xf32> to vector<128x256xf32>
    %72 = arith.subf %64, %71 : vector<128x256xf32>
    %73 = arith.mulf %72, %72 : vector<128x256xf32>
    %cst_30 = arith.constant dense<0.000000e+00> : vector<128xf32>
    %74 = vector.multi_reduction <add>, %73, %cst_30 [1] : vector<128x256xf32> to vector<128xf32>
    %75 = vector.shape_cast %74 : vector<128xf32> to vector<128x1xf32>
    %cst_31 = arith.constant 2.560000e+02 : f32
    %76 = vector.broadcast %cst_31 : f32 to vector<128x1xf32>
    %77 = arith.divf %75, %76 : vector<128x1xf32>
    %cst_32 = arith.constant 9.99999996E-13 : f32
    %78 = vector.broadcast %cst_32 : f32 to vector<128x1xf32>
    %79 = arith.addf %77, %78 : vector<128x1xf32>
    %80 = math.rsqrt %79 : vector<128x1xf32>
    %81 = vector.broadcast %80 : vector<128x1xf32> to vector<128x256xf32>
    %82 = arith.mulf %72, %81 : vector<128x256xf32>
    %83 = vector.broadcast %65 : vector<1x256xf32> to vector<128x256xf32>
    %84 = arith.mulf %82, %83 : vector<128x256xf32>
    %85 = vector.broadcast %66 : vector<1x256xf32> to vector<128x256xf32>
    %86 = arith.addf %84, %85 : vector<128x256xf32>
    %87 = arith.truncf %86 : vector<128x256xf32> to vector<128x256xbf16>
    %c0_33 = arith.constant 0 : index
    %c0_34 = arith.constant 0 : index
    %c0_35 = arith.constant 0 : index
    %88 = vector.load %arg9[%c0_33, %c0_34, %c0_35] : memref<1x128x256xbf16, #tpu.memory_space<vmem>>, vector<1x128x256xbf16>
    %89 = vector.shape_cast %88 : vector<1x128x256xbf16> to vector<128x256xbf16>
    %90 = vector.shape_cast %87 : vector<128x256xbf16> to vector<1x128x256xbf16>
    tpu.vector_store %arg9[%c0_33, %c0_34, %c0_35], %90 {strides = array<i32>} : memref<1x128x256xbf16, #tpu.memory_space<vmem>>, vector<1x128x256xbf16>,
    return
  }
  func.func @transform_0(%arg0: i32) -> (i32, i32, i32) {
    %c0_i32 = arith.constant 0 : i32
    %c0_i32_0 = arith.constant 0 : i32
    %c0_i32_1 = arith.constant 0 : i32
    return %arg0, %c0_i32, %c0_i32_0 : i32, i32, i32
  }
  func.func @transform_1(%arg0: i32) -> (i32, i32) {
    %c0_i32 = arith.constant 0 : i32
    %c0_i32_0 = arith.constant 0 : i32
    %c0_i32_1 = arith.constant 0 : i32
    return %c0_i32, %c0_i32_0 : i32, i32
  }
  func.func @transform_2(%arg0: i32) -> (i32, i32) {
    %c0_i32 = arith.constant 0 : i32
    %c0_i32_0 = arith.constant 0 : i32
    %c0_i32_1 = arith.constant 0 : i32
    return %c0_i32, %c0_i32_0 : i32, i32
  }
  func.func @transform_3(%arg0: i32) -> (i32, i32) {
    %c0_i32 = arith.constant 0 : i32
    %c0_i32_0 = arith.constant 0 : i32
    %c0_i32_1 = arith.constant 0 : i32
    return %c0_i32, %c0_i32_0 : i32, i32
  }
  func.func @transform_4(%arg0: i32) -> (i32, i32) {
    %c0_i32 = arith.constant 0 : i32
    %c0_i32_0 = arith.constant 0 : i32
    %c0_i32_1 = arith.constant 0 : i32
    return %c0_i32, %c0_i32_0 : i32, i32
  }
  func.func @transform_5(%arg0: i32) -> (i32, i32) {
    %c0_i32 = arith.constant 0 : i32
    %c0_i32_0 = arith.constant 0 : i32
    %c0_i32_1 = arith.constant 0 : i32
    return %c0_i32, %c0_i32_0 : i32, i32
  }
  func.func @transform_6(%arg0: i32) -> (i32, i32) {
    %c0_i32 = arith.constant 0 : i32
    %c0_i32_0 = arith.constant 0 : i32
    %c0_i32_1 = arith.constant 0 : i32
    return %c0_i32, %c0_i32_0 : i32, i32
  }
  func.func @transform_7(%arg0: i32) -> (i32, i32, i32) {
    %c0_i32 = arith.constant 0 : i32
    %c0_i32_0 = arith.constant 0 : i32
    %c0_i32_1 = arith.constant 0 : i32
    return %arg0, %c0_i32, %c0_i32_0 : i32, i32, i32
  }
  func.func @transform_8(%arg0: i32) -> (i32, i32, i32) {
    %c0_i32 = arith.constant 0 : i32
    %c0_i32_0 = arith.constant 0 : i32
    %c0_i32_1 = arith.constant 0 : i32
    return %arg0, %c0_i32, %c0_i32_0 : i32, i32, i32
  }
}

module attributes {stable_mosaic.version = 11 : i64} {
  func.func @_ffn_pool_kernel(%arg0: i32, %arg1: memref<1x128x256xbf16, #tpu.memory_space<vmem>>, %arg2: memref<256x512xbf16, #tpu.memory_space<vmem>>, %arg3: memref<1x512xf32, #tpu.memory_space<vmem>>, %arg4: memref<512x256xbf16, #tpu.memory_space<vmem>>, %arg5: memref<1x256xf32, #tpu.memory_space<vmem>>, %arg6: memref<1x256xf32, #tpu.memory_space<vmem>>, %arg7: memref<1x256xf32, #tpu.memory_space<vmem>>, %arg8: memref<256x256xbf16, #tpu.memory_space<vmem>>, %arg9: memref<1x256xf32, #tpu.memory_space<vmem>>, %arg10: memref<1x1x256xf32, #tpu.memory_space<vmem>>) attributes {dimension_semantics = [#tpu.dimension_semantics<parallel>], iteration_bounds = array<i64: 2>, scalar_prefetch = 0 : i64, scratch_operands = 0 : i64, tpu.core_type = #tpu.core_type<tc>, window_params = [{transform_indices = @transform_0, window_bounds = array<i64: 1, 128, 256>}, {pipeline_mode = #tpu.pipeline_mode<synchronous>, transform_indices = @transform_1, window_bounds = array<i64: 256, 512>}, {pipeline_mode = #tpu.pipeline_mode<synchronous>, transform_indices = @transform_2, window_bounds = array<i64: 1, 512>}, {pipeline_mode = #tpu.pipeline_mode<synchronous>, transform_indices = @transform_3, window_bounds = array<i64: 512, 256>}, {pipeline_mode = #tpu.pipeline_mode<synchronous>, transform_indices = @transform_4, window_bounds = array<i64: 1, 256>}, {pipeline_mode = #tpu.pipeline_mode<synchronous>, transform_indices = @transform_5, window_bounds = array<i64: 1, 256>}, {pipeline_mode = #tpu.pipeline_mode<synchronous>, transform_indices = @transform_6, window_bounds = array<i64: 1, 256>}, {pipeline_mode = #tpu.pipeline_mode<synchronous>, transform_indices = @transform_7, window_bounds = array<i64: 256, 256>}, {pipeline_mode = #tpu.pipeline_mode<synchronous>, transform_indices = @transform_8, window_bounds = array<i64: 1, 256>}, {transform_indices = @transform_9, window_bounds = array<i64: 1, 1, 256>}]} {
    %c0 = arith.constant 0 : index
    %c0_0 = arith.constant 0 : index
    %c0_1 = arith.constant 0 : index
    %0 = vector.load %arg1[%c0, %c0_0, %c0_1] : memref<1x128x256xbf16, #tpu.memory_space<vmem>>, vector<1x128x256xbf16>
    %1 = vector.shape_cast %0 : vector<1x128x256xbf16> to vector<128x256xbf16>
    %c0_2 = arith.constant 0 : index
    %c0_3 = arith.constant 0 : index
    %2 = vector.load %arg2[%c0_2, %c0_3] : memref<256x512xbf16, #tpu.memory_space<vmem>>, vector<256x512xbf16>
    %cst = arith.constant dense<0.000000e+00> : vector<128x512xf32>
    %3 = tpu.matmul %1, %2, %cst {dimension_numbers = #tpu.dot_dimension_numbers<[1], [0], [0], [1], [0, 0, 1, 1], [], []>} : vector<128x256xbf16>, vector<256x512xbf16>, vector<128x512xf32> -> vector<128x512xf32>
    %c0_4 = arith.constant 0 : index
    %c0_5 = arith.constant 0 : index
    %4 = vector.load %arg3[%c0_4, %c0_5] : memref<1x512xf32, #tpu.memory_space<vmem>>, vector<1x512xf32>
    %5 = vector.broadcast %4 : vector<1x512xf32> to vector<128x512xf32>
    %6 = arith.addf %3, %5 : vector<128x512xf32>
    %cst_6 = arith.constant 5.000000e-01 : f32
    %7 = vector.broadcast %cst_6 : f32 to vector<128x512xf32>
    %8 = arith.mulf %7, %6 : vector<128x512xf32>
    %cst_7 = arith.constant 4.471500e-02 : f32
    %9 = vector.broadcast %cst_7 : f32 to vector<128x512xf32>
    %10 = arith.mulf %9, %6 : vector<128x512xf32>
    %11 = arith.mulf %10, %6 : vector<128x512xf32>
    %12 = arith.mulf %11, %6 : vector<128x512xf32>
    %13 = arith.addf %6, %12 : vector<128x512xf32>
    %cst_8 = arith.constant 0.797884583 : f32
    %14 = vector.broadcast %cst_8 : f32 to vector<128x512xf32>
    %15 = arith.mulf %14, %13 : vector<128x512xf32>
    %16 = math.tanh %15 : vector<128x512xf32>
    %cst_9 = arith.constant 1.000000e+00 : f32
    %17 = vector.broadcast %cst_9 : f32 to vector<128x512xf32>
    %18 = arith.addf %17, %16 : vector<128x512xf32>
    %19 = arith.mulf %8, %18 : vector<128x512xf32>
    %20 = arith.truncf %19 : vector<128x512xf32> to vector<128x512xbf16>
    %c0_10 = arith.constant 0 : index
    %c0_11 = arith.constant 0 : index
    %21 = vector.load %arg4[%c0_10, %c0_11] : memref<512x256xbf16, #tpu.memory_space<vmem>>, vector<512x256xbf16>
    %cst_12 = arith.constant dense<0.000000e+00> : vector<128x256xf32>
    %22 = tpu.matmul %20, %21, %cst_12 {dimension_numbers = #tpu.dot_dimension_numbers<[1], [0], [0], [1], [0, 0, 1, 1], [], []>} : vector<128x512xbf16>, vector<512x256xbf16>, vector<128x256xf32> -> vector<128x256xf32>
    %c0_13 = arith.constant 0 : index
    %c0_14 = arith.constant 0 : index
    %23 = vector.load %arg5[%c0_13, %c0_14] : memref<1x256xf32, #tpu.memory_space<vmem>>, vector<1x256xf32>
    %24 = vector.broadcast %23 : vector<1x256xf32> to vector<128x256xf32>
    %25 = arith.addf %22, %24 : vector<128x256xf32>
    %26 = arith.extf %1 : vector<128x256xbf16> to vector<128x256xf32>
    %27 = arith.addf %25, %26 : vector<128x256xf32>
    %c0_15 = arith.constant 0 : index
    %c0_16 = arith.constant 0 : index
    %28 = vector.load %arg6[%c0_15, %c0_16] : memref<1x256xf32, #tpu.memory_space<vmem>>, vector<1x256xf32>
    %c0_17 = arith.constant 0 : index
    %c0_18 = arith.constant 0 : index
    %29 = vector.load %arg7[%c0_17, %c0_18] : memref<1x256xf32, #tpu.memory_space<vmem>>, vector<1x256xf32>
    %cst_19 = arith.constant dense<0.000000e+00> : vector<128xf32>
    %30 = vector.multi_reduction <add>, %27, %cst_19 [1] : vector<128x256xf32> to vector<128xf32>
    %31 = vector.shape_cast %30 : vector<128xf32> to vector<128x1xf32>
    %cst_20 = arith.constant 2.560000e+02 : f32
    %32 = vector.broadcast %cst_20 : f32 to vector<128x1xf32>
    %33 = arith.divf %31, %32 : vector<128x1xf32>
    %34 = vector.broadcast %33 : vector<128x1xf32> to vector<128x256xf32>
    %35 = arith.subf %27, %34 : vector<128x256xf32>
    %36 = arith.mulf %35, %35 : vector<128x256xf32>
    %cst_21 = arith.constant dense<0.000000e+00> : vector<128xf32>
    %37 = vector.multi_reduction <add>, %36, %cst_21 [1] : vector<128x256xf32> to vector<128xf32>
    %38 = vector.shape_cast %37 : vector<128xf32> to vector<128x1xf32>
    %cst_22 = arith.constant 2.560000e+02 : f32
    %39 = vector.broadcast %cst_22 : f32 to vector<128x1xf32>
    %40 = arith.divf %38, %39 : vector<128x1xf32>
    %cst_23 = arith.constant 9.99999996E-13 : f32
    %41 = vector.broadcast %cst_23 : f32 to vector<128x1xf32>
    %42 = arith.addf %40, %41 : vector<128x1xf32>
    %43 = math.rsqrt %42 : vector<128x1xf32>
    %44 = vector.broadcast %43 : vector<128x1xf32> to vector<128x256xf32>
    %45 = arith.mulf %35, %44 : vector<128x256xf32>
    %46 = vector.broadcast %28 : vector<1x256xf32> to vector<128x256xf32>
    %47 = arith.mulf %45, %46 : vector<128x256xf32>
    %48 = vector.broadcast %29 : vector<1x256xf32> to vector<128x256xf32>
    %49 = arith.addf %47, %48 : vector<128x256xf32>
    %50 = vector.extract_strided_slice %49 {offsets = [0, 0], sizes = [1, 256], strides = [1, 1]} : vector<128x256xf32> to vector<1x256xf32>
    %51 = arith.truncf %50 : vector<1x256xf32> to vector<1x256xbf16>
    %c0_24 = arith.constant 0 : index
    %c0_25 = arith.constant 0 : index
    %52 = vector.load %arg8[%c0_24, %c0_25] : memref<256x256xbf16, #tpu.memory_space<vmem>>, vector<256x256xbf16>
    %cst_26 = arith.constant dense<0.000000e+00> : vector<1x256xf32>
    %53 = tpu.matmul %51, %52, %cst_26 {dimension_numbers = #tpu.dot_dimension_numbers<[1], [0], [0], [1], [0, 0, 1, 1], [], []>} : vector<1x256xbf16>, vector<256x256xbf16>, vector<1x256xf32> -> vector<1x256xf32>
    %c0_27 = arith.constant 0 : index
    %c0_28 = arith.constant 0 : index
    %54 = vector.load %arg9[%c0_27, %c0_28] : memref<1x256xf32, #tpu.memory_space<vmem>>, vector<1x256xf32>
    %55 = arith.addf %53, %54 : vector<1x256xf32>
    %56 = math.tanh %55 : vector<1x256xf32>
    %c0_29 = arith.constant 0 : index
    %c0_30 = arith.constant 0 : index
    %c0_31 = arith.constant 0 : index
    %57 = vector.load %arg10[%c0_29, %c0_30, %c0_31] : memref<1x1x256xf32, #tpu.memory_space<vmem>>, vector<1x1x256xf32>
    %58 = vector.shape_cast %57 : vector<1x1x256xf32> to vector<1x256xf32>
    %59 = vector.shape_cast %56 : vector<1x256xf32> to vector<1x1x256xf32>
    tpu.vector_store %arg10[%c0_29, %c0_30, %c0_31], %59 {strides = array<i32>} : memref<1x1x256xf32, #tpu.memory_space<vmem>>, vector<1x1x256xf32>,
    return
  }
  func.func @transform_0(%arg0: i32) -> (i32, i32, i32) {
    %c0_i32 = arith.constant 0 : i32
    %c0_i32_0 = arith.constant 0 : i32
    %c0_i32_1 = arith.constant 0 : i32
    return %arg0, %c0_i32, %c0_i32_0 : i32, i32, i32
  }
  func.func @transform_1(%arg0: i32) -> (i32, i32) {
    %c0_i32 = arith.constant 0 : i32
    %c0_i32_0 = arith.constant 0 : i32
    %c0_i32_1 = arith.constant 0 : i32
    return %c0_i32, %c0_i32_0 : i32, i32
  }
  func.func @transform_2(%arg0: i32) -> (i32, i32) {
    %c0_i32 = arith.constant 0 : i32
    %c0_i32_0 = arith.constant 0 : i32
    %c0_i32_1 = arith.constant 0 : i32
    return %c0_i32, %c0_i32_0 : i32, i32
  }
  func.func @transform_3(%arg0: i32) -> (i32, i32) {
    %c0_i32 = arith.constant 0 : i32
    %c0_i32_0 = arith.constant 0 : i32
    %c0_i32_1 = arith.constant 0 : i32
    return %c0_i32, %c0_i32_0 : i32, i32
  }
  func.func @transform_4(%arg0: i32) -> (i32, i32) {
    %c0_i32 = arith.constant 0 : i32
    %c0_i32_0 = arith.constant 0 : i32
    %c0_i32_1 = arith.constant 0 : i32
    return %c0_i32, %c0_i32_0 : i32, i32
  }
  func.func @transform_5(%arg0: i32) -> (i32, i32) {
    %c0_i32 = arith.constant 0 : i32
    %c0_i32_0 = arith.constant 0 : i32
    %c0_i32_1 = arith.constant 0 : i32
    return %c0_i32, %c0_i32_0 : i32, i32
  }
  func.func @transform_6(%arg0: i32) -> (i32, i32) {
    %c0_i32 = arith.constant 0 : i32
    %c0_i32_0 = arith.constant 0 : i32
    %c0_i32_1 = arith.constant 0 : i32
    return %c0_i32, %c0_i32_0 : i32, i32
  }
  func.func @transform_7(%arg0: i32) -> (i32, i32) {
    %c0_i32 = arith.constant 0 : i32
    %c0_i32_0 = arith.constant 0 : i32
    %c0_i32_1 = arith.constant 0 : i32
    return %c0_i32, %c0_i32_0 : i32, i32
  }
  func.func @transform_8(%arg0: i32) -> (i32, i32) {
    %c0_i32 = arith.constant 0 : i32
    %c0_i32_0 = arith.constant 0 : i32
    %c0_i32_1 = arith.constant 0 : i32
    return %c0_i32, %c0_i32_0 : i32, i32
  }
  func.func @transform_9(%arg0: i32) -> (i32, i32, i32) {
    %c0_i32 = arith.constant 0 : i32
    %c0_i32_0 = arith.constant 0 : i32
    %c0_i32_1 = arith.constant 0 : i32
    return %arg0, %c0_i32, %c0_i32_0 : i32, i32, i32
  }
}

</mosaic_0001>

<bundles_post_ra>
// kernel: wrapper_forward.3
= control target key start
LH: loop header
LB: loop body
LE: loop exit
PB: predicated region body
PF: predicated region fallthrough
CT: control target
= control target key end

     0   :  { %s924_s15 = smov 0   ;;  %s1459_s0 = inlined_call_operand.vmem [shape: f32[2,128,256], index: 0, kind: input, shape index: {}]   ;;  %s1460_s1 = inlined_call_operand.vmem [shape: f32[128,256], index: 1, kind: input, shape index: {}]   ;;  %s1461_s2 = inlined_call_operand.vmem [shape: f32[1,256], index: 2, kind: input, shape index: {}]   ;;  %s1462_s3 = inlined_call_operand.vmem [shape: f32[1,256], index: 3, kind: input, shape index: {}]   ;;  %s1463_s4 = inlined_call_operand.vmem [shape: bf16[2,128,256], index: 4, kind: output, shape index: {}]  }
   0x1 LB: > { %s806_s16 = sadd.s32 4294967295, %s897_s15   ;;  %p810_p0 = scmp.ge.s32.totalorder %s897_s15, 1  ;;  %s897_s15 = sphi %s924_s15, %s14_s15  }
   0x2   : > { %p162_p1 = scmp.lt.s32.totalorder %s897_s15, 3 }
   0x4   : > { %p163_p2 = pnand %p810_p0, %p162_p1 }
   0x5   : > { %p188_p3 = scmp.lt.s32.totalorder (!%p163_p2), %s806_s16, 1 }
   0x6   : > { %166 = sbr.rel (%p163_p2) target bundleno = 371 (0x173), region = 36 }
   0xb   : > { %s1465_s16 = smov (!%p188_p3, %s806_s16), 1  ;;  %v230_v0 = vld [vmem:[%s1460_s1] sm:$0xff]  ;;  %v231_v1 = vld [vmem:[%s1460_s1 + $0x8] sm:$0xff]  ;;  %v232_v4 = vld [vmem:[%s1460_s1 + $0x10] sm:$0xff] }
   0xc   : > { %s833_s21 = sshll.u32 %s1465_s16, 8  ;;  %v234_v2 = vld [vmem:[%s1460_s1 + $0x20] sm:$0xff]  ;;  %v235_v3 = vld [vmem:[%s1460_s1 + $0x28] sm:$0xff]  ;;  %v233_v5 = vld [vmem:[%s1460_s1 + $0x18] sm:$0xff]  ;;  %s834_s18 = sshll.u32 %s1465_s16, 7 }
   0xd   : > { %s953_s30 = scalar_lea.vmem %s1459_s0, %s833_s21  ;;  %v236_v6 = vld [vmem:[%s1460_s1 + $0x30] sm:$0xff]  ;;  %v237_v7 = vld [vmem:[%s1460_s1 + $0x38] sm:$0xff]  ;;  %v238_v11 = vld [vmem:[%s1460_s1 + $0x40] sm:$0xff]  ;;  %s1350_s20 = scalar_lea.vmem %s1463_s4, %s834_s18 }
   0xe   : > { %v198_v8 = vld [vmem:[%s953_s30] sm:$0xff]  ;;  %v199_v9 = vld [vmem:[%s953_s30 + $0x8] sm:$0xff]  ;;  %v200_v17 = vld [vmem:[%s953_s30 + $0x10] sm:$0xff] }
   0xf   : > { %v202_v10 = vld [vmem:[%s953_s30 + $0x20] sm:$0xff]  ;;  %v239_v12 = vld [vmem:[%s1460_s1 + $0x48] sm:$0xff]  ;;  %v973_v13 = vadd.f32 %v230_v0, %v198_v8  ;;  %v975_v14 = vadd.f32 %v231_v1, %v199_v9  ;;  %v201_v18 = vld [vmem:[%s953_s30 + $0x18] sm:$0xff]  ;;  %v990_v22 = vadd.f32 %v232_v4, %v200_v17 }
  0x10   : > { %v203_v15 = vld [vmem:[%s953_s30 + $0x28] sm:$0xff]  ;;  %v978_v16 = vadd.f32 %v234_v2, %v202_v10  ;;  %v240_v19 = vld [vmem:[%s1460_s1 + $0x50] sm:$0xff]  ;;  %v241_v20 = vld [vmem:[%s1460_s1 + $0x58] sm:$0xff]  ;;  %v992_v23 = vadd.f32 %v233_v5, %v201_v18 }
  0x11   : > { %v988_v21 = vadd.f32 %v235_v3, %v203_v15  ;;  %v204_v24 = vld [vmem:[%s953_s30 + $0x30] sm:$0xff]  ;;  %v205_v25 = vld [vmem:[%s953_s30 + $0x38] sm:$0xff]  ;;  %v206_v26 = vld [vmem:[%s953_s30 + $0x40] sm:$0xff]  ;;  %v296_v27 = vadd.f32 %v975_v14, %v973_v13 }
  0x12   : > { %v999_v28 = vadd.f32 %v236_v6, %v204_v24  ;;  %v1001_v29 = vadd.f32 %v237_v7, %v205_v25  ;;  %v207_v30 = vld [vmem:[%s953_s30 + $0x48] sm:$0xff]  ;;  %v208_v31 = vld [vmem:[%s953_s30 + $0x50] sm:$0xff]  ;;  %v209_v32 = vld [vmem:[%s953_s30 + $0x58] sm:$0xff]  ;;  %v299_v34 = vadd.f32 %v992_v23, %v990_v22  ;;  %v1010_v35 = vadd.f32 %v238_v11, %v206_v26 }
  0x13   : > { %v302_v33 = vadd.f32 %v988_v21, %v978_v16  ;;  %297 = vadd.xlane.f32.xlu0 %v296_v27  ;;  %v1012_v36 = vadd.f32 %v239_v12, %v207_v30  ;;  %v242_v37 = vld [vmem:[%s1460_s1 + $0x60] sm:$0xff]  ;;  %v243_v38 = vld [vmem:[%s1460_s1 + $0x68] sm:$0xff]  ;;  %v1022_v40 = vadd.f32 %v240_v19, %v208_v31  ;;  %v1024_v41 = vadd.f32 %v241_v20, %v209_v32  ;;  %v244_v44 = vld [vmem:[%s1460_s1 + $0x70] sm:$0xff] }
  0x14   : > { %v305_v39 = vadd.f32 %v1001_v29, %v999_v28  ;;  %v210_v42 = vld [vmem:[%s953_s30 + $0x60] sm:$0xff]  ;;  %v211_v43 = vld [vmem:[%s953_s30 + $0x68] sm:$0xff]  ;;  %v212_v45 = vld [vmem:[%s953_s30 + $0x70] sm:$0xff] }
  0x15   : > { %303 = vadd.xlane.f32.xlu1 %v302_v33  ;;  %v213_v46 = vld [vmem:[%s953_s30 + $0x78] sm:$0xff]  ;;  %v308_v48 = vadd.f32 %v1012_v36, %v1010_v35  ;;  %v1038_v49 = vadd.f32 %v242_v37, %v210_v42  ;;  %v1040_v50 = vadd.f32 %v243_v38, %v211_v43  ;;  %v246_v51 = vld [vmem:[%s1460_s1 + $0x80] sm:$0xff]  ;;  %v247_v52 = vld [vmem:[%s1460_s1 + $0x88] sm:$0xff]  ;;  %v311_v53 = vadd.f32 %v1024_v41, %v1022_v40 }
  0x16   : > { %v245_v47 = vld [vmem:[%s1460_s1 + $0x78] sm:$0xff]  ;;  %v1050_v54 = vadd.f32 %v244_v44, %v212_v45  ;;  %v214_v56 = vld [vmem:[%s953_s30 + $0x80] sm:$0xff]  ;;  %v215_v57 = vld [vmem:[%s953_s30 + $0x88] sm:$0xff] }
  0x17   : > { %300 = vadd.xlane.f32.xlu0 %v299_v34  ;;  %v1052_v55 = vadd.f32 %v245_v47, %v213_v46  ;;  %v216_v58 = vld [vmem:[%s953_s30 + $0x90] sm:$0xff]  ;;  %v217_v59 = vld [vmem:[%s953_s30 + $0x98] sm:$0xff]  ;;  %v314_v62 = vadd.f32 %v1040_v50, %v1038_v49  ;;  %v1066_v63 = vadd.f32 %v246_v51, %v214_v56  ;;  %v1068_v0 = vadd.f32 %v247_v52, %v215_v57  ;;  %v218_v1 = vld [vmem:[%s953_s30 + $0xa0] sm:$0xff] }
  0x18   : > { %v248_v60 = vld [vmem:[%s1460_s1 + $0x90] sm:$0xff]  ;;  %v249_v61 = vld [vmem:[%s1460_s1 + $0x98] sm:$0xff]  ;;  %v219_v2 = vld [vmem:[%s953_s30 + $0xa8] sm:$0xff] }
  0x19   : > { %306 = vadd.xlane.f32.xlu1 %v305_v39  ;;  %v317_v3 = vadd.f32 %v1052_v55, %v1050_v54  ;;  %v1074_v4 = vadd.f32 %v248_v60, %v216_v58  ;;  %v1076_v5 = vadd.f32 %v249_v61, %v217_v59  ;;  %v250_v6 = vld [vmem:[%s1460_s1 + $0xa0] sm:$0xff]  ;;  %v251_v7 = vld [vmem:[%s1460_s1 + $0xa8] sm:$0xff]  ;;  %v220_v8 = vld [vmem:[%s953_s30 + $0xb0] sm:$0xff]  ;;  %v320_v12 = vadd.f32 %v1068_v0, %v1066_v63 }
  0x1a   : > { %v221_v9 = vld [vmem:[%s953_s30 + $0xb8] sm:$0xff]  ;;  %v252_v10 = vld [vmem:[%s1460_s1 + $0xb0] sm:$0xff]  ;;  %v1094_v15 = vadd.f32 %v250_v6, %v218_v1  ;;  %v1096_v17 = vadd.f32 %v251_v7, %v219_v2  ;;  %v222_v18 = vld [vmem:[%s953_s30 + $0xc0] sm:$0xff] }
  0x1b   : > { %309 = vadd.xlane.f32.xlu0 %v308_v48  ;;  %v253_v11 = vld [vmem:[%s1460_s1 + $0xb8] sm:$0xff]  ;;  %v223_v19 = vld [vmem:[%s953_s30 + $0xc8] sm:$0xff]  ;;  %v323_v20 = vadd.f32 %v1076_v5, %v1074_v4  ;;  %v1102_v24 = vadd.f32 %v252_v10, %v220_v8  ;;  %v254_v26 = vld [vmem:[%s1460_s1 + $0xc0] sm:$0xff] }
  0x1c   : > { %v1104_v25 = vadd.f32 %v253_v11, %v221_v9  ;;  %v255_v27 = vld [vmem:[%s1460_s1 + $0xc8] sm:$0xff]  ;;  %v224_v30 = vld [vmem:[%s953_s30 + $0xd0] sm:$0xff]  ;;  %v225_v31 = vld [vmem:[%s953_s30 + $0xd8] sm:$0xff]  ;;  %v326_v34 = vadd.f32 %v1096_v17, %v1094_v15  ;;  %v1122_v37 = vadd.f32 %v254_v26, %v222_v18 }
  0x1d   : > { %312 = vadd.xlane.f32.xlu1 %v311_v53  ;;  %v256_v32 = vld [vmem:[%s1460_s1 + $0xd0] sm:$0xff]  ;;  %v257_v33 = vld [vmem:[%s1460_s1 + $0xd8] sm:$0xff]  ;;  %v1124_v38 = vadd.f32 %v255_v27, %v223_v19  ;;  %v226_v39 = vld [vmem:[%s953_s30 + $0xe0] sm:$0xff] }
  0x1e   : > { %v227_v42 = vld [vmem:[%s953_s30 + $0xe8] sm:$0xff]  ;;  %v329_v43 = vadd.f32 %v1104_v25, %v1102_v24  ;;  %v1130_v44 = vadd.f32 %v256_v32, %v224_v30  ;;  %v1132_v45 = vadd.f32 %v257_v33, %v225_v31  ;;  %v258_v46 = vld [vmem:[%s1460_s1 + $0xe0] sm:$0xff]  ;;  %v228_v48 = vld [vmem:[%s953_s30 + $0xf0] sm:$0xff] }
  0x1f   : > { %315 = vadd.xlane.f32.xlu0 %v314_v62  ;;  %v259_v47 = vld [vmem:[%s1460_s1 + $0xe8] sm:$0xff]  ;;  %v229_v51 = vld [vmem:[%s953_s30 + $0xf8] sm:$0xff]  ;;  %v260_v52 = vld [vmem:[%s1460_s1 + $0xf0] sm:$0xff]  ;;  %v332_v56 = vadd.f32 %v1124_v38, %v1122_v37  ;;  %v1150_v57 = vadd.f32 %v258_v46, %v226_v39 }
  0x20   : > { %v261_v53 = vld [vmem:[%s1460_s1 + $0xf8] sm:$0xff]  ;;  %v1152_v58 = vadd.f32 %v259_v47, %v227_v42  ;;  %v335_v59 = vadd.f32 %v1132_v45, %v1130_v44  ;;  %v1156_v60 = vadd.f32 %v260_v52, %v228_v48 }
  0x21   : > { %318 = vadd.xlane.f32.xlu1 %v317_v3  ;;  %v1158_v61 = vadd.f32 %v261_v53, %v229_v51 }
  0x22   : > { %v338_v62 = vadd.f32 %v1152_v58, %v1150_v57 }
  0x23   : > { %321 = vadd.xlane.f32.xlu0 %v320_v12  ;;  %v341_v1 = vadd.f32 %v1158_v61, %v1156_v60 }
  0x25   : > { %324 = vadd.xlane.f32.xlu1 %v323_v20 }
  0x27   : > { %327 = vadd.xlane.f32.xlu0 %v326_v34 }
  0x29   : > { %330 = vadd.xlane.f32.xlu1 %v329_v43 }
  0x2b   : > { %333 = vadd.xlane.f32.xlu0 %v332_v56 }
  0x2d   : > { %336 = vadd.xlane.f32.xlu1 %v335_v59 }
  0x2f   : > { %339 = vadd.xlane.f32.xlu0 %v338_v62 }
  0x31   : > { %342 = vadd.xlane.f32.xlu1 %v341_v1 }
  0x9c   : > { %v298_v2 = vpop.xlane.xlu0 %297 }
  0x9d   : > { %v345_v3 = vmul.f32 0.00390625, %v298_v2 }
  0x9e   : > { %v304_v6 = vpop.xlane.xlu1 %303 }
  0x9f   : > { %v347_v7 = vmul.f32 0.00390625, %v304_v6  ;;  %v1165_v8 = vsub.f32 %v973_v13, %v345_v3  ;;  %v1168_v9 = vsub.f32 %v975_v14, %v345_v3 }
  0xa0   : > { %v301_v12 = vpop.xlane.xlu0 %300 }
  0xa1   : > { %v1171_v10 = vsub.f32 %v978_v16, %v347_v7  ;;  %v1174_v11 = vsub.f32 %v988_v21, %v347_v7  ;;  %v346_v18 = vmul.f32 0.00390625, %v301_v12  ;;  %v393_v20 = vmul.f32 %v1165_v8, %v1165_v8 }
  0xa2   : > { %v307_v19 = vpop.xlane.xlu1 %306  ;;  %v394_v26 = vmul.f32 %v1168_v9, %v1168_v9 }
  0xa3   : > { %v348_v13 = vmul.f32 0.00390625, %v307_v19  ;;  %v397_v14 = vmul.f32 %v1171_v10, %v1171_v10  ;;  %v398_v16 = vmul.f32 %v1174_v11, %v1174_v11  ;;  %v1185_v27 = vsub.f32 %v990_v22, %v346_v18 }
  0xa4   : > { %v1188_v21 = vsub.f32 %v992_v23, %v346_v18  ;;  %v425_v30 = vadd.f32 %v394_v26, %v393_v20  ;;  %v310_v33 = vpop.xlane.xlu0 %309 }
  0xa5   : > { %v1191_v31 = vsub.f32 %v999_v28, %v348_v13  ;;  %v1194_v32 = vsub.f32 %v1001_v29, %v348_v13  ;;  %v349_v34 = vmul.f32 0.00390625, %v310_v33  ;;  %v431_v42 = vadd.f32 %v398_v16, %v397_v14 }
  0xa6   : > { %426 = vadd.xlane.f32.xlu0 %v425_v30  ;;  %v313_v39 = vpop.xlane.xlu1 %312  ;;  %v395_v43 = vmul.f32 %v1185_v27, %v1185_v27  ;;  %v396_v22 = vmul.f32 %v1188_v21, %v1188_v21 }
  0xa7   : > { %v350_v23 = vmul.f32 0.00390625, %v313_v39  ;;  %v399_v46 = vmul.f32 %v1191_v31, %v1191_v31  ;;  %v400_v28 = vmul.f32 %v1194_v32, %v1194_v32  ;;  %v1205_v29 = vsub.f32 %v1010_v35, %v349_v34 }
  0xa8   : > { %v1208_v47 = vsub.f32 %v1012_v36, %v349_v34  ;;  %v428_v48 = vadd.f32 %v396_v22, %v395_v43  ;;  %v316_v53 = vpop.xlane.xlu0 %315 }
  0xa9   : > { %v1211_v51 = vsub.f32 %v1022_v40, %v350_v23  ;;  %v1214_v52 = vsub.f32 %v1024_v41, %v350_v23  ;;  %v351_v56 = vmul.f32 0.00390625, %v316_v53  ;;  %v434_v62 = vadd.f32 %v400_v28, %v399_v46 }
  0xaa   : > { %432 = vadd.xlane.f32.xlu0 %v431_v42  ;;  %429 = vadd.xlane.f32.xlu1 %v428_v48  ;;  %v319_v59 = vpop.xlane.xlu1 %318  ;;  %v401_v35 = vmul.f32 %v1205_v29, %v1205_v29  ;;  %v402_v36 = vmul.f32 %v1208_v47, %v1208_v47 }
  0xab   : > { %v352_v1 = vmul.f32 0.00390625, %v319_v59  ;;  %v403_v40 = vmul.f32 %v1211_v51, %v1211_v51  ;;  %v404_v41 = vmul.f32 %v1214_v52, %v1214_v52  ;;  %v1225_v2 = vsub.f32 %v1038_v49, %v351_v56 }
  0xac   : > { %v1228_v3 = vsub.f32 %v1040_v50, %v351_v56  ;;  %v437_v6 = vadd.f32 %v402_v36, %v401_v35  ;;  %v322_v18 = vpop.xlane.xlu0 %321 }
  0xad   : > { %v1231_v7 = vsub.f32 %v1050_v54, %v352_v1  ;;  %v1234_v12 = vsub.f32 %v1052_v55, %v352_v1  ;;  %v353_v19 = vmul.f32 0.00390625, %v322_v18  ;;  %v440_v26 = vadd.f32 %v404_v41, %v403_v40 }
  0xae   : > { %435 = vadd.xlane.f32.xlu1 %v434_v62  ;;  %438 = vadd.xlane.f32.xlu0 %v437_v6  ;;  %v325_v20 = vpop.xlane.xlu1 %324  ;;  %v405_v49 = vmul.f32 %v1225_v2, %v1225_v2  ;;  %v406_v50 = vmul.f32 %v1228_v3, %v1228_v3 }
  0xaf   : > { %v354_v13 = vmul.f32 0.00390625, %v325_v20  ;;  %v407_v54 = vmul.f32 %v1231_v7, %v1231_v7  ;;  %v408_v55 = vmul.f32 %v1234_v12, %v1234_v12  ;;  %v1245_v14 = vsub.f32 %v1066_v63, %v353_v19 }
  0xb0   : > { %v1248_v16 = vsub.f32 %v1068_v0, %v353_v19  ;;  %v443_v30 = vadd.f32 %v406_v50, %v405_v49  ;;  %v328_v39 = vpop.xlane.xlu0 %327 }
  0xb1   : > { %v1251_v33 = vsub.f32 %v1074_v4, %v354_v13  ;;  %v1254_v34 = vsub.f32 %v1076_v5, %v354_v13  ;;  %v355_v42 = vmul.f32 0.00390625, %v328_v39  ;;  %v446_v22 = vadd.f32 %v408_v55, %v407_v54 }
  0xb2   : > { %441 = vadd.xlane.f32.xlu1 %v440_v26  ;;  %444 = vadd.xlane.f32.xlu0 %v443_v30  ;;  %v331_v43 = vpop.xlane.xlu1 %330  ;;  %v409_v63 = vmul.f32 %v1245_v14, %v1245_v14  ;;  %v410_v0 = vmul.f32 %v1248_v16, %v1248_v16 }
  0xb3   : > { %v356_v23 = vmul.f32 0.00390625, %v331_v43  ;;  %v411_v4 = vmul.f32 %v1251_v33, %v1251_v33  ;;  %v412_v5 = vmul.f32 %v1254_v34, %v1254_v34  ;;  %v1265_v46 = vsub.f32 %v1094_v15, %v355_v42 }
  0xb4   : > { %v1268_v28 = vsub.f32 %v1096_v17, %v355_v42  ;;  %v449_v48 = vadd.f32 %v410_v0, %v409_v63  ;;  %v334_v59 = vpop.xlane.xlu0 %333 }
  0xb5   : > { %v1271_v53 = vsub.f32 %v1102_v24, %v356_v23  ;;  %v1274_v56 = vsub.f32 %v1104_v25, %v356_v23  ;;  %v357_v62 = vmul.f32 0.00390625, %v334_v59  ;;  %v452_v36 = vadd.f32 %v412_v5, %v411_v4 }
  0xb6   : > { %447 = vadd.xlane.f32.xlu1 %v446_v22  ;;  %450 = vadd.xlane.f32.xlu0 %v449_v48  ;;  %v337_v35 = vpop.xlane.xlu1 %336  ;;  %v413_v15 = vmul.f32 %v1265_v46, %v1265_v46  ;;  %v414_v17 = vmul.f32 %v1268_v28, %v1268_v28  ;;  %v554_v5 = vlaneseq }
  0xb7   : > { %v358_v1 = vmul.f32 0.00390625, %v337_v35  ;;  %v415_v24 = vmul.f32 %v1271_v53, %v1271_v53  ;;  %v416_v25 = vmul.f32 %v1274_v56, %v1274_v56  ;;  %v1285_v40 = vsub.f32 %v1122_v37, %v357_v62 }
  0xb8   : > { %v1288_v41 = vsub.f32 %v1124_v38, %v357_v62  ;;  %v455_v6 = vadd.f32 %v414_v17, %v413_v15  ;;  %v340_v20 = vpop.xlane.xlu0 %339  ;;  %v555_v17 = vshrl.u32 %v554_v5, 7 }
  0xb9   : > { %v1291_v18 = vsub.f32 %v1130_v44, %v358_v1  ;;  %v1294_v19 = vsub.f32 %v1132_v45, %v358_v1  ;;  %v359_v26 = vmul.f32 0.00390625, %v340_v20  ;;  %v458_v50 = vadd.f32 %v416_v25, %v415_v24 }
  0xba   : > { %453 = vadd.xlane.f32.xlu1 %v452_v36  ;;  %456 = vadd.xlane.f32.xlu0 %v455_v6  ;;  %v343_v49 = vpop.xlane.xlu1 %342  ;;  %v417_v37 = vmul.f32 %v1285_v40, %v1285_v40  ;;  %v418_v38 = vmul.f32 %v1288_v41, %v1288_v41 }
  0xbb   : > { %v360_v13 = vmul.f32 0.00390625, %v343_v49  ;;  %v419_v44 = vmul.f32 %v1291_v18, %v1291_v18  ;;  %v420_v45 = vmul.f32 %v1294_v19, %v1294_v19  ;;  %v1305_v54 = vsub.f32 %v1150_v57, %v359_v26 }
  0xbc   : > { %v1308_v55 = vsub.f32 %v1152_v58, %v359_v26  ;;  %v461_v30 = vadd.f32 %v418_v38, %v417_v37  ;;  %v556_v49 = vsub.s32 0, %v555_v17  ;;  %v294_v38 = vld [vmem:[%s1461_s2] sm:$0x3] }
  0xbd   : > { %v1311_v39 = vsub.f32 %v1156_v60, %v360_v13  ;;  %v1314_v42 = vsub.f32 %v1158_v61, %v360_v13  ;;  %v464_v43 = vadd.f32 %v420_v45, %v419_v44  ;;  %v421_v22 = vmul.f32 %v1305_v54, %v1305_v54 }
  0xbe   : > { %459 = vadd.xlane.f32.xlu1 %v458_v50  ;;  %462 = vadd.xlane.f32.xlu0 %v461_v30  ;;  %v422_v57 = vmul.f32 %v1308_v55, %v1308_v55  ;;  %v560_v13 = vsub.s32 1, %v555_v17  ;;  %v295_v30 = vld [vmem:[%s1462_s3] sm:$0x3] }
  0xbf   : > { %v423_v58 = vmul.f32 %v1311_v39, %v1311_v39  ;;  %v424_v63 = vmul.f32 %v1314_v42, %v1314_v42 }
  0xc0   : > { %v467_v60 = vadd.f32 %v422_v57, %v421_v22  ;;  %v1330_v57 = vrot.slane %v294_v38, %v556_v49  ;;  %v1336_v5 = vrot.slane %v295_v30, %v560_v13 }
  0xc1   : > { %v470_v61 = vadd.f32 %v424_v63, %v423_v58 }
  0xc2   : > { %465 = vadd.xlane.f32.xlu1 %v464_v43  ;;  %468 = vadd.xlane.f32.xlu0 %v467_v60  ;;  %v1332_v60 = vrot.slane %v294_v38, %v560_v13 }
  0xc6   : > { %471 = vadd.xlane.f32.xlu1 %v470_v61 }
 0x12f   : > { %v427_v0 = vpop.xlane.xlu0 %426 }
 0x130   : > { %v473_v23 = vmul.f32 0.00390625, %v427_v0 }
 0x132   : > { %v489_v4 = vadd.f32 1e-12, %v473_v23 }
 0x133   : > { %v430_v48 = vpop.xlane.xlu1 %429  ;;  %v433_v59 = vpop.xlane.xlu0 %432 }
 0x134   : > { %859 = vrsqrt.f32 %v489_v4  ;;  %v474_v62 = vmul.f32 0.00390625, %v430_v48  ;;  %v475_v35 = vmul.f32 0.00390625, %v433_v59  ;;  %v1334_v4 = vrot.slane %v295_v30, %v556_v49 }
 0x136   : > { %v490_v36 = vadd.f32 1e-12, %v474_v62  ;;  %v491_v15 = vadd.f32 1e-12, %v475_v35 }
 0x137   : > { %v436_v1 = vpop.xlane.xlu1 %435  ;;  %v439_v24 = vpop.xlane.xlu0 %438 }
 0x138   : > { %861 = vrsqrt.f32 %v490_v36  ;;  %v476_v25 = vmul.f32 0.00390625, %v436_v1  ;;  %v477_v6 = vmul.f32 0.00390625, %v439_v24 }
 0x139   : > { %863 = vrsqrt.f32 %v491_v15 }
 0x13a   : > { %v492_v20 = vadd.f32 1e-12, %v476_v25  ;;  %v493_v26 = vadd.f32 1e-12, %v477_v6 }
 0x13b   : > { %v442_v50 = vpop.xlane.xlu1 %441  ;;  %v445_v37 = vpop.xlane.xlu0 %444 }
 0x13c   : > { %865 = vrsqrt.f32 %v492_v20  ;;  %v478_v44 = vmul.f32 0.00390625, %v442_v50  ;;  %v479_v45 = vmul.f32 0.00390625, %v445_v37 }
 0x13d   : > { %867 = vrsqrt.f32 %v493_v26 }
 0x13e   : > { %v494_v43 = vadd.f32 1e-12, %v478_v44  ;;  %v495_v22 = vadd.f32 1e-12, %v479_v45 }
 0x13f   : > { %v448_v58 = vpop.xlane.xlu1 %447  ;;  %v451_v63 = vpop.xlane.xlu0 %450 }
 0x140   : > { %869 = vrsqrt.f32 %v494_v43  ;;  %v480_v61 = vmul.f32 0.00390625, %v448_v58  ;;  %v481_v0 = vmul.f32 0.00390625, %v451_v63 }
 0x141   : > { %v860_v23 = vpop.eup %859  ;;  %871 = vrsqrt.f32 %v495_v22 }
 0x142   : > { %v521_v48 = vmul.f32 %v860_v23, %v1165_v8  ;;  %v522_v59 = vmul.f32 %v860_v23, %v1168_v9  ;;  %v496_v62 = vadd.f32 1e-12, %v480_v61  ;;  %v497_v35 = vadd.f32 1e-12, %v481_v0 }
 0x143   : > { %v454_v36 = vpop.xlane.xlu1 %453  ;;  %v457_v15 = vpop.xlane.xlu0 %456 }
 0x144   : > { %v564_v17 = vmul.f32 %v1330_v57, %v521_v48  ;;  %v565_v1 = vmul.f32 %v1332_v60, %v522_v59  ;;  %873 = vrsqrt.f32 %v496_v62  ;;  %v482_v24 = vmul.f32 0.00390625, %v454_v36 }
 0x145   : > { %v862_v25 = vpop.eup %861  ;;  %875 = vrsqrt.f32 %v497_v35  ;;  %v483_v6 = vmul.f32 0.00390625, %v457_v15 }
 0x146   : > { %v864_v20 = vpop.eup %863  ;;  %v607_v26 = vadd.f32 %v1334_v4, %v564_v17  ;;  %v608_v8 = vadd.f32 %v1336_v5, %v565_v1  ;;  %v523_v9 = vmul.f32 %v862_v25, %v1185_v27  ;;  %v524_v49 = vmul.f32 %v862_v25, %v1188_v21 }
 0x147   : > { %v525_v50 = vmul.f32 %v864_v20, %v1171_v10  ;;  %v526_v37 = vmul.f32 %v864_v20, %v1174_v11  ;;  %v498_v38 = vadd.f32 1e-12, %v482_v24  ;;  %v499_v13 = vadd.f32 1e-12, %v483_v6  ;;  %v460_v44 = vpop.xlane.xlu1 %459  ;;  %v463_v45 = vpop.xlane.xlu0 %462 }
 0x148   : > { %v835_v30 = vpack.c.bf16 %v608_v8, %v607_v26  ;;  %v566_v43 = vmul.f32 %v1330_v57, %v523_v9  ;;  %v567_v27 = vmul.f32 %v1332_v60, %v524_v49  ;;  %v484_v21 = vmul.f32 0.00390625, %v460_v44 }
 0x149   : > { %v866_v22 = vpop.eup %865  ;;  %v568_v58 = vmul.f32 %v1330_v57, %v525_v50  ;;  %v569_v63 = vmul.f32 %v1332_v60, %v526_v37  ;;  %877 = vrsqrt.f32 %v498_v38  ;;  %v485_v10 = vmul.f32 0.00390625, %v463_v45 }
 0x14a   : > { %v868_v61 = vpop.eup %867  ;;  %735 = vst [vmem:[%s1350_s20] sm:$0xff] %v835_v30  ;;  %v609_v11 = vadd.f32 %v1334_v4, %v566_v43  ;;  %v610_v0 = vadd.f32 %v1336_v5, %v567_v27  ;;  %v527_v23 = vmul.f32 %v866_v22, %v1191_v31  ;;  %v528_v48 = vmul.f32 %v866_v22, %v1194_v32 }
 0x14b   : > { %v611_v59 = vadd.f32 %v1334_v4, %v568_v58  ;;  %v612_v62 = vadd.f32 %v1336_v5, %v569_v63  ;;  %v529_v35 = vmul.f32 %v868_v61, %v1205_v29  ;;  %v530_v36 = vmul.f32 %v868_v61, %v1208_v47  ;;  %v466_v20 = vpop.xlane.xlu1 %465 }
 0x14c   : > { %v836_v15 = vpack.c.bf16 %v610_v0, %v609_v11  ;;  %v570_v17 = vmul.f32 %v1330_v57, %v527_v23  ;;  %v571_v1 = vmul.f32 %v1332_v60, %v528_v48  ;;  %879 = vrsqrt.f32 %v499_v13  ;;  %v469_v0 = vpop.xlane.xlu0 %468 }
 0x14d   : > { %v870_v24 = vpop.eup %869  ;;  %v837_v31 = vpack.c.bf16 %v612_v62, %v611_v59  ;;  %v572_v32 = vmul.f32 %v1330_v57, %v529_v35  ;;  %v573_v25 = vmul.f32 %v1332_v60, %v530_v36  ;;  %v500_v6 = vadd.f32 1e-12, %v484_v21 }
 0x14e   : > { %v872_v26 = vpop.eup %871  ;;  %736 = vst [vmem:[%s1350_s20 + $0x8] sm:$0xff] %v836_v15  ;;  %v613_v29 = vadd.f32 %v1334_v4, %v570_v17  ;;  %v614_v47 = vadd.f32 %v1336_v5, %v571_v1  ;;  %v531_v8 = vmul.f32 %v870_v24, %v1211_v51  ;;  %v532_v9 = vmul.f32 %v870_v24, %v1214_v52 }
 0x14f   : > { %737 = vst [vmem:[%s1350_s20 + $0x10] sm:$0xff] %v837_v31  ;;  %v615_v49 = vadd.f32 %v1334_v4, %v572_v32  ;;  %v616_v50 = vadd.f32 %v1336_v5, %v573_v25  ;;  %v533_v37 = vmul.f32 %v872_v26, %v1225_v2  ;;  %v534_v38 = vmul.f32 %v872_v26, %v1228_v3  ;;  %v472_v23 = vpop.xlane.xlu1 %471 }
 0x150   : > { %v838_v13 = vpack.c.bf16 %v614_v47, %v613_v29  ;;  %v574_v44 = vmul.f32 %v1330_v57, %v531_v8  ;;  %v575_v45 = vmul.f32 %v1332_v60, %v532_v9  ;;  %881 = vrsqrt.f32 %v500_v6 }
 0x151   : > { %v874_v51 = vpop.eup %873  ;;  %v839_v30 = vpack.c.bf16 %v616_v50, %v615_v49  ;;  %v576_v52 = vmul.f32 %v1330_v57, %v533_v37  ;;  %v577_v43 = vmul.f32 %v1332_v60, %v534_v38  ;;  %v501_v27 = vadd.f32 1e-12, %v485_v10 }
 0x152   : > { %v876_v21 = vpop.eup %875  ;;  %738 = vst [vmem:[%s1350_s20 + $0x18] sm:$0xff] %v838_v13  ;;  %v617_v2 = vadd.f32 %v1334_v4, %v574_v44  ;;  %v618_v3 = vadd.f32 %v1336_v5, %v575_v45  ;;  %v535_v22 = vmul.f32 %v874_v51, %v1231_v7  ;;  %v536_v58 = vmul.f32 %v874_v51, %v1234_v12 }
 0x153   : > { %739 = vst [vmem:[%s1350_s20 + $0x20] sm:$0xff] %v839_v30  ;;  %v619_v63 = vadd.f32 %v1334_v4, %v576_v52  ;;  %v620_v61 = vadd.f32 %v1336_v5, %v577_v43  ;;  %v537_v11 = vmul.f32 %v876_v21, %v1245_v14  ;;  %v538_v10 = vmul.f32 %v876_v21, %v1248_v16 }
 0x154   : > { %v840_v48 = vpack.c.bf16 %v618_v3, %v617_v2  ;;  %v578_v59 = vmul.f32 %v1330_v57, %v535_v22  ;;  %v579_v7 = vmul.f32 %v1332_v60, %v536_v58  ;;  %883 = vrsqrt.f32 %v501_v27 }
 0x155   : > { %v841_v12 = vpack.c.bf16 %v620_v61, %v619_v63  ;;  %v580_v62 = vmul.f32 %v1330_v57, %v537_v11  ;;  %v581_v35 = vmul.f32 %v1332_v60, %v538_v10  ;;  %v486_v36 = vmul.f32 0.00390625, %v466_v20 }
 0x156   : > { %v878_v15 = vpop.eup %877  ;;  %740 = vst [vmem:[%s1350_s20 + $0x28] sm:$0xff] %v840_v48  ;;  %v621_v14 = vadd.f32 %v1334_v4, %v578_v59  ;;  %v622_v16 = vadd.f32 %v1336_v5, %v579_v7  ;;  %v487_v17 = vmul.f32 0.00390625, %v469_v0  ;;  %v488_v1 = vmul.f32 0.00390625, %v472_v23 }
 0x157   : > { %741 = vst [vmem:[%s1350_s20 + $0x30] sm:$0xff] %v841_v12  ;;  %v623_v24 = vadd.f32 %v1334_v4, %v580_v62  ;;  %v624_v31 = vadd.f32 %v1336_v5, %v581_v35  ;;  %v539_v32 = vmul.f32 %v878_v15, %v1251_v33  ;;  %v540_v25 = vmul.f32 %v878_v15, %v1254_v34 }
 0x158   : > { %v842_v6 = vpack.c.bf16 %v622_v16, %v621_v14  ;;  %v502_v20 = vadd.f32 1e-12, %v486_v36  ;;  %v503_v26 = vadd.f32 1e-12, %v487_v17  ;;  %v504_v29 = vadd.f32 1e-12, %v488_v1 }
 0x159   : > { %v880_v47 = vpop.eup %879  ;;  %v843_v8 = vpack.c.bf16 %v624_v31, %v623_v24  ;;  %v582_v9 = vmul.f32 %v1330_v57, %v539_v32  ;;  %v583_v49 = vmul.f32 %v1332_v60, %v540_v25 }
 0x15a   : > { %742 = vst [vmem:[%s1350_s20 + $0x38] sm:$0xff] %v842_v6  ;;  %v541_v50 = vmul.f32 %v880_v47, %v1265_v46  ;;  %v542_v37 = vmul.f32 %v880_v47, %v1268_v28  ;;  %885 = vrsqrt.f32 %v502_v20 }
 0x15b   : > { %743 = vst [vmem:[%s1350_s20 + $0x40] sm:$0xff] %v843_v8  ;;  %v625_v33 = vadd.f32 %v1334_v4, %v582_v9  ;;  %v626_v34 = vadd.f32 %v1336_v5, %v583_v49  ;;  %887 = vrsqrt.f32 %v503_v26 }
 0x15c   : > { %v584_v38 = vmul.f32 %v1330_v57, %v541_v50  ;;  %v585_v13 = vmul.f32 %v1332_v60, %v542_v37  ;;  %889 = vrsqrt.f32 %v504_v29 }
 0x15d   : > { %v882_v44 = vpop.eup %881  ;;  %v844_v45 = vpack.c.bf16 %v626_v34, %v625_v33 }
 0x15e   : > { %v627_v46 = vadd.f32 %v1334_v4, %v584_v38  ;;  %v628_v51 = vadd.f32 %v1336_v5, %v585_v13  ;;  %v543_v28 = vmul.f32 %v882_v44, %v1271_v53  ;;  %v544_v30 = vmul.f32 %v882_v44, %v1274_v56 }
 0x15f   : > { %744 = vst [vmem:[%s1350_s20 + $0x48] sm:$0xff] %v844_v45 }
 0x160   : > { %v845_v52 = vpack.c.bf16 %v628_v51, %v627_v46  ;;  %v586_v43 = vmul.f32 %v1330_v57, %v543_v28  ;;  %v587_v27 = vmul.f32 %v1332_v60, %v544_v30 }
 0x161   : > { %v884_v21 = vpop.eup %883 }
 0x162   : > { %745 = vst [vmem:[%s1350_s20 + $0x50] sm:$0xff] %v845_v52  ;;  %v629_v2 = vadd.f32 %v1334_v4, %v586_v43  ;;  %v630_v3 = vadd.f32 %v1336_v5, %v587_v27  ;;  %v545_v22 = vmul.f32 %v884_v21, %v1285_v40  ;;  %v546_v58 = vmul.f32 %v884_v21, %v1288_v41 }
 0x164   : > { %v846_v53 = vpack.c.bf16 %v630_v3, %v629_v2  ;;  %v588_v56 = vmul.f32 %v1330_v57, %v545_v22  ;;  %v589_v63 = vmul.f32 %v1332_v60, %v546_v58 }
 0x166   : > { %746 = vst [vmem:[%s1350_s20 + $0x58] sm:$0xff] %v846_v53  ;;  %v631_v61 = vadd.f32 %v1334_v4, %v588_v56  ;;  %v632_v11 = vadd.f32 %v1336_v5, %v589_v63 }
 0x167   : > { %v886_v10 = vpop.eup %885 }
 0x168   : > { %v888_v0 = vpop.eup %887  ;;  %v847_v23 = vpack.c.bf16 %v632_v11, %v631_v61  ;;  %v547_v48 = vmul.f32 %v886_v10, %v1291_v18  ;;  %v548_v40 = vmul.f32 %v886_v10, %v1294_v19 }
 0x169   : > { %v890_v59 = vpop.eup %889  ;;  %v549_v41 = vmul.f32 %v888_v0, %v1305_v54  ;;  %v550_v7 = vmul.f32 %v888_v0, %v1308_v55 }
 0x16a   : > { %747 = vst [vmem:[%s1350_s20 + $0x60] sm:$0xff] %v847_v23  ;;  %v590_v12 = vmul.f32 %v1330_v57, %v547_v48  ;;  %v591_v62 = vmul.f32 %v1332_v60, %v548_v40  ;;  %v551_v35 = vmul.f32 %v890_v59, %v1311_v39  ;;  %v552_v36 = vmul.f32 %v890_v59, %v1314_v42 }
 0x16b   : > { %v592_v18 = vmul.f32 %v1330_v57, %v549_v41  ;;  %v593_v19 = vmul.f32 %v1332_v60, %v550_v7 }
 0x16c   : > { %v633_v54 = vadd.f32 %v1334_v4, %v590_v12  ;;  %v634_v55 = vadd.f32 %v1336_v5, %v591_v62  ;;  %v594_v15 = vmul.f32 %v1330_v57, %v551_v35  ;;  %v595_v14 = vmul.f32 %v1332_v60, %v552_v36 }
 0x16d   : > { %v635_v16 = vadd.f32 %v1334_v4, %v592_v18  ;;  %v636_v39 = vadd.f32 %v1336_v5, %v593_v19 }
 0x16e   : > { %v848_v17 = vpack.c.bf16 %v634_v55, %v633_v54  ;;  %v637_v42 = vadd.f32 %v1334_v4, %v594_v15  ;;  %v638_v1 = vadd.f32 %v1336_v5, %v595_v14 }
 0x16f   : > { %v849_v24 = vpack.c.bf16 %v636_v39, %v635_v16 }
 0x170   : > { %748 = vst [vmem:[%s1350_s20 + $0x68] sm:$0xff] %v848_v17  ;;  %v850_v31 = vpack.c.bf16 %v638_v1, %v637_v42 }
 0x171   : > { %749 = vst [vmem:[%s1350_s20 + $0x70] sm:$0xff] %v849_v24 }
 0x172   : > { %750 = vst [vmem:[%s1350_s20 + $0x78] sm:$0xff] %v850_v31 }
 0x173 PF: > { %s14_s15 = sadd.s32 1, %s897_s15  }
 0x174   : > { %p11_p4 = scmp.ge.s32.totalorder %s14_s15, 4  }
 0x176   :  { %13 = sbr.rel (!%p11_p4) target bundleno = 1 (0x1), region = 66 }

// kernel: wrapper_forward.4
= control target key start
LH: loop header
LB: loop body
LE: loop exit
PB: predicated region body
PF: predicated region fallthrough
CT: control target
= control target key end

     0   :  { %s3888_s27 = smov 0   ;;  %s5532_s0 = inlined_call_operand.vmem [shape: bf16[2,128,256], index: 0, kind: input, shape index: {}]   ;;  %s5533_s1 = inlined_call_operand.vmem [shape: bf16[256,768], index: 1, kind: input, shape index: {}]   ;;  %s5534_s2 = inlined_call_operand.vmem [shape: f32[1,768], index: 2, kind: input, shape index: {}]   ;;  %s5535_s3 = inlined_call_operand.vmem [shape: bf16[256,256], index: 3, kind: input, shape index: {}]   ;;  %s5536_s4 = inlined_call_operand.vmem [shape: f32[1,256], index: 4, kind: input, shape index: {}]   ;;  %s5537_s5 = inlined_call_operand.vmem [shape: f32[1,256], index: 5, kind: input, shape index: {}]   ;;  %s5538_s6 = inlined_call_operand.vmem [shape: f32[1,256], index: 6, kind: input, shape index: {}]   ;;  %s5539_s7 = inlined_call_operand.vmem [shape: f32[2,1,128], index: 7, kind: input, shape index: {}]   ;;  %s5540_s8 = inlined_call_operand.vmem [shape: bf16[2,128,256], index: 8, kind: output, shape index: {}]  }
   0x1 LB: > { %s3061_s28 = sadd.s32 4294967295, %s3841_s27   ;;  %p3065_p0 = scmp.ge.s32.totalorder %s3841_s27, 1  ;;  %s3841_s27 = sphi %s3888_s27, %s18_s27  }
   0x2   : > { %p270_p1 = scmp.lt.s32.totalorder %s3841_s27, 3 }
   0x4   : > { %p271_p2 = pnand %p3065_p0, %p270_p1 }
   0x6   : > { %274 = sbr.rel (%p271_p2) target bundleno = 1633 (0x661), region = 52 }
   0xb   : > { %v3451_v0 = vld [vmem:[%s5533_s1 + $0x154] ss:$24 sps:$4 sm:$0xff]   ;;  %v3453_v1 = vld [vmem:[%s5533_s1 + $0x150] ss:$24 sps:$4 sm:$0xff]   ;;  %v3454_v2 = vld [vmem:[%s5533_s1 + $0x124] ss:$24 sps:$4 sm:$0xff]  }
   0xc   : > { %1025 = vmatprep.subr.bf16.mxu1 %v3451_v0  ;;  %v3456_v3 = vld [vmem:[%s5533_s1 + $0x120] ss:$24 sps:$4 sm:$0xff]   ;;  %v3457_v4 = vld [vmem:[%s5533_s1 + $0xf4] ss:$24 sps:$4 sm:$0xff]   ;;  %v3459_v5 = vld [vmem:[%s5533_s1 + $0xf0] ss:$24 sps:$4 sm:$0xff]  }
   0xd   : > { %1026 = vmatpush1.bf16.msra.mxu1 %v3453_v1  ;;  %p307_p3 = scmp.lt.s32.totalorder %s3061_s28, 1  ;;  %v3460_v6 = vld [vmem:[%s5533_s1 + $0xc4] ss:$24 sps:$4 sm:$0xff]   ;;  %v3462_v7 = vld [vmem:[%s5533_s1 + $0xc0] ss:$24 sps:$4 sm:$0xff]  }
   0xe   : > { %1027 = vmatprep.subr.bf16.mxu1 %v3454_v2  ;;  %v3463_v8 = vld [vmem:[%s5533_s1 + $0x94] ss:$24 sps:$4 sm:$0xff]   ;;  %v3465_v9 = vld [vmem:[%s5533_s1 + $0x90] ss:$24 sps:$4 sm:$0xff]   ;;  %v3466_v10 = vld [vmem:[%s5533_s1 + $0x64] ss:$24 sps:$4 sm:$0xff]  }
   0xf   : > { %s5615_s28 = smov (!%p307_p3, %s3061_s28), 1  ;;  %v3468_v11 = vld [vmem:[%s5533_s1 + $0x60] ss:$24 sps:$4 sm:$0xff]   ;;  %v3469_v12 = vld [vmem:[%s5533_s1 + $0x34] ss:$24 sps:$4 sm:$0xff]  }
  0x10   : > { %s3233_s29 = sshll.u32 %s5615_s28, 7  ;;  %v3471_v16 = vld [vmem:[%s5533_s1 + $0x30] ss:$24 sps:$4 sm:$0xff]   ;;  %v3472_v17 = vld [vmem:[%s5533_s1 + $0x4] ss:$24 sps:$4 sm:$0xff]   ;;  %s314_s25 = scalar_lea.vmem %s5539_s7, %s5615_s28 }
  0x11   : > { %1028 = vmatpush1.bf16.msra.mxu1 %v3456_v3  ;;  %s3937_s12 = scalar_lea.vmem %s5532_s0, %s3233_s29  ;;  %v3474_v18 = vld [vmem:[%s5533_s1] ss:$24 sps:$4 sm:$0xff]   ;;  %v3475_v19 = vld [vmem:[%s5533_s1 + $0x2d4] ss:$24 sps:$4 sm:$0xff]   ;;  %v3477_v20 = vld [vmem:[%s5533_s1 + $0x2d0] ss:$24 sps:$4 sm:$0xff]  }
  0x12   : > { %1029 = vmatprep.subr.bf16.mxu1 %v3457_v4  ;;  %v3946_v13 = vld [vmem:[%s3937_s12] sm:$0xff]  ;;  %v322_v14 = vld [vmem:[%s3937_s12 + $0x8] sm:$0xff]  ;;  %v3503_v42 = vld [vmem:[%s5533_s1 + $0x15c] ss:$24 sps:$4 sm:$0xff]  }
  0x13   : > { %v3950_v15 = vcombine.high %v3946_v13, %v322_v14  ;;  %v3478_v21 = vld [vmem:[%s5533_s1 + $0x2a4] ss:$24 sps:$4 sm:$0xff]   ;;  %v3480_v22 = vld [vmem:[%s5533_s1 + $0x2a0] ss:$24 sps:$4 sm:$0xff]   ;;  %v3481_v23 = vld [vmem:[%s5533_s1 + $0x274] ss:$24 sps:$4 sm:$0xff]   ;;  %v4044_v47 = vcombine.low %v3946_v13, %v322_v14 }
  0x14   : > { %v3483_v24 = vld [vmem:[%s5533_s1 + $0x270] ss:$24 sps:$4 sm:$0xff]   ;;  %v3484_v25 = vld [vmem:[%s5533_s1 + $0x244] ss:$24 sps:$4 sm:$0xff]   ;;  %v3486_v26 = vld [vmem:[%s5533_s1 + $0x240] ss:$24 sps:$4 sm:$0xff]  }
  0x15   : > { %1030 = vmatpush1.bf16.msra.mxu1 %v3459_v5  ;;  %1057 = vmatprep.mubr.bf16.mxu1 %v3950_v15  ;;  %v3487_v27 = vld [vmem:[%s5533_s1 + $0x214] ss:$24 sps:$4 sm:$0xff]   ;;  %v3489_v28 = vld [vmem:[%s5533_s1 + $0x210] ss:$24 sps:$4 sm:$0xff]   ;;  %v3490_v29 = vld [vmem:[%s5533_s1 + $0x1e4] ss:$24 sps:$4 sm:$0xff]  }
  0x16   : > { %1031 = vmatprep.subr.bf16.mxu1 %v3460_v6  ;;  %1283 = vmatprep.mubr.bf16.mxu0 %v3950_v15  ;;  %v3563_v30 = vld [vmem:[%s5533_s1 + $0x164] ss:$24 sps:$4 sm:$0xff]   ;;  %v3565_v31 = vld [vmem:[%s5533_s1 + $0x160] ss:$24 sps:$4 sm:$0xff]   ;;  %v3566_v33 = vld [vmem:[%s5533_s1 + $0x134] ss:$24 sps:$4 sm:$0xff]  }
  0x17   : > { %v3492_v32 = vld [vmem:[%s5533_s1 + $0x1e0] ss:$24 sps:$4 sm:$0xff]   ;;  %v3493_v34 = vld [vmem:[%s5533_s1 + $0x1b4] ss:$24 sps:$4 sm:$0xff]   ;;  %1251 = vmatprep.subr.bf16.mxu0 %v3563_v30  ;;  %v3568_v35 = vld [vmem:[%s5533_s1 + $0x130] ss:$24 sps:$4 sm:$0xff]  }
  0x18   : > { %1252 = vmatpush1.bf16.msra.mxu0 %v3565_v31  ;;  %v3569_v36 = vld [vmem:[%s5533_s1 + $0x104] ss:$24 sps:$4 sm:$0xff]   ;;  %v3495_v37 = vld [vmem:[%s5533_s1 + $0x1b0] ss:$24 sps:$4 sm:$0xff]   ;;  %v3571_v39 = vld [vmem:[%s5533_s1 + $0x100] ss:$24 sps:$4 sm:$0xff]  }
  0x19   : > { %1032 = vmatpush1.bf16.msra.mxu1 %v3462_v7  ;;  %1253 = vmatprep.subr.bf16.mxu0 %v3566_v33  ;;  %v3496_v38 = vld [vmem:[%s5533_s1 + $0x184] ss:$24 sps:$4 sm:$0xff]   ;;  %v3498_v40 = vld [vmem:[%s5533_s1 + $0x180] ss:$24 sps:$4 sm:$0xff]   ;;  %v3572_v41 = vld [vmem:[%s5533_s1 + $0xd4] ss:$24 sps:$4 sm:$0xff]  }
  0x1a   : > { %1033 = vmatprep.subr.bf16.mxu1 %v3463_v8  ;;  %v323_v43 = vld [vmem:[%s3937_s12 + $0x10] sm:$0xff]  ;;  %v324_v44 = vld [vmem:[%s3937_s12 + $0x18] sm:$0xff]  ;;  %v3506_v49 = vld [vmem:[%s5533_s1 + $0x12c] ss:$24 sps:$4 sm:$0xff]  }
  0x1b   : > { %v3574_v45 = vld [vmem:[%s5533_s1 + $0xd0] ss:$24 sps:$4 sm:$0xff]   ;;  %v3575_v46 = vld [vmem:[%s5533_s1 + $0xa4] ss:$24 sps:$4 sm:$0xff]   ;;  %v4052_v50 = vcombine.high %v323_v43, %v324_v44  ;;  %v3577_v51 = vld [vmem:[%s5533_s1 + $0xa0] ss:$24 sps:$4 sm:$0xff]   ;;  %v4079_v60 = vcombine.low %v323_v43, %v324_v44 }
  0x1c   : > { %1254 = vmatpush1.bf16.msra.mxu0 %v3568_v35  ;;  %v3501_v48 = vld [vmem:[%s5533_s1 + $0x158] ss:$24 sps:$4 sm:$0xff]   ;;  %v3504_v52 = vld [vmem:[%s5533_s1 + $0x128] ss:$24 sps:$4 sm:$0xff]   ;;  %v3578_v53 = vld [vmem:[%s5533_s1 + $0x74] ss:$24 sps:$4 sm:$0xff]  }
  0x1d   : > { %1034 = vmatpush1.bf16.msra.mxu1 %v3465_v9  ;;  %1255 = vmatprep.subr.bf16.mxu0 %v3569_v36  ;;  %v3511_v54 = vld [vmem:[%s5533_s1 + $0xfc] ss:$24 sps:$4 sm:$0xff]   ;;  %v325_v55 = vld [vmem:[%s3937_s12 + $0x20] sm:$0xff]  ;;  %v326_v56 = vld [vmem:[%s3937_s12 + $0x28] sm:$0xff] }
  0x1e   : > { %1035 = vmatprep.subr.bf16.mxu1 %v3466_v10  ;;  %v3580_v57 = vld [vmem:[%s5533_s1 + $0x70] ss:$24 sps:$4 sm:$0xff]   ;;  %v3581_v59 = vld [vmem:[%s5533_s1 + $0x44] ss:$24 sps:$4 sm:$0xff]   ;;  %v3583_v62 = vld [vmem:[%s5533_s1 + $0x40] ss:$24 sps:$4 sm:$0xff]   ;;  %v4087_v63 = vcombine.high %v325_v55, %v326_v56  ;;  %v4111_v8 = vcombine.low %v325_v55, %v326_v56 }
  0x1f   : > { %v3509_v58 = vld [vmem:[%s5533_s1 + $0xf8] ss:$24 sps:$4 sm:$0xff]   ;;  %v3514_v61 = vld [vmem:[%s5533_s1 + $0xcc] ss:$24 sps:$4 sm:$0xff]   ;;  %v3512_v1 = vld [vmem:[%s5533_s1 + $0xc8] ss:$24 sps:$4 sm:$0xff]  }
  0x20   : > { %1256 = vmatpush1.bf16.msra.mxu0 %v3571_v39  ;;  %v3584_v0 = vld [vmem:[%s5533_s1 + $0x14] ss:$24 sps:$4 sm:$0xff]   ;;  %v328_v4 = vld [vmem:[%s3937_s12 + $0x38] sm:$0xff]  ;;  %v3586_v5 = vld [vmem:[%s5533_s1 + $0x10] ss:$24 sps:$4 sm:$0xff]  }
  0x21   : > { %1036 = vmatpush1.bf16.msra.mxu1 %v3468_v11  ;;  %1257 = vmatprep.subr.bf16.mxu0 %v3572_v41  ;;  %v3519_v2 = vld [vmem:[%s5533_s1 + $0x9c] ss:$24 sps:$4 sm:$0xff]   ;;  %v3517_v7 = vld [vmem:[%s5533_s1 + $0x98] ss:$24 sps:$4 sm:$0xff]   ;;  %v3522_v9 = vld [vmem:[%s5533_s1 + $0x6c] ss:$24 sps:$4 sm:$0xff]  }
  0x22   : > { %1037 = vmatprep.subr.bf16.mxu1 %v3469_v12  ;;  %v327_v3 = vld [vmem:[%s3937_s12 + $0x30] sm:$0xff]  ;;  %v3587_v6 = vld [vmem:[%s5533_s1 + $0x2e4] ss:$24 sps:$4 sm:$0xff]   ;;  %v3589_v11 = vld [vmem:[%s5533_s1 + $0x2e0] ss:$24 sps:$4 sm:$0xff]  }
  0x23   : > { %v4116_v10 = vcombine.high %v327_v3, %v328_v4  ;;  %v3590_v12 = vld [vmem:[%s5533_s1 + $0x2b4] ss:$24 sps:$4 sm:$0xff]   ;;  %v3520_v13 = vld [vmem:[%s5533_s1 + $0x68] ss:$24 sps:$4 sm:$0xff]   ;;  %v3599_v31 = vld [vmem:[%s5533_s1 + $0x224] ss:$24 sps:$4 sm:$0xff]  }
  0x24   : > { %1258 = vmatpush1.bf16.msra.mxu0 %v3574_v45  ;;  %v3527_v14 = vld [vmem:[%s5533_s1 + $0x3c] ss:$24 sps:$4 sm:$0xff]   ;;  %v3598_v30 = vld [vmem:[%s5533_s1 + $0x250] ss:$24 sps:$4 sm:$0xff]   ;;  %v3538_v35 = vld [vmem:[%s5533_s1 + $0x2ac] ss:$24 sps:$4 sm:$0xff]  }
  0x25   : > { %1038 = vmatpush1.bf16.msra.mxu1 %v3471_v16  ;;  %1259 = vmatprep.subr.bf16.mxu0 %v3575_v46  ;;  %v329_v16 = vld [vmem:[%s3937_s12 + $0x40] sm:$0xff]  ;;  %v3533_v33 = vld [vmem:[%s5533_s1 + $0x2d8] ss:$24 sps:$4 sm:$0xff]   ;;  %v3543_v39 = vld [vmem:[%s5533_s1 + $0x27c] ss:$24 sps:$4 sm:$0xff]  }
  0x26   : > { %1039 = vmatprep.subr.bf16.mxu1 %v3472_v17  ;;  %v330_v17 = vld [vmem:[%s3937_s12 + $0x48] sm:$0xff]  ;;  %v3601_v36 = vld [vmem:[%s5533_s1 + $0x220] ss:$24 sps:$4 sm:$0xff]   ;;  %v3605_v43 = vld [vmem:[%s5533_s1 + $0x1c4] ss:$24 sps:$4 sm:$0xff]  }
  0x27   : > { %v334_v41 = vld [vmem:[%s3937_s12 + $0x68] sm:$0xff]  ;;  %v3541_v45 = vld [vmem:[%s5533_s1 + $0x278] ss:$24 sps:$4 sm:$0xff]  }
  0x28   : > { %1260 = vmatpush1.bf16.msra.mxu0 %v3577_v51  ;;  %v3608_v51 = vld [vmem:[%s5533_s1 + $0x194] ss:$24 sps:$4 sm:$0xff]   ;;  %v336_v55 = vld [vmem:[%s3937_s12 + $0x78] sm:$0xff]  ;;  %v3610_v56 = vld [vmem:[%s5533_s1 + $0x190] ss:$24 sps:$4 sm:$0xff]  }
  0x29   : > { %1040 = vmatpush1.bf16.msra.mxu1 %v3474_v18  ;;  %1261 = vmatprep.subr.bf16.mxu0 %v3578_v53  ;;  %v3592_v18 = vld [vmem:[%s5533_s1 + $0x2b0] ss:$24 sps:$4 sm:$0xff]   ;;  %v3551_v53 = vld [vmem:[%s5533_s1 + $0x21c] ss:$24 sps:$4 sm:$0xff]  }
  0x2a   : > { %1041 = vmatprep.subr.bf16.mxu1 %v3475_v19  ;;  %v3593_v19 = vld [vmem:[%s5533_s1 + $0x284] ss:$24 sps:$4 sm:$0xff]  }
  0x2c   : > { %1262 = vmatpush1.bf16.msra.mxu0 %v3580_v57 }
  0x2d   : > { %1042 = vmatpush2.bf16.msra.mxu1 %v3477_v20  ;;  %1263 = vmatprep.subr.bf16.mxu0 %v3581_v59  ;;  %v4140_v20 = vcombine.low %v327_v3, %v328_v4  ;;  %v3562_v3 = vld [vmem:[%s5533_s1 + $0x18c] ss:$24 sps:$4 sm:$0xff]   ;;  %v3560_v4 = vld [vmem:[%s5533_s1 + $0x188] ss:$24 sps:$4 sm:$0xff]  }
  0x2e   : > { %1043 = vmatprep.subr.bf16.mxu1 %v3478_v21  ;;  %v3525_v21 = vld [vmem:[%s5533_s1 + $0x38] ss:$24 sps:$4 sm:$0xff]  }
  0x30   : > { %1264 = vmatpush1.bf16.msra.mxu0 %v3583_v62  ;;  %v3552_v62 = vld [vmem:[%s5533_s1 + $0x1e8] ss:$24 sps:$4 sm:$0xff]  }
  0x31   : > { %1044 = vmatpush2.bf16.msra.mxu1 %v3480_v22  ;;  %1265 = vmatprep.subr.bf16.mxu0 %v3584_v0  ;;  %v4145_v22 = vcombine.high %v329_v16, %v330_v17  ;;  %v3559_v0 = vld [vmem:[%s5533_s1 + $0x1bc] ss:$24 sps:$4 sm:$0xff]  }
  0x32   : > { %1045 = vmatprep.subr.bf16.mxu1 %v3481_v23  ;;  %v3530_v23 = vld [vmem:[%s5533_s1 + $0xc] ss:$24 sps:$4 sm:$0xff]  }
  0x34   : > { %1266 = vmatpush1.bf16.msra.mxu0 %v3586_v5 }
  0x35   : > { %1046 = vmatpush2.bf16.msra.mxu1 %v3483_v24  ;;  %1267 = vmatprep.subr.bf16.mxu0 %v3587_v6  ;;  %v3595_v24 = vld [vmem:[%s5533_s1 + $0x280] ss:$24 sps:$4 sm:$0xff]  }
  0x36   : > { %1047 = vmatprep.subr.bf16.mxu1 %v3484_v25  ;;  %v3596_v25 = vld [vmem:[%s5533_s1 + $0x254] ss:$24 sps:$4 sm:$0xff]  }
  0x38   : > { %1268 = vmatpush2.bf16.msra.mxu0 %v3589_v11 }
  0x39   : > { %1048 = vmatpush2.bf16.msra.mxu1 %v3486_v26  ;;  %1269 = vmatprep.subr.bf16.mxu0 %v3590_v12  ;;  %v3528_v26 = vld [vmem:[%s5533_s1 + $0x8] ss:$24 sps:$4 sm:$0xff]  }
  0x3a   : > { %1049 = vmatprep.subr.bf16.mxu1 %v3487_v27  ;;  %v3535_v27 = vld [vmem:[%s5533_s1 + $0x2dc] ss:$24 sps:$4 sm:$0xff]  }
  0x3c   : > { %1270 = vmatpush2.bf16.msra.mxu0 %v3592_v18 }
  0x3d   : > { %1050 = vmatpush2.bf16.msra.mxu1 %v3489_v28  ;;  %1271 = vmatprep.subr.bf16.mxu0 %v3593_v19  ;;  %v331_v28 = vld [vmem:[%s3937_s12 + $0x50] sm:$0xff] }
  0x3e   : > { %1051 = vmatprep.subr.bf16.mxu1 %v3490_v29  ;;  %v332_v29 = vld [vmem:[%s3937_s12 + $0x58] sm:$0xff] }
  0x3f   : > { %v4204_v44 = vcombine.low %v331_v28, %v332_v29 }
  0x40   : > { %1272 = vmatpush2.bf16.msra.mxu0 %v3595_v24 }
  0x41   : > { %1052 = vmatpush2.bf16.msra.mxu1 %v3492_v32  ;;  %1273 = vmatprep.subr.bf16.mxu0 %v3596_v25  ;;  %v4172_v32 = vcombine.low %v329_v16, %v330_v17 }
  0x42   : > { %1053 = vmatprep.subr.bf16.mxu1 %v3493_v34  ;;  %v4177_v34 = vcombine.high %v331_v28, %v332_v29 }
  0x44   : > { %1274 = vmatpush2.bf16.msra.mxu0 %v3598_v30 }
  0x45   : > { %1054 = vmatpush2.bf16.msra.mxu1 %v3495_v37  ;;  %1275 = vmatprep.subr.bf16.mxu0 %v3599_v31  ;;  %v3602_v37 = vld [vmem:[%s5533_s1 + $0x1f4] ss:$24 sps:$4 sm:$0xff]  }
  0x46   : > { %1055 = vmatprep.subr.bf16.mxu1 %v3496_v38  ;;  %v3536_v38 = vld [vmem:[%s5533_s1 + $0x2a8] ss:$24 sps:$4 sm:$0xff]  }
  0x48   : > { %1276 = vmatpush2.bf16.msra.mxu0 %v3601_v36 }
  0x49   : > { %1056 = vmatpush2.bf16.msra.mxu1 %v3498_v40  ;;  %v333_v40 = vld [vmem:[%s3937_s12 + $0x60] sm:$0xff]  ;;  %1277 = vmatprep.subr.bf16.mxu0 %v3602_v37 }
  0x4a   : > { %1138 = vmatprep.subr.bf16.mxu1 %v3503_v42  ;;  %v3604_v42 = vld [vmem:[%s5533_s1 + $0x1f0] ss:$24 sps:$4 sm:$0xff]   ;;  %v4209_v46 = vcombine.high %v333_v40, %v334_v41  ;;  %v3082_v57 = vcombine.low %v333_v40, %v334_v41 }
  0x4c   : > { %1058 = vmatmul.mubr.bf16.vlgmr.msra.gmra.mxu1 %v4044_v47  ;;  %1278 = vmatpush2.bf16.msra.mxu0 %v3604_v42 }
  0x4d   : > { %1139 = vmatpush1.bf16.msra.mxu1 %v3501_v48  ;;  %1067 = vmatprep.mubr.bf16.mxu1 %v4052_v50  ;;  %v3546_v48 = vld [vmem:[%s5533_s1 + $0x24c] ss:$24 sps:$4 sm:$0xff]  }
  0x4e   : > { %1140 = vmatprep.subr.bf16.mxu1 %v3506_v49  ;;  %v3607_v49 = vld [vmem:[%s5533_s1 + $0x1c0] ss:$24 sps:$4 sm:$0xff]   ;;  %1279 = vmatprep.subr.bf16.mxu0 %v3605_v43 }
  0x50   : > { %1280 = vmatpush2.bf16.msra.mxu0 %v3607_v49 }
  0x51   : > { %1141 = vmatpush1.bf16.msra.mxu1 %v3504_v52  ;;  %v3544_v52 = vld [vmem:[%s5533_s1 + $0x248] ss:$24 sps:$4 sm:$0xff]   ;;  %1281 = vmatprep.subr.bf16.mxu0 %v3608_v51 }
  0x52   : > { %1142 = vmatprep.subr.bf16.mxu1 %v3511_v54  ;;  %v335_v54 = vld [vmem:[%s3937_s12 + $0x70] sm:$0xff] }
  0x53   : > { %v3085_v59 = vcombine.high %v335_v54, %v336_v55 }
  0x54   : > { %1068 = vmatmul.mubr.bf16.gmra.mxu1 %v4079_v60  ;;  %1282 = vmatpush2.bf16.msra.mxu0 %v3610_v56 }
  0x55   : > { %1143 = vmatpush1.bf16.msra.mxu1 %v3509_v58  ;;  %1077 = vmatprep.mubr.bf16.mxu1 %v4087_v63  ;;  %v3549_v58 = vld [vmem:[%s5533_s1 + $0x218] ss:$24 sps:$4 sm:$0xff]  }
  0x56   : > { %1144 = vmatprep.subr.bf16.mxu1 %v3514_v61  ;;  %v3554_v61 = vld [vmem:[%s5533_s1 + $0x1ec] ss:$24 sps:$4 sm:$0xff]  }
  0x57   : > { %1284 = vmatmul.mubr.bf16.vlgmr.msra.gmra.mxu0 %v4044_v47 }
  0x58   : > { %1293 = vmatprep.mubr.bf16.mxu0 %v4052_v50 }
  0x59   : > { %1145 = vmatpush1.bf16.msra.mxu1 %v3512_v1  ;;  %v3084_v1 = vcombine.low %v335_v54, %v336_v55 }
  0x5a   : > { %1146 = vmatprep.subr.bf16.mxu1 %v3519_v2  ;;  %v3557_v2 = vld [vmem:[%s5533_s1 + $0x1b8] ss:$24 sps:$4 sm:$0xff]  }
  0x5c   : > { %1078 = vmatmul.mubr.bf16.gmra.mxu1 %v4111_v8 }
  0x5d   : > { %1147 = vmatpush1.bf16.msra.mxu1 %v3517_v7  ;;  %1087 = vmatprep.mubr.bf16.mxu1 %v4116_v10 }
  0x5e   : > { %1148 = vmatprep.subr.bf16.mxu1 %v3522_v9 }
  0x5f   : > { %1294 = vmatmul.mubr.bf16.gmra.mxu0 %v4079_v60 }
  0x60   : > { %1303 = vmatprep.mubr.bf16.mxu0 %v4087_v63 }
  0x61   : > { %1149 = vmatpush1.bf16.msra.mxu1 %v3520_v13 }
  0x62   : > { %1150 = vmatprep.subr.bf16.mxu1 %v3527_v14 }
  0x64   : > { %1088 = vmatmul.mubr.bf16.gmra.mxu1 %v4140_v20 }
  0x65   : > { %1151 = vmatpush1.bf16.msra.mxu1 %v3525_v21  ;;  %1097 = vmatprep.mubr.bf16.mxu1 %v4145_v22 }
  0x66   : > { %1152 = vmatprep.subr.bf16.mxu1 %v3530_v23 }
  0x67   : > { %1304 = vmatmul.mubr.bf16.gmra.mxu0 %v4111_v8 }
  0x68   : > { %1313 = vmatprep.mubr.bf16.mxu0 %v4116_v10 }
  0x69   : > { %1153 = vmatpush1.bf16.msra.mxu1 %v3528_v26 }
  0x6a   : > { %1154 = vmatprep.subr.bf16.mxu1 %v3535_v27 }
  0x6c   : > { %1098 = vmatmul.mubr.bf16.gmra.mxu1 %v4172_v32 }
  0x6d   : > { %1155 = vmatpush2.bf16.msra.mxu1 %v3533_v33  ;;  %1107 = vmatprep.mubr.bf16.mxu1 %v4177_v34 }
  0x6e   : > { %1156 = vmatprep.subr.bf16.mxu1 %v3538_v35 }
  0x6f   : > { %1314 = vmatmul.mubr.bf16.gmra.mxu0 %v4140_v20 }
  0x70   : > { %1323 = vmatprep.mubr.bf16.mxu0 %v4145_v22 }
  0x71   : > { %1157 = vmatpush2.bf16.msra.mxu1 %v3536_v38 }
  0x72   : > { %1158 = vmatprep.subr.bf16.mxu1 %v3543_v39 }
  0x74   : > { %1108 = vmatmul.mubr.bf16.gmra.mxu1 %v4204_v44 }
  0x75   : > { %1159 = vmatpush2.bf16.msra.mxu1 %v3541_v45  ;;  %1117 = vmatprep.mubr.bf16.mxu1 %v4209_v46 }
  0x76   : > { %1160 = vmatprep.subr.bf16.mxu1 %v3546_v48 }
  0x77   : > { %1324 = vmatmul.mubr.bf16.gmra.mxu0 %v4172_v32 }
  0x78   : > { %1333 = vmatprep.mubr.bf16.mxu0 %v4177_v34 }
  0x79   : > { %1161 = vmatpush2.bf16.msra.mxu1 %v3544_v52 }
  0x7a   : > { %1162 = vmatprep.subr.bf16.mxu1 %v3551_v53 }
  0x7c   : > { %1118 = vmatmul.mubr.bf16.gmra.mxu1 %v3082_v57 }
  0x7d   : > { %1163 = vmatpush2.bf16.msra.mxu1 %v3549_v58  ;;  %1127 = vmatprep.mubr.bf16.mxu1 %v3085_v59 }
  0x7e   : > { %1164 = vmatprep.subr.bf16.mxu1 %v3554_v61 }
  0x7f   : > { %1334 = vmatmul.mubr.bf16.gmra.mxu0 %v4204_v44 }
  0x80   : > { %1343 = vmatprep.mubr.bf16.mxu0 %v4209_v46 }
  0x81   : > { %1165 = vmatpush2.bf16.msra.mxu1 %v3552_v62 }
  0x82   : > { %1166 = vmatprep.subr.bf16.mxu1 %v3559_v0 }
  0x84   : > { %1128 = vmatmul.mubr.bf16.gmra.mxu1 %v3084_v1 }
  0x85   : > { %1167 = vmatpush2.bf16.msra.mxu1 %v3557_v2  ;;  %1170 = vmatprep.mubr.bf16.mxu1 %v3950_v15  ;;  %v435_v15 = vlaneseq }
  0x86   : > { %1168 = vmatprep.subr.bf16.mxu1 %v3562_v3 }
  0x87   : > { %1344 = vmatmul.mubr.bf16.gmra.mxu0 %v3082_v57 }
  0x88   : > { %1353 = vmatprep.mubr.bf16.mxu0 %v3085_v59 }
  0x89   : > { %1169 = vmatpush2.bf16.msra.mxu1 %v3560_v4 }
  0x8c   : > { %1171 = vmatmul.mubr.bf16.vlgmr.msra.gmra.mxu1 %v4044_v47  ;;  %v4279_v47 = vshrl.u32 %v435_v15, 7 }
  0x8d   : > { %1180 = vmatprep.mubr.bf16.mxu1 %v4052_v50 }
  0x8e   : > { %v4282_v50 = vsub.s32 0, %v4279_v47 }
  0x8f   : > { %1354 = vmatmul.mubr.bf16.gmra.mxu0 %v3084_v1 }
  0x90   : > { %5562 = vst [vmem:[#allocation2_spill] sm:$0xff] %v4282_v50 }
  0x94   : > { %1181 = vmatmul.mubr.bf16.gmra.mxu1 %v4079_v60  ;;  %v4287_v60 = vld [vmem:[%s5534_s2] sm:$0x3f] }
  0x95   : > { %1190 = vmatprep.mubr.bf16.mxu1 %v4087_v63  ;;  %v4290_v63 = vsub.s32 1, %v4279_v47  ;;  %v4294_v5 = vrot.slane %v4287_v60, %v4282_v50 }
  0x97   : > { %5563 = vst [vmem:[#allocation3_spill] sm:$0xff] %v4290_v63  ;;  %v4298_v7 = vrot.slane %v4287_v60, %v4290_v63 }
  0x9c   : > { %1191 = vmatmul.mubr.bf16.gmra.mxu1 %v4111_v8 }
  0x9d   : > { %1200 = vmatprep.mubr.bf16.mxu1 %v4116_v10 }
  0xa4   : > { %1201 = vmatmul.mubr.bf16.gmra.mxu1 %v4140_v20 }
  0xa5   : > { %1210 = vmatprep.mubr.bf16.mxu1 %v4145_v22 }
  0xac   : > { %1211 = vmatmul.mubr.bf16.gmra.mxu1 %v4172_v32 }
  0xad   : > { %1220 = vmatprep.mubr.bf16.mxu1 %v4177_v34 }
  0xb4   : > { %1221 = vmatmul.mubr.bf16.gmra.mxu1 %v4204_v44 }
  0xb5   : > { %1230 = vmatprep.mubr.bf16.mxu1 %v4209_v46 }
  0xbc   : > { %1231 = vmatmul.mubr.bf16.gmra.mxu1 %v3082_v57 }
  0xbd   : > { %1240 = vmatprep.mubr.bf16.mxu1 %v3085_v59 }
  0xc4   : > { %1241 = vmatmul.mubr.bf16.gmra.mxu1 %v3084_v1 }
 0x10c   : > { %v1059_v6 = vpop.f32.mrf.mxu1 }
 0x10d   : > { %v1060_v9 = vadd.f32 %v1059_v6, %v4294_v5 }
 0x10e   : > { %v1061_v8 = vpop.f32.mrf.mxu1 }
 0x10f   : > { %v1062_v11 = vadd.f32 %v1061_v8, %v4298_v7  ;;  %v1365_v14 = vmul.f32 0.088388346, %v1060_v9 }
 0x110   : > { %v1063_v10 = vpop.f32.mrf.mxu1 }
 0x111   : > { %v1064_v12 = vadd.f32 %v1063_v10, %v4294_v5  ;;  %v1765_v19 = vmul.f32 0.088388346, %v1062_v11 }
 0x112   : > { %v1065_v13 = vpop.f32.mrf.mxu1 }
 0x113   : > { %v1366_v16 = vmul.f32 0.088388346, %v1064_v12  ;;  %v1066_v17 = vadd.f32 %v1065_v13, %v4298_v7 }
 0x114   : > { %v1069_v18 = vpop.f32.mrf.mxu1 }
 0x115   : > { %v1381_v20 = vpack.c.bf16 %v1366_v16, %v1365_v14  ;;  %v1766_v21 = vmul.f32 0.088388346, %v1066_v17  ;;  %v1070_v22 = vadd.f32 %v1069_v18, %v4294_v5 }
 0x116   : > { %v1071_v23 = vpop.f32.mrf.mxu1 }
 0x117   : > { %v1781_v24 = vpack.c.bf16 %v1766_v21, %v1765_v19  ;;  %v1072_v25 = vadd.f32 %v1071_v23, %v4298_v7  ;;  %3331 = vmatprep.mubr.bf16.mxu1 %v1381_v20  ;;  %v4307_v29 = vmul.f32 0.088388346, %v1070_v22 }
 0x118   : > { %v1073_v26 = vpop.f32.mrf.mxu1 }
 0x119   : > { %v1074_v27 = vadd.f32 %v1073_v26, %v4294_v5  ;;  %3395 = vmatprep.mubr.bf16.mxu0 %v1781_v24  ;;  %v4312_v33 = vmul.f32 0.088388346, %v1072_v25 }
 0x11a   : > { %v1075_v28 = vpop.f32.mrf.mxu1 }
 0x11b   : > { %v4309_v30 = vmul.f32 0.088388346, %v1074_v27  ;;  %v1076_v31 = vadd.f32 %v1075_v28, %v4298_v7 }
 0x11c   : > { %v1079_v32 = vpop.f32.mrf.mxu1 }
 0x11d   : > { %v4316_v35 = vmul.f32 0.088388346, %v1076_v31  ;;  %v1080_v36 = vadd.f32 %v1079_v32, %v4294_v5 }
 0x11e   : > { %v1081_v37 = vpop.f32.mrf.mxu1 }
 0x11f   : > { %v1082_v39 = vadd.f32 %v1081_v37, %v4298_v7  ;;  %v4323_v43 = vmul.f32 0.088388346, %v1080_v36 }
 0x120   : > { %v1083_v40 = vpop.f32.mrf.mxu1 }
 0x121   : > { %v1084_v41 = vadd.f32 %v1083_v40, %v4294_v5  ;;  %v4328_v48 = vmul.f32 0.088388346, %v1082_v39 }
 0x122   : > { %v1085_v42 = vpop.f32.mrf.mxu1 }
 0x123   : > { %v4325_v44 = vmul.f32 0.088388346, %v1084_v41  ;;  %v1086_v45 = vadd.f32 %v1085_v42, %v4298_v7 }
 0x124   : > { %v1089_v46 = vpop.f32.mrf.mxu1 }
 0x125   : > { %v4332_v51 = vmul.f32 0.088388346, %v1086_v45  ;;  %v1090_v52 = vadd.f32 %v1089_v46, %v4294_v5 }
 0x126   : > { %v1091_v53 = vpop.f32.mrf.mxu1 }
 0x127   : > { %v1092_v55 = vadd.f32 %v1091_v53, %v4298_v7  ;;  %v4339_v59 = vmul.f32 0.088388346, %v1090_v52 }
 0x128   : > { %v1093_v56 = vpop.f32.mrf.mxu1 }
 0x129   : > { %v1094_v57 = vadd.f32 %v1093_v56, %v4294_v5  ;;  %v4344_v1 = vmul.f32 0.088388346, %v1092_v55 }
 0x12a   : > { %v1095_v58 = vpop.f32.mrf.mxu1 }
 0x12b   : > { %v4341_v61 = vmul.f32 0.088388346, %v1094_v57  ;;  %v1096_v62 = vadd.f32 %v1095_v58, %v4298_v7 }
 0x12c   : > { %v1099_v0 = vpop.f32.mrf.mxu1 }
 0x12d   : > { %v4348_v3 = vmul.f32 0.088388346, %v1096_v62  ;;  %v1100_v4 = vadd.f32 %v1099_v0, %v4294_v5 }
 0x12e   : > { %v1101_v15 = vpop.f32.mrf.mxu1 }
 0x12f   : > { %v1102_v8 = vadd.f32 %v1101_v15, %v4298_v7  ;;  %v4355_v12 = vmul.f32 0.088388346, %v1100_v4 }
 0x130   : > { %v1103_v9 = vpop.f32.mrf.mxu1 }
 0x131   : > { %v1104_v10 = vadd.f32 %v1103_v9, %v4294_v5  ;;  %v4360_v17 = vmul.f32 0.088388346, %v1102_v8 }
 0x132   : > { %v1105_v11 = vpop.f32.mrf.mxu1 }
 0x133   : > { %v4357_v13 = vmul.f32 0.088388346, %v1104_v10  ;;  %v1106_v14 = vadd.f32 %v1105_v11, %v4298_v7 }
 0x134   : > { %v1109_v16 = vpop.f32.mrf.mxu1 }
 0x135   : > { %v4364_v19 = vmul.f32 0.088388346, %v1106_v14  ;;  %v1110_v20 = vadd.f32 %v1109_v16, %v4294_v5  ;;  %v445_v16 = vsub.s32 2, %v4279_v47 }
 0x136   : > { %v1111_v21 = vpop.f32.mrf.mxu1 }
 0x137   : > { %v1112_v23 = vadd.f32 %v1111_v21, %v4298_v7  ;;  %v4371_v27 = vmul.f32 0.088388346, %v1110_v20 }
 0x138   : > { %v1113_v24 = vpop.f32.mrf.mxu1 }
 0x139   : > { %v1114_v25 = vadd.f32 %v1113_v24, %v4294_v5  ;;  %v4376_v36 = vmul.f32 0.088388346, %v1112_v23 }
 0x13a   : > { %v1115_v26 = vpop.f32.mrf.mxu1 }
 0x13b   : > { %v4373_v28 = vmul.f32 0.088388346, %v1114_v25  ;;  %v1116_v31 = vadd.f32 %v1115_v26, %v4298_v7  ;;  %5564 = vst [vmem:[#allocation4_spill] sm:$0xff] %v4376_v36  ;;  %v449_v25 = vsub.s32 3, %v4279_v47 }
 0x13c   : > { %v1119_v32 = vpop.f32.mrf.mxu1 }
 0x13d   : > { %v4380_v39 = vmul.f32 0.088388346, %v1116_v31  ;;  %v1120_v40 = vadd.f32 %v1119_v32, %v4294_v5 }
 0x13e   : > { %v1121_v41 = vpop.f32.mrf.mxu1 }
 0x13f   : > { %5565 = vst [vmem:[#allocation5_spill] sm:$0xff] %v4380_v39  ;;  %v1122_v45 = vadd.f32 %v1121_v41, %v4298_v7  ;;  %v4387_v55 = vmul.f32 0.088388346, %v1120_v40 }
 0x140   : > { %v1123_v46 = vpop.f32.mrf.mxu1 }
 0x141   : > { %v1124_v52 = vadd.f32 %v1123_v46, %v4294_v5  ;;  %5566 = vst [vmem:[#allocation6_spill] sm:$0xff] %v4387_v55  ;;  %v4392_v62 = vmul.f32 0.088388346, %v1122_v45  ;;  %v4422_v46 = vrot.slane %v4287_v60, %v449_v25 }
 0x142   : > { %v1125_v53 = vpop.f32.mrf.mxu1 }
 0x143   : > { %v4389_v56 = vmul.f32 0.088388346, %v1124_v52  ;;  %v1126_v57 = vadd.f32 %v1125_v53, %v4298_v7  ;;  %5568 = vst [vmem:[#allocation8_spill] sm:$0xff] %v4392_v62 }
 0x144   : > { %v1129_v58 = vpop.f32.mrf.mxu1 }
 0x145   : > { %5567 = vst [vmem:[#allocation7_spill] sm:$0xff] %v4389_v56  ;;  %v4396_v4 = vmul.f32 0.088388346, %v1126_v57  ;;  %v1130_v15 = vadd.f32 %v1129_v58, %v4294_v5 }
 0x146   : > { %v1131_v8 = vpop.f32.mrf.mxu1 }
 0x147   : > { %5569 = vst [vmem:[#allocation9_spill] sm:$0xff] %v4396_v4  ;;  %v1132_v10 = vadd.f32 %v1131_v8, %v4298_v7  ;;  %v4404_v21 = vmul.f32 0.088388346, %v1130_v15 }
 0x148   : > { %v1133_v11 = vpop.f32.mrf.mxu1 }
 0x149   : > { %v1134_v14 = vadd.f32 %v1133_v11, %v4294_v5  ;;  %5570 = vst [vmem:[#allocation10_spill] sm:$0xff] %v4404_v21  ;;  %v4410_v31 = vmul.f32 0.088388346, %v1132_v10  ;;  %v4417_v5 = vrot.slane %v4287_v60, %v445_v16 }
 0x14a   : > { %v1135_v20 = vpop.f32.mrf.mxu1 }
 0x14b   : > { %v4406_v23 = vmul.f32 0.088388346, %v1134_v14  ;;  %v1136_v24 = vadd.f32 %v1135_v20, %v4298_v7  ;;  %5572 = vst [vmem:[#allocation12_spill] sm:$0xff] %v4410_v31 }
 0x14c   : > { %v1172_v26 = vpop.f32.mrf.mxu1 }
 0x14d   : > { %5571 = vst [vmem:[#allocation11_spill] sm:$0xff] %v4406_v23  ;;  %v4414_v40 = vmul.f32 0.088388346, %v1136_v24  ;;  %v1173_v52 = vadd.f32 %v1172_v26, %v4417_v5 }
 0x14e   : > { %v1174_v41 = vpop.f32.mrf.mxu1 }
 0x14f   : > { %5573 = vst [vmem:[#allocation13_spill] sm:$0xff] %v4414_v40  ;;  %v1175_v58 = vadd.f32 %v1174_v41, %v4422_v46 }
 0x150   : > { %v1176_v7 = vpop.f32.mrf.mxu1 }
 0x151   : > { %v1177_v53 = vadd.f32 %v1176_v7, %v4417_v5 }
 0x152   : > { %v1178_v57 = vpop.f32.mrf.mxu1 }
 0x153   : > { %v4427_v15 = vpack.c.bf16 %v1177_v53, %v1173_v52  ;;  %v1179_v8 = vadd.f32 %v1178_v57, %v4422_v46 }
 0x154   : > { %v1182_v10 = vpop.f32.mrf.mxu1 }
 0x155   : > { %v4430_v11 = vpack.c.bf16 %v1179_v8, %v1175_v58  ;;  %v1183_v20 = vadd.f32 %v1182_v10, %v4417_v5 }
 0x156   : > { %v1184_v14 = vpop.f32.mrf.mxu1 }
 0x157   : > { %v1185_v26 = vadd.f32 %v1184_v14, %v4422_v46 }
 0x158   : > { %v1186_v16 = vpop.f32.mrf.mxu1 }
 0x159   : > { %v1187_v24 = vadd.f32 %v1186_v16, %v4417_v5 }
 0x15a   : > { %v1188_v25 = vpop.f32.mrf.mxu1 }
 0x15b   : > { %v4435_v7 = vpack.c.bf16 %v1187_v24, %v1183_v20  ;;  %v1189_v41 = vadd.f32 %v1188_v25, %v4422_v46 }
 0x15c   : > { %v1192_v52 = vpop.f32.mrf.mxu1 }
 0x15d   : > { %v4438_v53 = vpack.c.bf16 %v1189_v41, %v1185_v26  ;;  %v1193_v58 = vadd.f32 %v1192_v52, %v4417_v5  ;;  %v453_v26 = vsub.s32 4, %v4279_v47  ;;  %v1285_v41 = vpop.f32.mrf.mxu0  ;;  %v457_v52 = vsub.s32 5, %v4279_v47 }
 0x15e   : > { %v1194_v57 = vpop.f32.mrf.mxu1 }
 0x15f   : > { %v1195_v10 = vadd.f32 %v1194_v57, %v4422_v46  ;;  %v4460_v57 = vrot.slane %v4287_v60, %v457_v52 }
 0x160   : > { %v1196_v45 = vpop.f32.mrf.mxu1 }
 0x161   : > { %v1197_v8 = vadd.f32 %v1196_v45, %v4417_v5  ;;  %v4457_v45 = vrot.slane %v4287_v60, %v453_v26 }
 0x162   : > { %v1198_v32 = vpop.f32.mrf.mxu1 }
 0x163   : > { %v4443_v16 = vpack.c.bf16 %v1197_v8, %v1193_v58  ;;  %v1199_v14 = vadd.f32 %v1198_v32, %v4422_v46  ;;  %v1287_v32 = vpop.f32.mrf.mxu0  ;;  %v1286_v8 = vadd.f32 %v1285_v41, %v4457_v45 }
 0x164   : > { %v4446_v20 = vpop.f32.mrf.mxu1 }
 0x165   : > { %v4448_v24 = vpack.c.bf16 %v1199_v14, %v1195_v10  ;;  %v1288_v10 = vadd.f32 %v1287_v32, %v4460_v57  ;;  %v1289_v14 = vpop.f32.mrf.mxu0 }
 0x166   : > { %v4450_v25 = vpop.f32.mrf.mxu1  ;;  %v1290_v47 = vadd.f32 %v1289_v14, %v4457_v45 }
 0x167   : > { %v1291_v0 = vpop.f32.mrf.mxu0 }
 0x168   : > { %v4454_v9 = vpop.f32.mrf.mxu1  ;;  %v4471_v26 = vpack.c.bf16 %v1290_v47, %v1286_v8  ;;  %v1292_v60 = vadd.f32 %v1291_v0, %v4460_v57 }
 0x169   : > { %v1295_v52 = vpop.f32.mrf.mxu0 }
 0x16a   : > { %v4462_v58 = vpop.f32.mrf.mxu1  ;;  %5574 = vst [vmem:[#allocation14_spill] sm:$0xff] %v4471_v26  ;;  %v4476_v6 = vpack.c.bf16 %v1292_v60, %v1288_v10  ;;  %v1296_v32 = vadd.f32 %v1295_v52, %v4457_v45 }
 0x16b   : > { %v1297_v41 = vpop.f32.mrf.mxu0 }
 0x16c   : > { %v4466_v42 = vpop.f32.mrf.mxu1  ;;  %5575 = vst [vmem:[#allocation15_spill] sm:$0xff] %v4476_v6  ;;  %v1298_v2 = vadd.f32 %v1297_v41, %v4460_v57 }
 0x16d   : > { %v1299_v14 = vpop.f32.mrf.mxu0 }
 0x16e   : > { %v4469_v37 = vpop.f32.mrf.mxu1  ;;  %v1300_v8 = vadd.f32 %v1299_v14, %v4457_v45 }
 0x16f   : > { %v1301_v47 = vpop.f32.mrf.mxu0 }
 0x170   : > { %v4474_v22 = vpop.f32.mrf.mxu1  ;;  %v4487_v0 = vpack.c.bf16 %v1300_v8, %v1296_v32  ;;  %v1302_v10 = vadd.f32 %v1301_v47, %v4460_v57 }
 0x171   : > { %v1305_v60 = vpop.f32.mrf.mxu0 }
 0x172   : > { %v4478_v18 = vpop.f32.mrf.mxu1  ;;  %5576 = vst [vmem:[#allocation16_spill] sm:$0xff] %v4487_v0  ;;  %v4490_v34 = vpack.c.bf16 %v1302_v10, %v1298_v2  ;;  %v1306_v41 = vadd.f32 %v1305_v60, %v4457_v45 }
 0x173   : > { %v1307_v63 = vpop.f32.mrf.mxu0 }
 0x174   : > { %v4482_v54 = vpop.f32.mrf.mxu1  ;;  %5577 = vst [vmem:[#allocation17_spill] sm:$0xff] %v4490_v34  ;;  %v1308_v50 = vadd.f32 %v1307_v63, %v4460_v57 }
 0x175   : > { %v1309_v6 = vpop.f32.mrf.mxu0 }
 0x176   : > { %v4485_v38 = vpop.f32.mrf.mxu1  ;;  %v1310_v14 = vadd.f32 %v1309_v6, %v4457_v45 }
 0x177   : > { %v1311_v31 = vpop.f32.mrf.mxu0 }
 0x178   : > { %v1226_v49 = vpop.f32.mrf.mxu1  ;;  %v4495_v32 = vpack.c.bf16 %v1310_v14, %v1306_v41  ;;  %v1312_v8 = vadd.f32 %v1311_v31, %v4460_v57 }
 0x179   : > { %v4498_v47 = vpop.f32.mrf.mxu0 }
 0x17a   : > { %v1228_v52 = vpop.f32.mrf.mxu1  ;;  %5578 = vst [vmem:[#allocation18_spill] sm:$0xff] %v4495_v32  ;;  %v4500_v10 = vpack.c.bf16 %v1312_v8, %v1308_v50 }
 0x17b   : > { %v1317_v34 = vpop.f32.mrf.mxu0 }
 0x17c   : > { %v1232_v26 = vpop.f32.mrf.mxu1  ;;  %5579 = vst [vmem:[#allocation19_spill] sm:$0xff] %v4500_v10  ;;  %v1318_v60 = vadd.f32 %v1317_v34, %v4460_v57 }
 0x17d   : > { %v4503_v63 = vpop.f32.mrf.mxu0  ;;  %v1233_v34 = vadd.f32 %v1232_v26, %v4417_v5 }
 0x17e   : > { %v1234_v40 = vpop.f32.mrf.mxu1 }
 0x17f   : > { %v1321_v0 = vpop.f32.mrf.mxu0 }
 0x180   : > { %v1236_v2 = vpop.f32.mrf.mxu1  ;;  %v1322_v62 = vadd.f32 %v1321_v0, %v4460_v57 }
 0x181   : > { %v4506_v41 = vpop.f32.mrf.mxu0  ;;  %v1237_v4 = vadd.f32 %v1236_v2, %v4417_v5  ;;  %v1235_v2 = vadd.f32 %v1234_v40, %v4422_v46  ;;  %v1223_v40 = vadd.f32 %v4482_v54, %v4417_v5  ;;  %v1217_v54 = vadd.f32 %v4474_v22, %v4417_v5 }
 0x182   : > { %v1238_v21 = vpop.f32.mrf.mxu1  ;;  %v4508_v31 = vpack.c.bf16 %v1322_v62, %v1318_v60 }
 0x183   : > { %v1327_v10 = vpop.f32.mrf.mxu0  ;;  %v1239_v39 = vadd.f32 %v1238_v21, %v4422_v46 }
 0x184   : > { %v1242_v23 = vpop.f32.mrf.mxu1  ;;  %5580 = vst [vmem:[#allocation20_spill] sm:$0xff] %v4508_v31  ;;  %v1328_v36 = vadd.f32 %v1327_v10, %v4460_v57 }
 0x185   : > { %v1243_v50 = vadd.f32 %v1242_v23, %v4417_v5  ;;  %v4518_v60 = vpop.f32.mrf.mxu0  ;;  %v1395_v23 = vpack.c.bf16 %v1237_v4, %v1233_v34  ;;  %v1795_v56 = vpack.c.bf16 %v1239_v39, %v1235_v2  ;;  %v1225_v39 = vadd.f32 %v4485_v38, %v4422_v46 }
 0x186   : > { %v1244_v6 = vpop.f32.mrf.mxu1  ;;  %v1213_v38 = vadd.f32 %v4466_v42, %v4417_v5  ;;  %v1219_v2 = vadd.f32 %v4478_v18, %v4422_v46  ;;  %v1207_v42 = vadd.f32 %v4454_v9, %v4417_v5  ;;  %v1203_v18 = vadd.f32 %v4446_v20, %v4417_v5 }
 0x187   : > { %v1245_v0 = vadd.f32 %v1244_v6, %v4422_v46 }
 0x188   : > { %v1246_v14 = vpop.f32.mrf.mxu1 }
 0x189   : > { %v1247_v8 = vadd.f32 %v1246_v14, %v4417_v5  ;;  %v1331_v14 = vpop.f32.mrf.mxu0 }
 0x18a   : > { %v1248_v32 = vpop.f32.mrf.mxu1  ;;  %v1332_v26 = vadd.f32 %v1331_v14, %v4460_v57  ;;  %v1215_v14 = vadd.f32 %v4469_v37, %v4422_v46  ;;  %v1209_v37 = vadd.f32 %v4462_v58, %v4422_v46 }
 0x18b   : > { %v1396_v55 = vpack.c.bf16 %v1247_v8, %v1243_v50  ;;  %v1249_v62 = vadd.f32 %v1248_v32, %v4422_v46  ;;  %v4522_v21 = vpop.f32.mrf.mxu0  ;;  %v1227_v32 = vadd.f32 %v1226_v49, %v4417_v5 }
 0x18c   : > { %v4524_v10 = vpack.c.bf16 %v1332_v26, %v1328_v36  ;;  %v1793_v22 = vpack.c.bf16 %v1219_v2, %v1215_v14  ;;  %v5607_v2 = vld [vmem:[#allocation14_spill] sm:$0xff] }
 0x18d   : > { %v1796_v31 = vpack.c.bf16 %v1249_v62, %v1245_v0  ;;  %3315 = vmatprep.subr.bf16.mxu1 %v1396_v55  ;;  %v1337_v6 = vpop.f32.mrf.mxu0  ;;  %v1394_v8 = vpack.c.bf16 %v1227_v32, %v1223_v40  ;;  %v1392_v40 = vpack.c.bf16 %v1207_v42, %v1203_v18 }
 0x18e   : > { %3316 = vmatpush3.bf16.xpose.msra.mxu1 %v1396_v55  ;;  %v1338_v4 = vadd.f32 %v1337_v6, %v4460_v57  ;;  %v1229_v55 = vadd.f32 %v1228_v52, %v4422_v46 }
 0x18f   : > { %3317 = vmatprep.subr.bf16.mxu1 %v1395_v23  ;;  %3379 = vmatprep.subr.bf16.mxu0 %v1796_v31  ;;  %v1339_v50 = vpop.f32.mrf.mxu0 }
 0x190   : > { %3380 = vmatpush3.bf16.xpose.msra.mxu0 %v1796_v31  ;;  %v1794_v31 = vpack.c.bf16 %v1229_v55, %v1225_v39  ;;  %v1340_v39 = vadd.f32 %v1339_v50, %v4457_v45 }
 0x191   : > { %3381 = vmatprep.subr.bf16.mxu0 %v1795_v56  ;;  %v1341_v34 = vpop.f32.mrf.mxu0 }
 0x192   : > { %v1342_v36 = vadd.f32 %v1341_v34, %v4460_v57  ;;  %v5583_v34 = vpack.c.bf16 %v4316_v35, %v4312_v33  ;;  %v1320_v33 = vadd.f32 %v4503_v63, %v4457_v45  ;;  %v5596_v63 = vld [vmem:[#allocation18_spill] sm:$0xff] }
 0x193   : > { %v1345_v49 = vpop.f32.mrf.mxu0 }
 0x194   : > { %v4534_v0 = vpack.c.bf16 %v1342_v36, %v1338_v4  ;;  %v1205_v4 = vadd.f32 %v4450_v25, %v4422_v46 }
 0x195   : > { %v1347_v52 = vpop.f32.mrf.mxu0 }
 0x196   : > { %3318 = vmatpush3.bf16.xpose.msra.mxu1 %v1395_v23  ;;  %v1348_v62 = vadd.f32 %v1347_v52, %v4460_v57  ;;  %v1792_v55 = vpack.c.bf16 %v1209_v37, %v1205_v4  ;;  %v5604_v52 = vld [vmem:[#allocation13_spill] sm:$0xff] }
 0x197   : > { %3319 = vmatprep.subr.bf16.mxu1 %v1394_v8  ;;  %v1349_v23 = vpop.f32.mrf.mxu0 }
 0x198   : > { %3382 = vmatpush3.bf16.xpose.msra.mxu0 %v1795_v56  ;;  %v1393_v56 = vpack.c.bf16 %v1217_v54, %v1213_v38  ;;  %v1350_v58 = vadd.f32 %v1349_v23, %v4457_v45 }
 0x199   : > { %3383 = vmatprep.subr.bf16.mxu0 %v1794_v31  ;;  %v1351_v26 = vpop.f32.mrf.mxu0 }
 0x19a   : > { %v1352_v32 = vadd.f32 %v1351_v26, %v4460_v57 }
 0x19b   : > { %v1355_v9 = vpop.f32.mrf.mxu0 }
 0x19c   : > { %v4546_v6 = vpack.c.bf16 %v1352_v32, %v1348_v62  ;;  %v1356_v20 = vadd.f32 %v1355_v9, %v4457_v45  ;;  %v5605_v62 = vld [vmem:[#allocation12_spill] sm:$0xff] }
 0x19d   : > { %v1357_v5 = vpop.f32.mrf.mxu0  ;;  %v5606_v38 = vpack.c.bf16 %v5604_v52, %v5605_v62 }
 0x19e   : > { %3320 = vmatpush3.bf16.xpose.msra.mxu1 %v1394_v8 }
 0x19f   : > { %3321 = vmatprep.subr.bf16.mxu1 %v1393_v56  ;;  %v1359_v46 = vpop.f32.mrf.mxu0 }
 0x1a0   : > { %3384 = vmatpush3.bf16.xpose.msra.mxu0 %v1794_v31  ;;  %v1360_v25 = vadd.f32 %v1359_v46, %v4457_v45  ;;  %v5601_v31 = vld [vmem:[#allocation11_spill] sm:$0xff] }
 0x1a1   : > { %3385 = vmatprep.subr.bf16.mxu0 %v1793_v22 }
 0x1a6   : > { %3322 = vmatpush3.bf16.xpose.msra.mxu1 %v1393_v56 }
 0x1a7   : > { %3323 = vmatprep.subr.bf16.mxu1 %v1392_v40 }
 0x1a8   : > { %3386 = vmatpush3.bf16.xpose.msra.mxu0 %v1793_v22 }
 0x1a9   : > { %3387 = vmatprep.subr.bf16.mxu0 %v1792_v55 }
 0x1ae   : > { %3324 = vmatpush3.bf16.xpose.msra.mxu1 %v1392_v40 }
 0x1af   : > { %3325 = vmatprep.subr.bf16.mxu1 %v4443_v16 }
 0x1b0   : > { %3388 = vmatpush3.bf16.xpose.msra.mxu0 %v1792_v55 }
 0x1b1   : > { %3389 = vmatprep.subr.bf16.mxu0 %v4448_v24 }
 0x1b6   : > { %3326 = vmatpush3.bf16.xpose.msra.mxu1 %v4443_v16  ;;  %v1404_v16 = vpack.c.bf16 %v1360_v25, %v1356_v20 }
 0x1b7   : > { %3327 = vmatprep.subr.bf16.mxu1 %v4435_v7 }
 0x1b8   : > { %3390 = vmatpush3.bf16.xpose.msra.mxu0 %v4448_v24  ;;  %v1346_v24 = vadd.f32 %v1345_v49, %v4457_v45  ;;  %v5602_v49 = vld [vmem:[#allocation10_spill] sm:$0xff] }
 0x1b9   : > { %3391 = vmatprep.subr.bf16.mxu0 %v4438_v53  ;;  %v5603_v54 = vpack.c.bf16 %v5601_v31, %v5602_v49 }
 0x1ba   : > { %v1403_v8 = vpack.c.bf16 %v1350_v58, %v1346_v24 }
 0x1be   : > { %3328 = vmatpush3.bf16.xpose.msra.mxu1 %v4435_v7  ;;  %v1336_v7 = vadd.f32 %v4522_v21, %v4457_v45  ;;  %v1330_v21 = vadd.f32 %v4518_v60, %v4457_v45  ;;  %v5600_v60 = vld [vmem:[#allocation16_spill] sm:$0xff] }
 0x1bf   : > { %3329 = vmatprep.subr.bf16.mxu1 %v4427_v15 }
 0x1c0   : > { %3392 = vmatpush3.bf16.xpose.msra.mxu0 %v4438_v53  ;;  %v5581_v53 = vpack.c.bf16 %v4309_v30, %v4307_v29  ;;  %v1402_v50 = vpack.c.bf16 %v1340_v39, %v1336_v7  ;;  %v5584_v29 = vpack.c.bf16 %v4332_v51, %v4328_v48  ;;  %v1316_v30 = vadd.f32 %v4498_v47, %v4457_v45  ;;  %v5593_v47 = vld [vmem:[#allocation5_spill] sm:$0xff] }
 0x1c1   : > { %3393 = vmatprep.subr.bf16.mxu0 %v4430_v11  ;;  %v5587_v48 = vpack.c.bf16 %v4348_v3, %v4344_v1  ;;  %v5594_v1 = vld [vmem:[#allocation4_spill] sm:$0xff] }
 0x1c2   : > { %v1400_v51 = vpack.c.bf16 %v1320_v33, %v1316_v30  ;;  %v5595_v3 = vpack.c.bf16 %v5593_v47, %v5594_v1 }
 0x1c6   : > { %3330 = vmatpush3.bf16.xpose.msra.mxu1 %v4427_v15  ;;  %v5582_v15 = vpack.c.bf16 %v4325_v44, %v4323_v43  ;;  %v5585_v43 = vpack.c.bf16 %v4341_v61, %v4339_v59  ;;  %v5586_v44 = vpack.c.bf16 %v4357_v13, %v4355_v12  ;;  %v5589_v59 = vpack.c.bf16 %v4373_v28, %v4371_v27  ;;  %v5590_v61 = vld [vmem:[#allocation7_spill] sm:$0xff]  ;;  %v5591_v12 = vld [vmem:[#allocation6_spill] sm:$0xff]  ;;  %v1361_v27 = vpop.f32.mrf.mxu0 }
 0x1c7   : > { %3347 = vmatprep.subr.bf16.mxu1 %v1404_v16  ;;  %v5592_v13 = vpack.c.bf16 %v5590_v61, %v5591_v12  ;;  %v1358_v28 = vadd.f32 %v1357_v5, %v4460_v57  ;;  %v1362_v36 = vadd.f32 %v1361_v27, %v4460_v57  ;;  %v4640_v57 = vld [vmem:[%s314_s25] ss:$0 sm:$0xff]  ;;  %s5423_s25 = scalar_lea.vmem %s5540_s8, %s3233_s29 }
 0x1c8   : > { %3394 = vmatpush3.bf16.xpose.msra.mxu0 %v4430_v11  ;;  %v1326_v11 = vadd.f32 %v4506_v41, %v4457_v45  ;;  %v5588_v45 = vpack.c.bf16 %v4364_v19, %v4360_v17  ;;  %v5597_v17 = vld [vmem:[#allocation9_spill] sm:$0xff]  ;;  %v5598_v19 = vld [vmem:[#allocation8_spill] sm:$0xff] }
 0x1c9   : > { %v5599_v41 = vpack.c.bf16 %v5597_v17, %v5598_v19  ;;  %v4632_v23 = vpack.c.bf16 %v1362_v36, %v1358_v28 }
 0x1ca   : > { %v1401_v35 = vpack.c.bf16 %v1330_v21, %v1326_v11 }
 0x1cd   : > { %3332 = vmatmul.mubr.bf16.vlgmr.msra.gmra.mxu1 %v5581_v53 }
 0x1ce   : > { %3335 = vmatprep.mubr.bf16.mxu1 %v5582_v15  ;;  %3348 = vmatpush3.bf16.msra.mxu1 %v1404_v16 }
 0x1cf   : > { %3396 = vmatmul.mubr.bf16.vlgmr.msra.gmra.mxu0 %v5583_v34  ;;  %3349 = vmatprep.subr.bf16.mxu1 %v1403_v8 }
 0x1d0   : > { %3399 = vmatprep.mubr.bf16.mxu0 %v5584_v29 }
 0x1d2   : > { %3350 = vmatpush3.bf16.msra.mxu1 %v1403_v8 }
 0x1d3   : > { %3351 = vmatprep.subr.bf16.mxu1 %v1402_v50 }
 0x1d5   : > { %3336 = vmatmul.mubr.bf16.gmra.mxu1 %v5585_v43 }
 0x1d6   : > { %3339 = vmatprep.mubr.bf16.mxu1 %v5586_v44  ;;  %3352 = vmatpush3.bf16.msra.mxu1 %v1402_v50 }
 0x1d7   : > { %3400 = vmatmul.mubr.bf16.gmra.mxu0 %v5587_v48  ;;  %3353 = vmatprep.subr.bf16.mxu1 %v1401_v35 }
 0x1d8   : > { %3403 = vmatprep.mubr.bf16.mxu0 %v5588_v45 }
 0x1da   : > { %3354 = vmatpush3.bf16.msra.mxu1 %v1401_v35 }
 0x1db   : > { %3355 = vmatprep.subr.bf16.mxu1 %v1400_v51 }
 0x1dd   : > { %3340 = vmatmul.mubr.bf16.gmra.mxu1 %v5589_v59 }
 0x1de   : > { %3343 = vmatprep.mubr.bf16.mxu1 %v5592_v13  ;;  %3356 = vmatpush3.bf16.msra.mxu1 %v1400_v51 }
 0x1df   : > { %3404 = vmatmul.mubr.bf16.gmra.mxu0 %v5595_v3  ;;  %3357 = vmatprep.subr.bf16.mxu1 %v5596_v63 }
 0x1e0   : > { %3407 = vmatprep.mubr.bf16.mxu0 %v5599_v41 }
 0x1e2   : > { %3358 = vmatpush3.bf16.msra.mxu1 %v5596_v63 }
 0x1e3   : > { %3359 = vmatprep.subr.bf16.mxu1 %v5600_v60 }
 0x1e5   : > { %3344 = vmatmul.mubr.bf16.gmra.mxu1 %v5603_v54 }
 0x1e6   : > { %3360 = vmatpush3.bf16.msra.mxu1 %v5600_v60 }
 0x1e7   : > { %3408 = vmatmul.mubr.bf16.gmra.mxu0 %v5606_v38  ;;  %3361 = vmatprep.subr.bf16.mxu1 %v5607_v2 }
 0x1ea   : > { %3362 = vmatpush3.bf16.msra.mxu1 %v5607_v2 }
 0x1eb   : > { %3411 = vmatprep.subr.bf16.mxu1 %v4632_v23 }
 0x28d   : > { %v3333_v14 = vpop.f32.mrf.mxu1 }
 0x28e   : > { %v4643_v56 = vadd.f32 %v3333_v14, %v4640_v57 }
 0x28f   : > { %v1445_v26 = vpop.f32.mrf.mxu1  ;;  %v3397_v32 = vpop.f32.mrf.mxu0 }
 0x290   : > { %v4646_v22 = vadd.f32 %v4640_v57, %v1445_v26  ;;  %1512 = vmax.xlane.f32.xlu1 %v4643_v56  ;;  %v4711_v3 = vadd.f32 %v3397_v32, %v4640_v57 }
 0x291   : > { %v3334_v42 = vpop.f32.mrf.mxu1  ;;  %v1839_v18 = vpop.f32.mrf.mxu0 }
 0x292   : > { %v4650_v37 = vadd.f32 %v3334_v42, %v4640_v57  ;;  %1508 = vmax.xlane.f32.xlu0 %v4646_v22  ;;  %v4703_v13 = vadd.f32 %v4640_v57, %v1839_v18 }
 0x293   : > { %v1448_v4 = vpop.f32.mrf.mxu1  ;;  %v3398_v55 = vpop.f32.mrf.mxu0 }
 0x294   : > { %v4654_v40 = vadd.f32 %v4640_v57, %v1448_v4  ;;  %1514 = vmax.xlane.f32.xlu1 %v4650_v37  ;;  %v4719_v19 = vadd.f32 %v3398_v55, %v4640_v57 }
 0x295   : > { %v3337_v9 = vpop.f32.mrf.mxu1  ;;  %v1842_v20 = vpop.f32.mrf.mxu0 }
 0x296   : > { %1510 = vmax.xlane.f32.xlu0 %v4654_v40  ;;  %v4663_v24 = vadd.f32 %v3337_v9, %v4640_v57  ;;  %v4714_v63 = vadd.f32 %v4640_v57, %v1842_v20 }
 0x297   : > { %v1461_v5 = vpop.f32.mrf.mxu1  ;;  %v3401_v7 = vpop.f32.mrf.mxu0 }
 0x298   : > { %v4659_v46 = vadd.f32 %v4640_v57, %v1461_v5  ;;  %v4727_v28 = vadd.f32 %v3401_v7, %v4640_v57 }
 0x299   : > { %v3338_v25 = vpop.f32.mrf.mxu1  ;;  %v1855_v34 = vpop.f32.mrf.mxu0 }
 0x29a   : > { %1516 = vmax.xlane.f32.xlu0 %v4659_v46  ;;  %v4671_v53 = vadd.f32 %v3338_v25, %v4640_v57  ;;  %v4722_v41 = vadd.f32 %v4640_v57, %v1855_v34 }
 0x29b   : > { %v1464_v16 = vpop.f32.mrf.mxu1  ;;  %v3402_v30 = vpop.f32.mrf.mxu0 }
 0x29c   : > { %v4666_v58 = vadd.f32 %v4640_v57, %v1464_v16  ;;  %v4735_v31 = vadd.f32 %v3402_v30, %v4640_v57 }
 0x29d   : > { %v3341_v39 = vpop.f32.mrf.mxu1  ;;  %v1858_v48 = vpop.f32.mrf.mxu0 }
 0x29e   : > { %1518 = vmax.xlane.f32.xlu1 %v4666_v58  ;;  %1520 = vmax.xlane.f32.xlu0 %v4663_v24  ;;  %v4679_v50 = vadd.f32 %v3341_v39, %v4640_v57  ;;  %v4730_v60 = vadd.f32 %v4640_v57, %v1858_v48 }
 0x29f   : > { %v1477_v8 = vpop.f32.mrf.mxu1  ;;  %v3405_v12 = vpop.f32.mrf.mxu0 }
 0x2a0   : > { %v4674_v15 = vadd.f32 %v4640_v57, %v1477_v8  ;;  %v4743_v52 = vadd.f32 %v3405_v12, %v4640_v57 }
 0x2a1   : > { %v3342_v11 = vpop.f32.mrf.mxu1  ;;  %v1871_v1 = vpop.f32.mrf.mxu0 }
 0x2a2   : > { %1522 = vmax.xlane.f32.xlu1 %v4671_v53  ;;  %1524 = vmax.xlane.f32.xlu0 %v4674_v15  ;;  %v4687_v43 = vadd.f32 %v3342_v11, %v4640_v57  ;;  %v4738_v49 = vadd.f32 %v4640_v57, %v1871_v1 }
 0x2a3   : > { %v1480_v21 = vpop.f32.mrf.mxu1  ;;  %v3406_v17 = vpop.f32.mrf.mxu0 }
 0x2a4   : > { %v4682_v29 = vadd.f32 %v4640_v57, %v1480_v21  ;;  %v4751_v2 = vadd.f32 %v3406_v17, %v4640_v57 }
 0x2a5   : > { %v3345_v33 = vpop.f32.mrf.mxu1  ;;  %v1874_v27 = vpop.f32.mrf.mxu0 }
 0x2a6   : > { %1526 = vmax.xlane.f32.xlu1 %v4682_v29  ;;  %1528 = vmax.xlane.f32.xlu0 %v4679_v50  ;;  %v4695_v59 = vadd.f32 %v3345_v33, %v4640_v57  ;;  %v4746_v62 = vadd.f32 %v4640_v57, %v1874_v27 }
 0x2a7   : > { %v1493_v35 = vpop.f32.mrf.mxu1  ;;  %v3409_v36 = vpop.f32.mrf.mxu0 }
 0x2a8   : > { %v4690_v44 = vadd.f32 %v4640_v57, %v1493_v35  ;;  %v4759_v32 = vadd.f32 %v3409_v36, %v4640_v57 }
 0x2a9   : > { %v3346_v51 = vpop.f32.mrf.mxu1  ;;  %v1887_v54 = vpop.f32.mrf.mxu0 }
 0x2aa   : > { %1530 = vmax.xlane.f32.xlu1 %v4687_v43  ;;  %1532 = vmax.xlane.f32.xlu0 %v4690_v44  ;;  %v4706_v47 = vadd.f32 %v3346_v51, %v4640_v57  ;;  %v4754_v14 = vadd.f32 %v4640_v57, %v1887_v54 }
 0x2ab   : > { %v1496_v45 = vpop.f32.mrf.mxu1  ;;  %v3410_v38 = vpop.f32.mrf.mxu0 }
 0x2ac   : > { %v4698_v61 = vadd.f32 %v4640_v57, %v1496_v45  ;;  %v4767_v18 = vadd.f32 %v3410_v38, %v4640_v57 }
 0x2ad   : > { %v1890_v26 = vpop.f32.mrf.mxu0 }
 0x2ae   : > { %1534 = vmax.xlane.f32.xlu1 %v4698_v61  ;;  %1536 = vmax.xlane.f32.xlu0 %v4695_v59  ;;  %v4762_v42 = vadd.f32 %v4640_v57, %v1890_v26 }
 0x2b2   : > { %1538 = vmax.xlane.f32.xlu1 %v4706_v47  ;;  %1902 = vmax.xlane.f32.xlu0 %v4703_v13 }
 0x2b6   : > { %1904 = vmax.xlane.f32.xlu1 %v4714_v63  ;;  %1906 = vmax.xlane.f32.xlu0 %v4711_v3 }
 0x2ba   : > { %1908 = vmax.xlane.f32.xlu1 %v4719_v19  ;;  %1910 = vmax.xlane.f32.xlu0 %v4722_v41 }
 0x2be   : > { %1912 = vmax.xlane.f32.xlu1 %v4730_v60  ;;  %1914 = vmax.xlane.f32.xlu0 %v4727_v28 }
 0x2c2   : > { %1916 = vmax.xlane.f32.xlu1 %v4735_v31  ;;  %1918 = vmax.xlane.f32.xlu0 %v4738_v49 }
 0x2c6   : > { %1920 = vmax.xlane.f32.xlu1 %v4746_v62  ;;  %1922 = vmax.xlane.f32.xlu0 %v4743_v52 }
 0x2ca   : > { %1924 = vmax.xlane.f32.xlu1 %v4751_v2  ;;  %1926 = vmax.xlane.f32.xlu0 %v4754_v14 }
 0x2ce   : > { %1928 = vmax.xlane.f32.xlu1 %v4762_v42  ;;  %1930 = vmax.xlane.f32.xlu0 %v4759_v32 }
 0x2d2   : > { %1932 = vmax.xlane.f32.xlu1 %v4767_v18 }
 0x319   : > { %v1513_v4 = vpop.xlane.xlu1 %1512 }
 0x31a   : > { %v1542_v5 = vsub.f32 %v4643_v56, %v1513_v4 }
 0x31b   : > { %v1509_v55 = vpop.xlane.xlu0 %1508 }
 0x31c   : > { %v1540_v9 = vsub.f32 %v4646_v22, %v1509_v55  ;;  %v1560_v34 = vmul.f32 1.442695, %v1542_v5 }
 0x31d   : > { %v1515_v20 = vpop.xlane.xlu1 %1514 }
 0x31e   : > { %v1556_v25 = vmul.f32 1.442695, %v1540_v9  ;;  %v1543_v16 = vsub.f32 %v4650_v37, %v1515_v20 }
 0x31f   : > { %v1511_v7 = vpop.xlane.xlu0 %1510 }
 0x320   : > { %v1562_v39 = vmul.f32 1.442695, %v1543_v16  ;;  %v1541_v8 = vsub.f32 %v4654_v40, %v1511_v7  ;;  %3659 = vpow2.f32 %v1556_v25 }
 0x322   : > { %v1558_v57 = vmul.f32 1.442695, %v1541_v8  ;;  %3661 = vpow2.f32 %v1562_v39 }
 0x323   : > { %v1517_v11 = vpop.xlane.xlu0 %1516 }
 0x324   : > { %3663 = vpow2.f32 %v1558_v57  ;;  %v1544_v21 = vsub.f32 %v4659_v46, %v1517_v11 }
 0x325   : > { %3665 = vpow2.f32 %v1560_v34 }
 0x326   : > { %v1564_v22 = vmul.f32 1.442695, %v1544_v21 }
 0x327   : > { %v1519_v30 = vpop.xlane.xlu1 %1518  ;;  %v1521_v56 = vpop.xlane.xlu0 %1520 }
 0x328   : > { %v1545_v33 = vsub.f32 %v4666_v58, %v1519_v30  ;;  %v1546_v37 = vsub.f32 %v4663_v24, %v1521_v56  ;;  %3667 = vpow2.f32 %v1564_v22 }
 0x32a   : > { %v1566_v35 = vmul.f32 1.442695, %v1545_v33  ;;  %v1568_v48 = vmul.f32 1.442695, %v1546_v37 }
 0x32b   : > { %v1523_v40 = vpop.xlane.xlu1 %1522  ;;  %v1525_v51 = vpop.xlane.xlu0 %1524 }
 0x32c   : > { %3669 = vpow2.f32 %v1566_v35  ;;  %v1547_v45 = vsub.f32 %v4671_v53, %v1523_v40  ;;  %v1548_v12 = vsub.f32 %v4674_v15, %v1525_v51 }
 0x32d   : > { %v4779_v46 = vpop.eup %3659  ;;  %3671 = vpow2.f32 %v1568_v48 }
 0x32e   : > { %v1570_v1 = vmul.f32 1.442695, %v1547_v45  ;;  %v1572_v17 = vmul.f32 1.442695, %v1548_v12  ;;  %v5608_v12 = vld [vmem:[#allocation20_spill] sm:$0xff] }
 0x32f   : > { %v1527_v27 = vpop.xlane.xlu1 %1526  ;;  %v1529_v36 = vpop.xlane.xlu0 %1528 }
 0x330   : > { %v4781_v58 = vpop.eup %3661  ;;  %3673 = vpow2.f32 %v1570_v1  ;;  %v1549_v24 = vsub.f32 %v4682_v29, %v1527_v27  ;;  %v1550_v54 = vsub.f32 %v4679_v50, %v1529_v36 }
 0x331   : > { %v4785_v38 = vpop.eup %3663  ;;  %3675 = vpow2.f32 %v1572_v17 }
 0x332   : > { %v4787_v26 = vpop.eup %3665  ;;  %v1574_v53 = vmul.f32 1.442695, %v1549_v24  ;;  %v1636_v15 = vpack.c.bf16 %v4785_v38, %v4779_v46  ;;  %v1576_v4 = vmul.f32 1.442695, %v1550_v54 }
 0x333   : > { %v1531_v55 = vpop.xlane.xlu1 %1530  ;;  %v1533_v9 = vpop.xlane.xlu0 %1532  ;;  %v1637_v5 = vpack.c.bf16 %v4781_v58, %v4787_v26 }
 0x334   : > { %3677 = vpow2.f32 %v1574_v53  ;;  %v1551_v29 = vsub.f32 %v4687_v43, %v1531_v55  ;;  %v1552_v50 = vsub.f32 %v4690_v44, %v1533_v9  ;;  %3363 = vmatprep.mubr.bf16.mxu1 %v1636_v15  ;;  %v5609_v53 = vld [vmem:[#allocation19_spill] sm:$0xff] }
 0x335   : > { %3364 = vmatmul.mubr.bf16.vlgmr.msra.gmra.mxu1 %v1637_v5  ;;  %3679 = vpow2.f32 %v1576_v4  ;;  %v4797_v39 = vpop.eup %3667 }
 0x336   : > { %v1578_v20 = vmul.f32 1.442695, %v1551_v29  ;;  %3412 = vmatpush3.bf16.msra.mxu1 %v4632_v23  ;;  %v1580_v25 = vmul.f32 1.442695, %v1552_v50 }
 0x337   : > { %3413 = vmatprep.subr.bf16.mxu1 %v4546_v6  ;;  %v1535_v16 = vpop.xlane.xlu1 %1534  ;;  %v1537_v7 = vpop.xlane.xlu0 %1536 }
 0x338   : > { %3681 = vpow2.f32 %v1578_v20  ;;  %v1553_v8 = vsub.f32 %v4698_v61, %v1535_v16  ;;  %v1554_v43 = vsub.f32 %v4695_v59, %v1537_v7  ;;  %v5610_v20 = vld [vmem:[#allocation17_spill] sm:$0xff] }
 0x339   : > { %v4801_v34 = vpop.eup %3669  ;;  %3683 = vpow2.f32 %v1580_v25 }
 0x33a   : > { %v1582_v44 = vmul.f32 1.442695, %v1553_v8  ;;  %3414 = vmatpush3.bf16.msra.mxu1 %v4546_v6  ;;  %v1638_v23 = vpack.c.bf16 %v4801_v34, %v4797_v39  ;;  %v1584_v57 = vmul.f32 1.442695, %v1554_v43  ;;  %v4807_v22 = vpop.eup %3671 }
 0x33b   : > { %3415 = vmatprep.subr.bf16.mxu1 %v4534_v0  ;;  %v1539_v11 = vpop.xlane.xlu1 %1538  ;;  %v1903_v21 = vpop.xlane.xlu0 %1902 }
 0x33c   : > { %3685 = vpow2.f32 %v1582_v44  ;;  %v1555_v61 = vsub.f32 %v4706_v47, %v1539_v11  ;;  %v1934_v59 = vsub.f32 %v4703_v13, %v1903_v21  ;;  %3367 = vmatprep.mubr.bf16.mxu1 %v1638_v23  ;;  %v5611_v11 = vld [vmem:[#allocation15_spill] sm:$0xff] }
 0x33d   : > { %v4811_v30 = vpop.eup %3673  ;;  %3687 = vpow2.f32 %v1584_v57 }
 0x33e   : > { %v1586_v6 = vmul.f32 1.442695, %v1555_v61  ;;  %v1950_v56 = vmul.f32 1.442695, %v1934_v59  ;;  %3416 = vmatpush3.bf16.msra.mxu1 %v4534_v0  ;;  %v1639_v33 = vpack.c.bf16 %v4811_v30, %v4807_v22  ;;  %v4817_v48 = vpop.eup %3675 }
 0x33f   : > { %3417 = vmatprep.subr.bf16.mxu1 %v4524_v10  ;;  %v1905_v37 = vpop.xlane.xlu1 %1904  ;;  %v1907_v35 = vpop.xlane.xlu0 %1906 }
 0x340   : > { %3689 = vpow2.f32 %v1586_v6  ;;  %v1935_v13 = vsub.f32 %v4714_v63, %v1905_v37  ;;  %v1936_v47 = vsub.f32 %v4711_v3, %v1907_v35  ;;  %3368 = vmatmul.mubr.bf16.gmra.mxu1 %v1639_v33 }
 0x341   : > { %v4821_v40 = vpop.eup %3677  ;;  %3691 = vpow2.f32 %v1950_v56 }
 0x342   : > { %v1952_v0 = vmul.f32 1.442695, %v1935_v13  ;;  %3418 = vmatpush3.bf16.msra.mxu1 %v4524_v10  ;;  %v1640_v51 = vpack.c.bf16 %v4821_v40, %v4817_v48  ;;  %v1954_v45 = vmul.f32 1.442695, %v1936_v47  ;;  %v4827_v27 = vpop.eup %3679 }
 0x343   : > { %3419 = vmatprep.subr.bf16.mxu1 %v5608_v12  ;;  %v1909_v1 = vpop.xlane.xlu1 %1908  ;;  %v1911_v17 = vpop.xlane.xlu0 %1910 }
 0x344   : > { %3693 = vpow2.f32 %v1952_v0  ;;  %v1937_v3 = vsub.f32 %v4719_v19, %v1909_v1  ;;  %v1938_v63 = vsub.f32 %v4722_v41, %v1911_v17  ;;  %3371 = vmatprep.mubr.bf16.mxu1 %v1640_v51 }
 0x345   : > { %v4831_v36 = vpop.eup %3681  ;;  %3695 = vpow2.f32 %v1954_v45 }
 0x346   : > { %v1956_v24 = vmul.f32 1.442695, %v1937_v3  ;;  %3420 = vmatpush3.bf16.msra.mxu1 %v5608_v12  ;;  %v1641_v10 = vpack.c.bf16 %v4831_v36, %v4827_v27  ;;  %v1958_v54 = vmul.f32 1.442695, %v1938_v63  ;;  %v4837_v55 = vpop.eup %3683 }
 0x347   : > { %3421 = vmatprep.subr.bf16.mxu1 %v5609_v53  ;;  %v1913_v15 = vpop.xlane.xlu1 %1912  ;;  %v1915_v4 = vpop.xlane.xlu0 %1914 }
 0x348   : > { %3697 = vpow2.f32 %v1956_v24  ;;  %v1939_v19 = vsub.f32 %v4730_v60, %v1913_v15  ;;  %v1940_v41 = vsub.f32 %v4727_v28, %v1915_v4  ;;  %3372 = vmatmul.mubr.bf16.gmra.mxu1 %v1641_v10 }
 0x349   : > { %v4841_v9 = vpop.eup %3685  ;;  %3699 = vpow2.f32 %v1958_v54 }
 0x34a   : > { %v1960_v5 = vmul.f32 1.442695, %v1939_v19  ;;  %3422 = vmatpush3.bf16.msra.mxu1 %v5609_v53  ;;  %v1642_v29 = vpack.c.bf16 %v4841_v9, %v4837_v55  ;;  %v1962_v50 = vmul.f32 1.442695, %v1940_v41  ;;  %v4847_v7 = vpop.eup %3687 }
 0x34b   : > { %3423 = vmatprep.subr.bf16.mxu1 %v5610_v20  ;;  %v1917_v25 = vpop.xlane.xlu1 %1916  ;;  %v1919_v16 = vpop.xlane.xlu0 %1918 }
 0x34c   : > { %3701 = vpow2.f32 %v1960_v5  ;;  %v1941_v28 = vsub.f32 %v4735_v31, %v1917_v25  ;;  %v1942_v60 = vsub.f32 %v4738_v49, %v1919_v16  ;;  %3375 = vmatprep.mubr.bf16.mxu1 %v1642_v29 }
 0x34d   : > { %v4851_v8 = vpop.eup %3689  ;;  %3703 = vpow2.f32 %v1962_v50  ;;  %v3614_v50 = vld [vmem:[%s5535_s3 + $0x60] ss:$8 sps:$4 sm:$0xff]  }
 0x34e   : > { %v3692_v43 = vpop.eup %3691  ;;  %v1964_v44 = vmul.f32 1.442695, %v1941_v28  ;;  %3424 = vmatpush3.bf16.msra.mxu1 %v5610_v20  ;;  %v1643_v23 = vpack.c.bf16 %v4851_v8, %v4847_v7  ;;  %v1966_v57 = vmul.f32 1.442695, %v1942_v60  ;;  %v3617_v28 = vld [vmem:[%s5535_s3 + $0x50] ss:$8 sps:$4 sm:$0xff]  }
 0x34f   : > { %3425 = vmatprep.subr.bf16.mxu1 %v5611_v11  ;;  %1982 = vadd.xlane.f32.xlu0 %v3692_v43  ;;  %v1921_v21 = vpop.xlane.xlu1 %1920  ;;  %v1923_v61 = vpop.xlane.xlu0 %1922 }
 0x350   : > { %3705 = vpow2.f32 %v1964_v44  ;;  %v1943_v31 = vsub.f32 %v4746_v62, %v1921_v21  ;;  %v1944_v49 = vsub.f32 %v4743_v52, %v1923_v61  ;;  %3376 = vmatmul.mubr.bf16.gmra.mxu1 %v1643_v23  ;;  %v3620_v44 = vld [vmem:[%s5535_s3 + $0x40] ss:$8 sps:$4 sm:$0xff]   ;;  %v3623_v23 = vld [vmem:[%s5535_s3 + $0x30] ss:$8 sps:$4 sm:$0xff]   ;;  %v3634_v21 = vld [vmem:[%s5535_s3 + $0x4] ss:$8 sps:$4 sm:$0xff]  }
 0x351   : > { %v3694_v59 = vpop.eup %3693  ;;  %3707 = vpow2.f32 %v1966_v57  ;;  %v3628_v57 = vld [vmem:[%s5535_s3 + $0x24] ss:$8 sps:$4 sm:$0xff]   ;;  %v3637_v61 = vld [vmem:[%s5535_s3 + $0xf4] ss:$8 sps:$4 sm:$0xff]  }
 0x352   : > { %v1968_v6 = vmul.f32 1.442695, %v1943_v31  ;;  %3426 = vmatpush3.bf16.msra.mxu1 %v5611_v11  ;;  %1984 = vadd.xlane.f32.xlu1 %v3694_v59  ;;  %v2030_v56 = vpack.c.bf16 %v3694_v59, %v3692_v43  ;;  %v1970_v33 = vmul.f32 1.442695, %v1944_v49  ;;  %v3696_v13 = vpop.eup %3695  ;;  %v3631_v11 = vld [vmem:[%s5535_s3 + $0x14] ss:$8 sps:$4 sm:$0xff]  }
 0x353   : > { %1588 = vadd.xlane.f32.xlu0 %v4779_v46  ;;  %v1925_v37 = vpop.xlane.xlu1 %1924  ;;  %v1927_v35 = vpop.xlane.xlu0 %1926  ;;  %v3640_v31 = vld [vmem:[%s5535_s3 + $0xe4] ss:$8 sps:$4 sm:$0xff]   ;;  %v3643_v49 = vld [vmem:[%s5535_s3 + $0xd4] ss:$8 sps:$4 sm:$0xff]  }
 0x354   : > { %3709 = vpow2.f32 %v1968_v6  ;;  %v1945_v47 = vsub.f32 %v4751_v2, %v1925_v37  ;;  %v1946_v62 = vsub.f32 %v4754_v14, %v1927_v35  ;;  %3427 = vmatprep.mubr.bf16.mxu1 %v2030_v56  ;;  %v3646_v59 = vld [vmem:[%s5535_s3 + $0xc4] ss:$8 sps:$4 sm:$0xff]   ;;  %v3649_v6 = vld [vmem:[%s5535_s3 + $0xb4] ss:$8 sps:$4 sm:$0xff]   ;;  %v3647_v56 = vld [vmem:[%s5535_s3 + $0xb0] ss:$8 sps:$4 sm:$0xff]  }
 0x355   : > { %v3698_v52 = vpop.eup %3697  ;;  %3711 = vpow2.f32 %v1970_v33  ;;  %v3650_v33 = vld [vmem:[%s5535_s3 + $0xa0] ss:$8 sps:$4 sm:$0xff]   ;;  %v3655_v37 = vld [vmem:[%s5535_s3 + $0x94] ss:$8 sps:$4 sm:$0xff]   ;;  %v3653_v35 = vld [vmem:[%s5535_s3 + $0x90] ss:$8 sps:$4 sm:$0xff]  }
 0x356   : > { %v1972_v0 = vmul.f32 1.442695, %v1945_v47  ;;  %1590 = vadd.xlane.f32.xlu1 %v4785_v38  ;;  %v2031_v51 = vpack.c.bf16 %v3698_v52, %v3696_v13  ;;  %v1974_v45 = vmul.f32 1.442695, %v1946_v62  ;;  %v3700_v46 = vpop.eup %3699  ;;  %v3656_v47 = vld [vmem:[%s5535_s3 + $0x80] ss:$8 sps:$4 sm:$0xff]  }
 0x357   : > { %1986 = vadd.xlane.f32.xlu0 %v3696_v13  ;;  %v1929_v12 = vpop.xlane.xlu1 %1928  ;;  %v1931_v1 = vpop.xlane.xlu0 %1930  ;;  %v3658_v13 = vld [vmem:[%s5535_s3 + $0x84] ss:$8 sps:$4 sm:$0xff]  }
 0x358   : > { %3713 = vpow2.f32 %v1972_v0  ;;  %v1947_v17 = vsub.f32 %v4762_v42, %v1929_v12  ;;  %v1948_v3 = vsub.f32 %v4759_v32, %v1931_v1  ;;  %3428 = vmatmul.mubr.bf16.vlgmr.msra.gmra.mxu1 %v2031_v51 }
 0x359   : > { %v3702_v2 = vpop.eup %3701  ;;  %3715 = vpow2.f32 %v1974_v45 }
 0x35a   : > { %v1976_v14 = vmul.f32 1.442695, %v1947_v17  ;;  %1988 = vadd.xlane.f32.xlu1 %v3698_v52  ;;  %v2032_v63 = vpack.c.bf16 %v3702_v2, %v3700_v46  ;;  %v1978_v24 = vmul.f32 1.442695, %v1948_v3  ;;  %v3704_v10 = vpop.eup %3703 }
 0x35b   : > { %1592 = vadd.xlane.f32.xlu0 %v4787_v26  ;;  %v1933_v38 = vpop.xlane.xlu1 %1932 }
 0x35c   : > { %3717 = vpow2.f32 %v1976_v14  ;;  %v1949_v54 = vsub.f32 %v4767_v18, %v1933_v38  ;;  %3431 = vmatprep.mubr.bf16.mxu1 %v2032_v63  ;;  %v3613_v18 = vld [vmem:[%s5535_s3 + $0x74] ss:$8 sps:$4 sm:$0xff]  }
 0x35d   : > { %v3706_v53 = vpop.eup %3705  ;;  %3719 = vpow2.f32 %v1978_v24  ;;  %2363 = vmatprep.subr.bf16.mxu0 %v3613_v18 }
 0x35e   : > { %v1980_v15 = vmul.f32 1.442695, %v1949_v54  ;;  %1594 = vadd.xlane.f32.xlu1 %v4781_v58  ;;  %v2033_v32 = vpack.c.bf16 %v3706_v53, %v3704_v10  ;;  %v3708_v42 = vpop.eup %3707  ;;  %v3611_v58 = vld [vmem:[%s5535_s3 + $0x70] ss:$8 sps:$4 sm:$0xff]  }
 0x35f   : > { %1990 = vadd.xlane.f32.xlu0 %v3700_v46  ;;  %2364 = vmatpush1.bf16.msra.mxu0 %v3611_v58 }
 0x360   : > { %3721 = vpow2.f32 %v1980_v15  ;;  %3432 = vmatmul.mubr.bf16.gmra.mxu1 %v2033_v32 }
 0x361   : > { %v3710_v4 = vpop.eup %3709 }
 0x362   : > { %1992 = vadd.xlane.f32.xlu1 %v3702_v2  ;;  %v2034_v19 = vpack.c.bf16 %v3710_v4, %v3708_v42  ;;  %v3712_v26 = vpop.eup %3711 }
 0x363   : > { %1596 = vadd.xlane.f32.xlu0 %v4797_v39  ;;  %v3616_v39 = vld [vmem:[%s5535_s3 + $0x64] ss:$8 sps:$4 sm:$0xff]  }
 0x364   : > { %3435 = vmatprep.mubr.bf16.mxu1 %v2034_v19  ;;  %2365 = vmatprep.subr.bf16.mxu0 %v3616_v39 }
 0x365   : > { %v3714_v41 = vpop.eup %3713  ;;  %2366 = vmatpush1.bf16.msra.mxu0 %v3614_v50 }
 0x366   : > { %1598 = vadd.xlane.f32.xlu1 %v4801_v34  ;;  %v2035_v5 = vpack.c.bf16 %v3714_v41, %v3712_v26  ;;  %v3716_v29 = vpop.eup %3715  ;;  %v3619_v34 = vld [vmem:[%s5535_s3 + $0x54] ss:$8 sps:$4 sm:$0xff]  }
 0x367   : > { %1994 = vadd.xlane.f32.xlu0 %v3704_v10  ;;  %2367 = vmatprep.subr.bf16.mxu0 %v3619_v34 }
 0x368   : > { %3436 = vmatmul.mubr.bf16.gmra.mxu1 %v2035_v5 }
 0x369   : > { %v3718_v20 = vpop.eup %3717  ;;  %2368 = vmatpush1.bf16.msra.mxu0 %v3617_v28 }
 0x36a   : > { %1996 = vadd.xlane.f32.xlu1 %v3706_v53  ;;  %v2036_v25 = vpack.c.bf16 %v3718_v20, %v3716_v29  ;;  %v3720_v16 = vpop.eup %3719 }
 0x36b   : > { %1600 = vadd.xlane.f32.xlu0 %v4807_v22  ;;  %v3622_v22 = vld [vmem:[%s5535_s3 + $0x44] ss:$8 sps:$4 sm:$0xff]  }
 0x36c   : > { %3439 = vmatprep.mubr.bf16.mxu1 %v2036_v25  ;;  %2369 = vmatprep.subr.bf16.mxu0 %v3622_v22 }
 0x36d   : > { %v3722_v60 = vpop.eup %3721  ;;  %2370 = vmatpush1.bf16.msra.mxu0 %v3620_v44 }
 0x36e   : > { %1602 = vadd.xlane.f32.xlu1 %v4811_v30  ;;  %v2037_v43 = vpack.c.bf16 %v3722_v60, %v3720_v16  ;;  %v3625_v30 = vld [vmem:[%s5535_s3 + $0x34] ss:$8 sps:$4 sm:$0xff]  }
 0x36f   : > { %1998 = vadd.xlane.f32.xlu0 %v3708_v42  ;;  %2371 = vmatprep.subr.bf16.mxu0 %v3625_v30 }
 0x370   : > { %3440 = vmatmul.mubr.bf16.gmra.mxu1 %v2037_v43 }
 0x371   : > { %2372 = vmatpush1.bf16.msra.mxu0 %v3623_v23 }
 0x372   : > { %2000 = vadd.xlane.f32.xlu1 %v3710_v4  ;;  %2373 = vmatprep.subr.bf16.mxu0 %v3628_v57 }
 0x373   : > { %1604 = vadd.xlane.f32.xlu0 %v4817_v48  ;;  %v3626_v48 = vld [vmem:[%s5535_s3 + $0x20] ss:$8 sps:$4 sm:$0xff]  }
 0x375   : > { %2374 = vmatpush1.bf16.msra.mxu0 %v3626_v48 }
 0x376   : > { %1606 = vadd.xlane.f32.xlu1 %v4821_v40  ;;  %v3629_v40 = vld [vmem:[%s5535_s3 + $0x10] ss:$8 sps:$4 sm:$0xff]   ;;  %2375 = vmatprep.subr.bf16.mxu0 %v3631_v11 }
 0x377   : > { %2002 = vadd.xlane.f32.xlu0 %v3712_v26 }
 0x379   : > { %2376 = vmatpush1.bf16.msra.mxu0 %v3629_v40 }
 0x37a   : > { %2004 = vadd.xlane.f32.xlu1 %v3714_v41  ;;  %2377 = vmatprep.subr.bf16.mxu0 %v3634_v21 }
 0x37b   : > { %1608 = vadd.xlane.f32.xlu0 %v4827_v27  ;;  %v3632_v27 = vld [vmem:[%s5535_s3] ss:$8 sps:$4 sm:$0xff]  }
 0x37d   : > { %2378 = vmatpush1.bf16.msra.mxu0 %v3632_v27 }
 0x37e   : > { %1610 = vadd.xlane.f32.xlu1 %v4831_v36  ;;  %v3635_v36 = vld [vmem:[%s5535_s3 + $0xf0] ss:$8 sps:$4 sm:$0xff]   ;;  %2379 = vmatprep.subr.bf16.mxu0 %v3637_v61 }
 0x37f   : > { %2006 = vadd.xlane.f32.xlu0 %v3716_v29 }
 0x381   : > { %2380 = vmatpush2.bf16.msra.mxu0 %v3635_v36 }
 0x382   : > { %2008 = vadd.xlane.f32.xlu1 %v3718_v20  ;;  %2381 = vmatprep.subr.bf16.mxu0 %v3640_v31 }
 0x383   : > { %1612 = vadd.xlane.f32.xlu0 %v4837_v55  ;;  %v3638_v55 = vld [vmem:[%s5535_s3 + $0xe0] ss:$8 sps:$4 sm:$0xff]  }
 0x385   : > { %2382 = vmatpush2.bf16.msra.mxu0 %v3638_v55 }
 0x386   : > { %1614 = vadd.xlane.f32.xlu1 %v4841_v9  ;;  %v3641_v9 = vld [vmem:[%s5535_s3 + $0xd0] ss:$8 sps:$4 sm:$0xff]   ;;  %2383 = vmatprep.subr.bf16.mxu0 %v3643_v49 }
 0x387   : > { %2010 = vadd.xlane.f32.xlu0 %v3720_v16 }
 0x389   : > { %2384 = vmatpush2.bf16.msra.mxu0 %v3641_v9 }
 0x38a   : > { %2012 = vadd.xlane.f32.xlu1 %v3722_v60  ;;  %2385 = vmatprep.subr.bf16.mxu0 %v3646_v59 }
 0x38b   : > { %1616 = vadd.xlane.f32.xlu0 %v4847_v7  ;;  %v3644_v7 = vld [vmem:[%s5535_s3 + $0xc0] ss:$8 sps:$4 sm:$0xff]  }
 0x38d   : > { %2386 = vmatpush2.bf16.msra.mxu0 %v3644_v7 }
 0x38e   : > { %1618 = vadd.xlane.f32.xlu1 %v4851_v8  ;;  %2387 = vmatprep.subr.bf16.mxu0 %v3649_v6  ;;  %v3652_v8 = vld [vmem:[%s5535_s3 + $0xa4] ss:$8 sps:$4 sm:$0xff]  }
 0x391   : > { %2388 = vmatpush2.bf16.msra.mxu0 %v3647_v56 }
 0x392   : > { %2389 = vmatprep.subr.bf16.mxu0 %v3652_v8 }
 0x395   : > { %2390 = vmatpush2.bf16.msra.mxu0 %v3650_v33 }
 0x396   : > { %2391 = vmatprep.subr.bf16.mxu0 %v3655_v37 }
 0x399   : > { %2392 = vmatpush2.bf16.msra.mxu0 %v3653_v35 }
 0x39a   : > { %2393 = vmatprep.subr.bf16.mxu0 %v3658_v13 }
 0x39d   : > { %2394 = vmatpush2.bf16.msra.mxu0 %v3656_v47 }
 0x3d8   : > { %v1983_v62 = vpop.xlane.xlu0 %1982 }
 0x3d9   : > { %3723 = vrcp.f32 %v1983_v62 }
 0x3db   : > { %v1985_v52 = vpop.xlane.xlu1 %1984 }
 0x3dc   : > { %v1589_v0 = vpop.xlane.xlu0 %1588  ;;  %3725 = vrcp.f32 %v1985_v52 }
 0x3df   : > { %v1591_v51 = vpop.xlane.xlu1 %1590 }
 0x3e0   : > { %v1987_v45 = vpop.xlane.xlu0 %1986  ;;  %3727 = vrcp.f32 %v1591_v51 }
 0x3e3   : > { %v1989_v12 = vpop.xlane.xlu1 %1988 }
 0x3e4   : > { %v1593_v1 = vpop.xlane.xlu0 %1592  ;;  %3729 = vrcp.f32 %v1989_v12 }
 0x3e5   : > { %3731 = vrcp.f32 %v1589_v0 }
 0x3e6   : > { %3733 = vrcp.f32 %v1987_v45  ;;  %v3724_v31 = vpop.eup %3723 }
 0x3e7   : > { %v1595_v46 = vpop.xlane.xlu1 %1594 }
 0x3e8   : > { %v1991_v17 = vpop.xlane.xlu0 %1990 }
 0x3e9   : > { %v3726_v55 = vpop.eup %3725 }
 0x3eb   : > { %v1993_v3 = vpop.xlane.xlu1 %1992 }
 0x3ec   : > { %v4977_v2 = vpop.xlane.xlu0 %1596 }
 0x3ed   : > { %v3728_v9 = vpop.eup %3727 }
 0x3ef   : > { %v1599_v14 = vpop.xlane.xlu1 %1598 }
 0x3f0   : > { %v4979_v63 = vpop.xlane.xlu0 %1994 }
 0x3f1   : > { %v3730_v59 = vpop.eup %3729 }
 0x3f2   : > { %v3732_v56 = vpop.eup %3731 }
 0x3f3   : > { %v4981_v24 = vpop.xlane.xlu1 %1996  ;;  %v3734_v35 = vpop.eup %3733 }
 0x3f4   : > { %v4983_v38 = vpop.xlane.xlu0 %1600 }
 0x3f5   : > { %v4985_v10 = vpop.f32.mrf.mxu1 }
 0x3f7   : > { %v4987_v54 = vpop.xlane.xlu1 %1602  ;;  %v1678_v53 = vpop.f32.mrf.mxu1 }
 0x3f8   : > { %v4989_v15 = vpop.xlane.xlu0 %1998  ;;  %v1741_v13 = vmul.f32 %v3732_v56, %v1678_v53 }
 0x3f9   : > { %v4991_v32 = vpop.f32.mrf.mxu1 }
 0x3fb   : > { %v4993_v42 = vpop.xlane.xlu1 %2000  ;;  %v1681_v19 = vpop.f32.mrf.mxu1 }
 0x3fc   : > { %v4995_v4 = vpop.xlane.xlu0 %1604  ;;  %v1742_v7 = vmul.f32 %v3728_v9, %v1681_v19 }
 0x3fe   : > { %v1757_v0 = vpack.c.bf16 %v1742_v7, %v1741_v13 }
 0x3ff   : > { %v4997_v18 = vpop.xlane.xlu1 %1606 }
 0x400   : > { %v4999_v26 = vpop.xlane.xlu0 %2002  ;;  %v5001_v58 = vpop.f32.mrf.mxu1 }
 0x402   : > { %v5003_v41 = vpop.f32.mrf.mxu1 }
 0x403   : > { %v5005_v5 = vpop.xlane.xlu1 %2004 }
 0x404   : > { %v5007_v39 = vpop.xlane.xlu0 %1608  ;;  %v5009_v29 = vpop.f32.mrf.mxu1 }
 0x406   : > { %v5011_v50 = vpop.f32.mrf.mxu1 }
 0x407   : > { %v5013_v20 = vpop.xlane.xlu1 %1610 }
 0x408   : > { %v5015_v25 = vpop.xlane.xlu0 %2006  ;;  %v5017_v34 = vpop.f32.mrf.mxu1 }
 0x40a   : > { %v5019_v16 = vpop.f32.mrf.mxu1 }
 0x40b   : > { %v5021_v28 = vpop.xlane.xlu1 %2008 }
 0x40c   : > { %v5023_v60 = vpop.xlane.xlu0 %1612  ;;  %v5025_v43 = vpop.f32.mrf.mxu1 }
 0x40e   : > { %v5027_v22 = vpop.f32.mrf.mxu1 }
 0x40f   : > { %v5029_v44 = vpop.xlane.xlu1 %1614 }
 0x410   : > { %v5031_v30 = vpop.xlane.xlu0 %2010  ;;  %v3377_v23 = vpop.f32.mrf.mxu1 }
 0x412   : > { %v5033_v57 = vpop.f32.mrf.mxu1 }
 0x413   : > { %v5035_v48 = vpop.xlane.xlu1 %2012 }
 0x414   : > { %v1617_v11 = vpop.xlane.xlu0 %1616  ;;  %v3378_v40 = vpop.f32.mrf.mxu1 }
 0x415   : > { %3735 = vrcp.f32 %v1617_v11 }
 0x416   : > { %v5037_v21 = vpop.f32.mrf.mxu1  ;;  %3737 = vrcp.f32 %v1595_v46 }
 0x417   : > { %v1619_v27 = vpop.xlane.xlu1 %1618 }
 0x418   : > { %3739 = vrcp.f32 %v1619_v27  ;;  %v3429_v61 = vpop.f32.mrf.mxu1 }
 0x419   : > { %3741 = vrcp.f32 %v1993_v3  ;;  %v2137_v62 = vmul.f32 %v3734_v35, %v3429_v61 }
 0x41a   : > { %3743 = vrcp.f32 %v1593_v1  ;;  %v2072_v36 = vpop.f32.mrf.mxu1 }
 0x41b   : > { %3745 = vrcp.f32 %v1991_v17  ;;  %v2135_v8 = vmul.f32 %v3724_v31, %v2072_v36 }
 0x41c   : > { %v3430_v49 = vpop.f32.mrf.mxu1  ;;  %3747 = vrcp.f32 %v1599_v14 }
 0x41d   : > { %v2138_v33 = vmul.f32 %v3730_v59, %v3430_v49  ;;  %3749 = vrcp.f32 %v4981_v24 }
 0x41e   : > { %v2075_v6 = vpop.f32.mrf.mxu1  ;;  %3751 = vrcp.f32 %v4977_v2 }
 0x41f   : > { %v2136_v37 = vmul.f32 %v3726_v55, %v2075_v6  ;;  %3753 = vrcp.f32 %v4979_v63  ;;  %v2152_v12 = vpack.c.bf16 %v2138_v33, %v2137_v62 }
 0x420   : > { %v3433_v47 = vpop.f32.mrf.mxu1  ;;  %3755 = vrcp.f32 %v4987_v54 }
 0x421   : > { %v2151_v52 = vpack.c.bf16 %v2136_v37, %v2135_v8  ;;  %3757 = vrcp.f32 %v4983_v38 }
 0x422   : > { %v2088_v51 = vpop.f32.mrf.mxu1  ;;  %v3736_v45 = vpop.eup %3735  ;;  %3759 = vrcp.f32 %v4993_v42 }
 0x423   : > { %2395 = vmatprep.mubr.bf16.mxu0 %v2151_v52  ;;  %v3738_v1 = vpop.eup %3737  ;;  %v5044_v53 = vmul.f32 %v3736_v45, %v3377_v23  ;;  %3761 = vrcp.f32 %v4989_v15 }
 0x424   : > { %v3434_v46 = vpop.f32.mrf.mxu1  ;;  %2396 = vmatmul.mubr.bf16.vlgmr.msra.gmra.mxu0 %v1757_v0  ;;  %v1744_v14 = vmul.f32 %v3738_v1, %v4991_v32  ;;  %3763 = vrcp.f32 %v4997_v18 }
 0x425   : > { %v3740_v17 = vpop.eup %3739  ;;  %2405 = vmatprep.mubr.bf16.mxu0 %v2152_v12  ;;  %3765 = vrcp.f32 %v4995_v4 }
 0x426   : > { %v3742_v3 = vpop.eup %3741  ;;  %v2091_v24 = vpop.f32.mrf.mxu1  ;;  %v5046_v2 = vmul.f32 %v3740_v17, %v3378_v40  ;;  %3767 = vrcp.f32 %v5005_v5 }
 0x427   : > { %v3744_v19 = vpop.eup %3743  ;;  %v2140_v11 = vmul.f32 %v3742_v3, %v2091_v24  ;;  %3769 = vrcp.f32 %v4999_v26 }
 0x428   : > { %v3746_v63 = vpop.eup %3745  ;;  %v1743_v27 = vmul.f32 %v3744_v19, %v4985_v10  ;;  %v3437_v61 = vpop.f32.mrf.mxu1  ;;  %v1764_v36 = vpack.c.bf16 %v5046_v2, %v5044_v53  ;;  %3771 = vrcp.f32 %v5013_v20 }
 0x429   : > { %v2139_v54 = vmul.f32 %v3746_v63, %v2088_v51  ;;  %v3748_v31 = vpop.eup %3747  ;;  %3773 = vrcp.f32 %v5007_v39 }
 0x42a   : > { %v1758_v32 = vpack.c.bf16 %v1744_v14, %v1743_v27  ;;  %v2104_v40 = vpop.f32.mrf.mxu1  ;;  %v3750_v55 = vpop.eup %3749  ;;  %v1746_v38 = vmul.f32 %v3748_v31, %v5011_v50  ;;  %3775 = vrcp.f32 %v5021_v28 }
 0x42b   : > { %v2153_v23 = vpack.c.bf16 %v2140_v11, %v2139_v54  ;;  %v3752_v10 = vpop.eup %3751  ;;  %v2142_v49 = vmul.f32 %v3750_v55, %v3434_v46  ;;  %3777 = vrcp.f32 %v5015_v25 }
 0x42c   : > { %2406 = vmatmul.mubr.bf16.gmra.mxu0 %v1758_v32  ;;  %v3754_v9 = vpop.eup %3753  ;;  %v1745_v42 = vmul.f32 %v3752_v10, %v5003_v41  ;;  %v3438_v59 = vpop.f32.mrf.mxu1  ;;  %3779 = vrcp.f32 %v5029_v44 }
 0x42d   : > { %2415 = vmatprep.mubr.bf16.mxu0 %v2153_v23  ;;  %v2141_v15 = vmul.f32 %v3754_v9, %v3433_v47  ;;  %v3756_v6 = vpop.eup %3755  ;;  %3781 = vrcp.f32 %v5023_v60  ;;  %v5612_v23 = vld [vmem:[#allocation2_spill] sm:$0xff] }
 0x42e   : > { %v1759_v7 = vpack.c.bf16 %v1746_v38, %v1745_v42  ;;  %v2107_v8 = vpop.f32.mrf.mxu1  ;;  %v3758_v18 = vpop.eup %3757  ;;  %v1748_v33 = vmul.f32 %v3756_v6, %v5009_v29  ;;  %3783 = vrcp.f32 %v5035_v48  ;;  %v3819_v38 = vld [vmem:[%s3937_s12] sm:$0xff] }
 0x42f   : > { %v2154_v56 = vpack.c.bf16 %v2142_v49, %v2141_v15  ;;  %v3760_v50 = vpop.eup %3759  ;;  %v1747_v37 = vmul.f32 %v3758_v18, %v5001_v58  ;;  %3785 = vrcp.f32 %v5031_v30  ;;  %v2476_v10 = vunpack.c.l.bf16 %v3819_v38 }
 0x430   : > { %v2144_v4 = vmul.f32 %v3760_v50, %v2107_v8  ;;  %v3762_v41 = vpop.eup %3761  ;;  %v3441_v5 = vpop.f32.mrf.mxu1  ;;  %v2477_v49 = vunpack.c.h.bf16 %v3819_v38 }
 0x431   : > { %v2143_v26 = vmul.f32 %v3762_v41, %v2104_v40  ;;  %v1760_v35 = vpack.c.bf16 %v1748_v33, %v1747_v37  ;;  %v3764_v13 = vpop.eup %3763  ;;  %v5613_v40 = vld [vmem:[#allocation3_spill] sm:$0xff]  ;;  %v3821_v33 = vld [vmem:[%s3937_s12 + $0x10] sm:$0xff] }
 0x432   : > { %v2120_v62 = vpop.f32.mrf.mxu1  ;;  %v3766_v29 = vpop.eup %3765  ;;  %v1750_v52 = vmul.f32 %v3764_v13, %v5027_v22 }
 0x433   : > { %v2155_v47 = vpack.c.bf16 %v2144_v4, %v2143_v26  ;;  %v3768_v20 = vpop.eup %3767  ;;  %v1749_v0 = vmul.f32 %v3766_v29, %v5019_v16  ;;  %v2480_v4 = vunpack.c.l.bf16 %v3821_v33  ;;  %v2481_v26 = vunpack.c.h.bf16 %v3821_v33  ;;  %v3822_v29 = vld [vmem:[%s3937_s12 + $0x18] sm:$0xff] }
 0x434   : > { %2416 = vmatmul.mubr.bf16.gmra.mxu0 %v1759_v7  ;;  %v2146_v58 = vmul.f32 %v3768_v20, %v3438_v59  ;;  %v3770_v39 = vpop.eup %3769  ;;  %v3442_v28 = vpop.f32.mrf.mxu1  ;;  %v2482_v20 = vunpack.c.l.bf16 %v3822_v29 }
 0x435   : > { %2425 = vmatprep.mubr.bf16.mxu0 %v2154_v56  ;;  %v2145_v25 = vmul.f32 %v3770_v39, %v3437_v61  ;;  %v1761_v51 = vpack.c.bf16 %v1750_v52, %v1749_v0  ;;  %v3772_v45 = vpop.eup %3771  ;;  %v2483_v0 = vunpack.c.h.bf16 %v3822_v29 }
 0x436   : > { %v2123_v1 = vpop.f32.mrf.mxu1  ;;  %v3774_v22 = vpop.eup %3773  ;;  %v1752_v46 = vmul.f32 %v3772_v45, %v5025_v43 }
 0x437   : > { %v2156_v12 = vpack.c.bf16 %v2146_v58, %v2145_v25  ;;  %v3776_v44 = vpop.eup %3775  ;;  %v1751_v60 = vmul.f32 %v3774_v22, %v5017_v34  ;;  %v2191_v34 = vld [vmem:[%s5536_s4] sm:$0x3] }
 0x438   : > { %v2148_v17 = vmul.f32 %v3776_v44, %v2123_v1  ;;  %v3778_v16 = vpop.eup %3777  ;;  %v5086_v31 = vrot.slane %v2191_v34, %v5613_v40 }
 0x439   : > { %v2147_v3 = vmul.f32 %v3778_v16, %v2120_v62  ;;  %v1762_v14 = vpack.c.bf16 %v1752_v46, %v1751_v60  ;;  %v3780_v48 = vpop.eup %3779 }
 0x43a   : > { %v3782_v19 = vpop.eup %3781  ;;  %v1754_v11 = vmul.f32 %v3780_v48, %v5037_v21  ;;  %v5083_v21 = vrot.slane %v2191_v34, %v5612_v23  ;;  %v3824_v48 = vld [vmem:[%s3937_s12 + $0x28] sm:$0xff] }
 0x43b   : > { %v2157_v24 = vpack.c.bf16 %v2148_v17, %v2147_v3  ;;  %v3784_v30 = vpop.eup %3783  ;;  %v1753_v61 = vmul.f32 %v3782_v19, %v5033_v57 }
 0x43c   : > { %2426 = vmatmul.mubr.bf16.gmra.mxu0 %v1760_v35  ;;  %v2150_v63 = vmul.f32 %v3784_v30, %v3442_v28  ;;  %v3786_v27 = vpop.eup %3785 }
 0x43d   : > { %2435 = vmatprep.mubr.bf16.mxu0 %v2155_v47  ;;  %v2149_v43 = vmul.f32 %v3786_v27, %v3441_v5  ;;  %v1763_v54 = vpack.c.bf16 %v1754_v11, %v1753_v61 }
 0x43f   : > { %v2158_v32 = vpack.c.bf16 %v2150_v63, %v2149_v43  ;;  %v2487_v63 = vunpack.c.h.bf16 %v3824_v48 }
 0x444   : > { %2436 = vmatmul.mubr.bf16.gmra.mxu0 %v1761_v51 }
 0x445   : > { %2445 = vmatprep.mubr.bf16.mxu0 %v2156_v12  ;;  %v3823_v12 = vld [vmem:[%s3937_s12 + $0x20] sm:$0xff] }
 0x446   : > { %v2484_v1 = vunpack.c.l.bf16 %v3823_v12  ;;  %v2485_v17 = vunpack.c.h.bf16 %v3823_v12 }
 0x44c   : > { %2446 = vmatmul.mubr.bf16.gmra.mxu0 %v1762_v14 }
 0x44d   : > { %2455 = vmatprep.mubr.bf16.mxu0 %v2157_v24  ;;  %v2486_v24 = vunpack.c.l.bf16 %v3824_v48 }
 0x454   : > { %2456 = vmatmul.mubr.bf16.gmra.mxu0 %v1763_v54 }
 0x455   : > { %2465 = vmatprep.mubr.bf16.mxu0 %v2158_v32  ;;  %v3825_v32 = vld [vmem:[%s3937_s12 + $0x30] sm:$0xff] }
 0x456   : > { %v2488_v34 = vunpack.c.l.bf16 %v3825_v32 }
 0x45c   : > { %2466 = vmatmul.mubr.bf16.gmra.mxu0 %v1764_v36  ;;  %v3820_v36 = vld [vmem:[%s3937_s12 + $0x8] sm:$0xff] }
 0x45d   : > { %v2478_v42 = vunpack.c.l.bf16 %v3820_v36  ;;  %v2479_v6 = vunpack.c.h.bf16 %v3820_v36  ;;  %v3826_v36 = vld [vmem:[%s3937_s12 + $0x38] sm:$0xff] }
 0x4e4   : > { %v2397_v57 = vpop.f32.mrf.mxu0 }
 0x4e5   : > { %v2398_v55 = vadd.f32 %v2397_v57, %v5083_v21 }
 0x4e6   : > { %v2399_v9 = vpop.f32.mrf.mxu0 }
 0x4e7   : > { %v2400_v53 = vadd.f32 %v2399_v9, %v5086_v31  ;;  %v5092_v59 = vadd.f32 %v2476_v10, %v2398_v55  ;;  %v2489_v10 = vunpack.c.h.bf16 %v3825_v32  ;;  %v3830_v32 = vld [vmem:[%s3937_s12 + $0x58] sm:$0xff] }
 0x4e8   : > { %v2401_v2 = vpop.f32.mrf.mxu0 }
 0x4e9   : > { %v5094_v15 = vadd.f32 %v2477_v49, %v2400_v53  ;;  %v2402_v7 = vadd.f32 %v2401_v2, %v5083_v21 }
 0x4ea   : > { %v2403_v56 = vpop.f32.mrf.mxu0 }
 0x4eb   : > { %v2404_v8 = vadd.f32 %v2403_v56, %v5086_v31  ;;  %v2542_v18 = vadd.f32 %v5094_v15, %v5092_v59  ;;  %v5101_v41 = vadd.f32 %v2478_v42, %v2402_v7  ;;  %v2490_v42 = vunpack.c.l.bf16 %v3826_v36 }
 0x4ec   : > { %v2407_v50 = vpop.f32.mrf.mxu0 }
 0x4ed   : > { %v5103_v37 = vadd.f32 %v2479_v6, %v2404_v8  ;;  %v2408_v5 = vadd.f32 %v2407_v50, %v5083_v21  ;;  %2543 = vadd.xlane.f32.xlu0 %v2542_v18  ;;  %v2491_v8 = vunpack.c.h.bf16 %v3826_v36 }
 0x4ee   : > { %v2409_v35 = vpop.f32.mrf.mxu0 }
 0x4ef   : > { %v2410_v13 = vadd.f32 %v2409_v35, %v5086_v31  ;;  %v2545_v47 = vadd.f32 %v5103_v37, %v5101_v41  ;;  %v5110_v52 = vadd.f32 %v2480_v4, %v2408_v5  ;;  %v3827_v5 = vld [vmem:[%s3937_s12 + $0x40] sm:$0xff] }
 0x4f0   : > { %v2411_v62 = vpop.f32.mrf.mxu0 }
 0x4f1   : > { %v5112_v58 = vadd.f32 %v2481_v26, %v2410_v13  ;;  %v2412_v39 = vadd.f32 %v2411_v62, %v5083_v21  ;;  %2546 = vadd.xlane.f32.xlu1 %v2545_v47  ;;  %v2492_v26 = vunpack.c.l.bf16 %v3827_v5  ;;  %v2493_v62 = vunpack.c.h.bf16 %v3827_v5 }
 0x4f2   : > { %v2413_v28 = vpop.f32.mrf.mxu0 }
 0x4f3   : > { %v2414_v25 = vadd.f32 %v2413_v28, %v5086_v31  ;;  %v2548_v51 = vadd.f32 %v5112_v58, %v5110_v52  ;;  %v5119_v22 = vadd.f32 %v2482_v20, %v2412_v39  ;;  %v3828_v28 = vld [vmem:[%s3937_s12 + $0x48] sm:$0xff] }
 0x4f4   : > { %v2417_v45 = vpop.f32.mrf.mxu0 }
 0x4f5   : > { %v5121_v44 = vadd.f32 %v2483_v0, %v2414_v25  ;;  %v2418_v46 = vadd.f32 %v2417_v45, %v5083_v21  ;;  %2549 = vadd.xlane.f32.xlu0 %v2548_v51  ;;  %v2494_v25 = vunpack.c.l.bf16 %v3828_v28 }
 0x4f6   : > { %v2419_v16 = vpop.f32.mrf.mxu0 }
 0x4f7   : > { %v2420_v60 = vadd.f32 %v2419_v16, %v5086_v31  ;;  %v2551_v3 = vadd.f32 %v5121_v44, %v5119_v22  ;;  %v5128_v19 = vadd.f32 %v2484_v1, %v2418_v46  ;;  %v2495_v1 = vunpack.c.h.bf16 %v3828_v28 }
 0x4f8   : > { %v2421_v14 = vpop.f32.mrf.mxu0 }
 0x4f9   : > { %v5130_v30 = vadd.f32 %v2485_v17, %v2420_v60  ;;  %v2422_v11 = vadd.f32 %v2421_v14, %v5083_v21  ;;  %2552 = vadd.xlane.f32.xlu1 %v2551_v3  ;;  %v3829_v3 = vld [vmem:[%s3937_s12 + $0x50] sm:$0xff] }
 0x4fa   : > { %v2423_v27 = vpop.f32.mrf.mxu0  ;;  %v2496_v14 = vunpack.c.l.bf16 %v3829_v3 }
 0x4fb   : > { %v2424_v61 = vadd.f32 %v2423_v27, %v5086_v31  ;;  %v2554_v43 = vadd.f32 %v5130_v30, %v5128_v19  ;;  %v5137_v57 = vadd.f32 %v2486_v24, %v2422_v11 }
 0x4fc   : > { %v2427_v54 = vpop.f32.mrf.mxu0 }
 0x4fd   : > { %v5139_v55 = vadd.f32 %v2487_v63, %v2424_v61  ;;  %v2428_v38 = vadd.f32 %v2427_v54, %v5083_v21  ;;  %2555 = vadd.xlane.f32.xlu0 %v2554_v43  ;;  %v2497_v63 = vunpack.c.h.bf16 %v3829_v3 }
 0x4fe   : > { %v2429_v49 = vpop.f32.mrf.mxu0 }
 0x4ff   : > { %v2430_v9 = vadd.f32 %v2429_v49, %v5086_v31  ;;  %v2557_v53 = vadd.f32 %v5139_v55, %v5137_v57  ;;  %v5146_v7 = vadd.f32 %v2488_v34, %v2428_v38  ;;  %v2498_v34 = vunpack.c.l.bf16 %v3830_v32 }
 0x500   : > { %v2431_v2 = vpop.f32.mrf.mxu0 }
 0x501   : > { %v5148_v6 = vadd.f32 %v2489_v10, %v2430_v9  ;;  %v2432_v56 = vadd.f32 %v2431_v2, %v5083_v21  ;;  %2558 = vadd.xlane.f32.xlu1 %v2557_v53  ;;  %v2499_v9 = vunpack.c.h.bf16 %v3830_v32  ;;  %v3834_v32 = vld [vmem:[%s3937_s12 + $0x78] sm:$0xff] }
 0x502   : > { %v2433_v18 = vpop.f32.mrf.mxu0 }
 0x503   : > { %v2434_v50 = vadd.f32 %v2433_v18, %v5086_v31  ;;  %v2560_v33 = vadd.f32 %v5148_v6, %v5146_v7  ;;  %v5155_v35 = vadd.f32 %v2490_v42, %v2432_v56  ;;  %v3831_v56 = vld [vmem:[%s3937_s12 + $0x60] sm:$0xff] }
 0x504   : > { %v2437_v4 = vpop.f32.mrf.mxu0 }
 0x505   : > { %v5157_v13 = vadd.f32 %v2491_v8, %v2434_v50  ;;  %v2438_v47 = vadd.f32 %v2437_v4, %v5083_v21  ;;  %2561 = vadd.xlane.f32.xlu0 %v2560_v33  ;;  %v2500_v8 = vunpack.c.l.bf16 %v3831_v56  ;;  %v2501_v4 = vunpack.c.h.bf16 %v3831_v56 }
 0x506   : > { %v2439_v29 = vpop.f32.mrf.mxu0 }
 0x507   : > { %v2440_v20 = vadd.f32 %v2439_v29, %v5086_v31  ;;  %v2563_v39 = vadd.f32 %v5157_v13, %v5155_v35  ;;  %v5164_v51 = vadd.f32 %v2492_v26, %v2438_v47  ;;  %v3832_v29 = vld [vmem:[%s3937_s12 + $0x68] sm:$0xff] }
 0x508   : > { %v2441_v0 = vpop.f32.mrf.mxu0 }
 0x509   : > { %v5166_v45 = vadd.f32 %v2493_v62, %v2440_v20  ;;  %v2442_v12 = vadd.f32 %v2441_v0, %v5083_v21  ;;  %2564 = vadd.xlane.f32.xlu1 %v2563_v39  ;;  %v2502_v20 = vunpack.c.l.bf16 %v3832_v29 }
 0x50a   : > { %v2443_v46 = vpop.f32.mrf.mxu0 }
 0x50b   : > { %v2444_v17 = vadd.f32 %v2443_v46, %v5086_v31  ;;  %v2566_v16 = vadd.f32 %v5166_v45, %v5164_v51  ;;  %v5173_v48 = vadd.f32 %v2494_v25, %v2442_v12  ;;  %v2503_v25 = vunpack.c.h.bf16 %v3832_v29 }
 0x50c   : > { %v2447_v60 = vpop.f32.mrf.mxu0 }
 0x50d   : > { %v5175_v24 = vadd.f32 %v2495_v1, %v2444_v17  ;;  %v2448_v11 = vadd.f32 %v2447_v60, %v5083_v21  ;;  %2567 = vadd.xlane.f32.xlu0 %v2566_v16  ;;  %v3833_v16 = vld [vmem:[%s3937_s12 + $0x70] sm:$0xff] }
 0x50e   : > { %v2449_v27 = vpop.f32.mrf.mxu0  ;;  %v2504_v60 = vunpack.c.l.bf16 %v3833_v16 }
 0x50f   : > { %v2450_v61 = vadd.f32 %v2449_v27, %v5086_v31  ;;  %v2569_v43 = vadd.f32 %v5175_v24, %v5173_v48  ;;  %v5182_v38 = vadd.f32 %v2496_v14, %v2448_v11 }
 0x510   : > { %v2451_v54 = vpop.f32.mrf.mxu0 }
 0x511   : > { %v5184_v10 = vadd.f32 %v2497_v63, %v2450_v61  ;;  %v2452_v49 = vadd.f32 %v2451_v54, %v5083_v21  ;;  %2570 = vadd.xlane.f32.xlu1 %v2569_v43  ;;  %v2505_v63 = vunpack.c.h.bf16 %v3833_v16 }
 0x512   : > { %v2453_v53 = vpop.f32.mrf.mxu0 }
 0x513   : > { %v2454_v2 = vadd.f32 %v2453_v53, %v5086_v31  ;;  %v2572_v36 = vadd.f32 %v5184_v10, %v5182_v38  ;;  %v5191_v18 = vadd.f32 %v2498_v34, %v2452_v49  ;;  %v2506_v34 = vunpack.c.l.bf16 %v3834_v32 }
 0x514   : > { %v2457_v42 = vpop.f32.mrf.mxu0 }
 0x515   : > { %v5193_v50 = vadd.f32 %v2499_v9, %v2454_v2  ;;  %v2458_v33 = vadd.f32 %v2457_v42, %v5083_v21  ;;  %2573 = vadd.xlane.f32.xlu0 %v2572_v36  ;;  %v2507_v2 = vunpack.c.h.bf16 %v3834_v32 }
 0x516   : > { %v2459_v5 = vpop.f32.mrf.mxu0 }
 0x517   : > { %v2460_v26 = vadd.f32 %v2459_v5, %v5086_v31  ;;  %v2575_v47 = vadd.f32 %v5193_v50, %v5191_v18  ;;  %v5200_v39 = vadd.f32 %v2500_v8, %v2458_v33 }
 0x518   : > { %v2461_v62 = vpop.f32.mrf.mxu0 }
 0x519   : > { %v5202_v0 = vadd.f32 %v2501_v4, %v2460_v26  ;;  %v2462_v28 = vadd.f32 %v2461_v62, %v5083_v21  ;;  %2576 = vadd.xlane.f32.xlu1 %v2575_v47 }
 0x51a   : > { %v2463_v12 = vpop.f32.mrf.mxu0 }
 0x51b   : > { %v2464_v1 = vadd.f32 %v2463_v12, %v5086_v31  ;;  %v2578_v46 = vadd.f32 %v5202_v0, %v5200_v39  ;;  %v5209_v3 = vadd.f32 %v2502_v20, %v2462_v28 }
 0x51c   : > { %v2467_v17 = vpop.f32.mrf.mxu0 }
 0x51d   : > { %v5211_v14 = vadd.f32 %v2503_v25, %v2464_v1  ;;  %v2468_v11 = vadd.f32 %v2467_v17, %v5083_v21  ;;  %2579 = vadd.xlane.f32.xlu0 %v2578_v46 }
 0x51e   : > { %v2469_v27 = vpop.f32.mrf.mxu0 }
 0x51f   : > { %v2470_v61 = vadd.f32 %v2469_v27, %v5086_v31  ;;  %v2581_v43 = vadd.f32 %v5211_v14, %v5209_v3  ;;  %v5218_v49 = vadd.f32 %v2504_v60, %v2468_v11 }
 0x520   : > { %v2471_v54 = vpop.f32.mrf.mxu0 }
 0x521   : > { %v5220_v9 = vadd.f32 %v2505_v63, %v2470_v61  ;;  %v2472_v53 = vadd.f32 %v2471_v54, %v5083_v21  ;;  %2582 = vadd.xlane.f32.xlu1 %v2581_v43 }
 0x522   : > { %v2473_v36 = vpop.f32.mrf.mxu0 }
 0x523   : > { %v2474_v42 = vadd.f32 %v2473_v36, %v5086_v31  ;;  %v2584_v56 = vadd.f32 %v5220_v9, %v5218_v49  ;;  %v5226_v8 = vadd.f32 %v2506_v34, %v2472_v53 }
 0x525   : > { %v5228_v33 = vadd.f32 %v2507_v2, %v2474_v42  ;;  %2585 = vadd.xlane.f32.xlu0 %v2584_v56 }
 0x527   : > { %v2587_v4 = vadd.f32 %v5228_v33, %v5226_v8 }
 0x529   : > { %2588 = vadd.xlane.f32.xlu1 %v2587_v4 }
 0x576   : > { %v2544_v5 = vpop.xlane.xlu0 %2543 }
 0x577   : > { %v2591_v26 = vmul.f32 0.00390625, %v2544_v5 }
 0x579   : > { %v5233_v21 = vsub.f32 %v5092_v59, %v2591_v26  ;;  %v5236_v47 = vsub.f32 %v5094_v15, %v2591_v26 }
 0x57a   : > { %v2547_v31 = vpop.xlane.xlu1 %2546 }
 0x57b   : > { %v2592_v62 = vmul.f32 0.00390625, %v2547_v31  ;;  %v2639_v29 = vmul.f32 %v5233_v21, %v5233_v21  ;;  %v2640_v20 = vmul.f32 %v5236_v47, %v5236_v47 }
 0x57d   : > { %v5243_v28 = vsub.f32 %v5101_v41, %v2592_v62  ;;  %v5246_v25 = vsub.f32 %v5103_v37, %v2592_v62  ;;  %v2671_v12 = vadd.f32 %v2640_v20, %v2639_v29 }
 0x57e   : > { %v2550_v59 = vpop.xlane.xlu0 %2549 }
 0x57f   : > { %v2593_v1 = vmul.f32 0.00390625, %v2550_v59  ;;  %2672 = vadd.xlane.f32.xlu0 %v2671_v12  ;;  %v2641_v15 = vmul.f32 %v5243_v28, %v5243_v28  ;;  %v2642_v46 = vmul.f32 %v5246_v25, %v5246_v25 }
 0x581   : > { %v5253_v17 = vsub.f32 %v5110_v52, %v2593_v1  ;;  %v5256_v16 = vsub.f32 %v5112_v58, %v2593_v1  ;;  %v2674_v41 = vadd.f32 %v2642_v46, %v2641_v15 }
 0x582   : > { %v2553_v60 = vpop.xlane.xlu1 %2552 }
 0x583   : > { %v2594_v37 = vmul.f32 0.00390625, %v2553_v60  ;;  %2675 = vadd.xlane.f32.xlu1 %v2674_v41  ;;  %v2643_v11 = vmul.f32 %v5253_v17, %v5253_v17  ;;  %v2644_v63 = vmul.f32 %v5256_v16, %v5256_v16 }
 0x585   : > { %v5263_v27 = vsub.f32 %v5119_v22, %v2594_v37  ;;  %v5266_v61 = vsub.f32 %v5121_v44, %v2594_v37  ;;  %v2677_v52 = vadd.f32 %v2644_v63, %v2643_v11 }
 0x586   : > { %v2556_v43 = vpop.xlane.xlu0 %2555 }
 0x587   : > { %v2595_v58 = vmul.f32 0.00390625, %v2556_v43  ;;  %2678 = vadd.xlane.f32.xlu0 %v2677_v52  ;;  %v2645_v54 = vmul.f32 %v5263_v27, %v5263_v27  ;;  %v2646_v32 = vmul.f32 %v5266_v61, %v5266_v61 }
 0x589   : > { %v5273_v34 = vsub.f32 %v5128_v19, %v2595_v58  ;;  %v5276_v53 = vsub.f32 %v5130_v30, %v2595_v58  ;;  %v2680_v22 = vadd.f32 %v2646_v32, %v2645_v54 }
 0x58a   : > { %v2559_v2 = vpop.xlane.xlu1 %2558 }
 0x58b   : > { %v2596_v44 = vmul.f32 0.00390625, %v2559_v2  ;;  %2681 = vadd.xlane.f32.xlu1 %v2680_v22  ;;  %v2647_v36 = vmul.f32 %v5273_v34, %v5273_v34  ;;  %v2648_v42 = vmul.f32 %v5276_v53, %v5276_v53 }
 0x58d   : > { %v5283_v56 = vsub.f32 %v5137_v57, %v2596_v44  ;;  %v5286_v4 = vsub.f32 %v5139_v55, %v2596_v44  ;;  %v2683_v19 = vadd.f32 %v2648_v42, %v2647_v36 }
 0x58e   : > { %v2562_v5 = vpop.xlane.xlu0 %2561 }
 0x58f   : > { %v2597_v30 = vmul.f32 0.00390625, %v2562_v5  ;;  %2684 = vadd.xlane.f32.xlu0 %v2683_v19  ;;  %v2649_v26 = vmul.f32 %v5283_v56, %v5283_v56  ;;  %v2650_v31 = vmul.f32 %v5286_v4, %v5286_v4 }
 0x591   : > { %v5293_v62 = vsub.f32 %v5146_v7, %v2597_v30  ;;  %v5296_v29 = vsub.f32 %v5148_v6, %v2597_v30  ;;  %v2686_v57 = vadd.f32 %v2650_v31, %v2649_v26 }
 0x592   : > { %v2565_v20 = vpop.xlane.xlu1 %2564 }
 0x593   : > { %v2598_v55 = vmul.f32 0.00390625, %v2565_v20  ;;  %2687 = vadd.xlane.f32.xlu1 %v2686_v57  ;;  %v2651_v12 = vmul.f32 %v5293_v62, %v5293_v62  ;;  %v2652_v59 = vmul.f32 %v5296_v29, %v5296_v29 }
 0x595   : > { %v5303_v1 = vsub.f32 %v5155_v35, %v2598_v55  ;;  %v5306_v15 = vsub.f32 %v5157_v13, %v2598_v55  ;;  %v2689_v7 = vadd.f32 %v2652_v59, %v2651_v12 }
 0x596   : > { %v2568_v46 = vpop.xlane.xlu0 %2567 }
 0x597   : > { %v2599_v6 = vmul.f32 0.00390625, %v2568_v46  ;;  %2690 = vadd.xlane.f32.xlu0 %v2689_v7  ;;  %v2653_v41 = vmul.f32 %v5303_v1, %v5303_v1  ;;  %v2654_v60 = vmul.f32 %v5306_v15, %v5306_v15 }
 0x599   : > { %v5313_v37 = vsub.f32 %v5164_v51, %v2599_v6  ;;  %v5316_v11 = vsub.f32 %v5166_v45, %v2599_v6  ;;  %v2692_v35 = vadd.f32 %v2654_v60, %v2653_v41 }
 0x59a   : > { %v2571_v63 = vpop.xlane.xlu1 %2570 }
 0x59b   : > { %v2600_v13 = vmul.f32 0.00390625, %v2571_v63  ;;  %2693 = vadd.xlane.f32.xlu1 %v2692_v35  ;;  %v2655_v52 = vmul.f32 %v5313_v37, %v5313_v37  ;;  %v2656_v43 = vmul.f32 %v5316_v11, %v5316_v11 }
 0x59d   : > { %v5323_v58 = vsub.f32 %v5173_v48, %v2600_v13  ;;  %v5326_v54 = vsub.f32 %v5175_v24, %v2600_v13  ;;  %v2695_v51 = vadd.f32 %v2656_v43, %v2655_v52 }
 0x59e   : > { %v2574_v32 = vpop.xlane.xlu0 %2573 }
 0x59f   : > { %v2601_v45 = vmul.f32 0.00390625, %v2574_v32  ;;  %2696 = vadd.xlane.f32.xlu0 %v2695_v51  ;;  %v2657_v22 = vmul.f32 %v5323_v58, %v5323_v58  ;;  %v2658_v2 = vmul.f32 %v5326_v54, %v5326_v54 }
 0x5a1   : > { %v5333_v44 = vsub.f32 %v5182_v38, %v2601_v45  ;;  %v5336_v36 = vsub.f32 %v5184_v10, %v2601_v45  ;;  %v2698_v48 = vadd.f32 %v2658_v2, %v2657_v22 }
 0x5a2   : > { %v2577_v42 = vpop.xlane.xlu1 %2576 }
 0x5a3   : > { %v2602_v24 = vmul.f32 0.00390625, %v2577_v42  ;;  %2699 = vadd.xlane.f32.xlu1 %v2698_v48  ;;  %v2659_v19 = vmul.f32 %v5333_v44, %v5333_v44  ;;  %v2660_v5 = vmul.f32 %v5336_v36, %v5336_v36 }
 0x5a5   : > { %v5343_v30 = vsub.f32 %v5191_v18, %v2602_v24  ;;  %v5346_v26 = vsub.f32 %v5193_v50, %v2602_v24  ;;  %v2701_v38 = vadd.f32 %v2660_v5, %v2659_v19 }
 0x5a6   : > { %v2580_v31 = vpop.xlane.xlu0 %2579 }
 0x5a7   : > { %v2603_v10 = vmul.f32 0.00390625, %v2580_v31  ;;  %2702 = vadd.xlane.f32.xlu0 %v2701_v38  ;;  %v2661_v57 = vmul.f32 %v5343_v30, %v5343_v30  ;;  %v2662_v20 = vmul.f32 %v5346_v26, %v5346_v26 }
 0x5a9   : > { %v5353_v55 = vsub.f32 %v5200_v39, %v2603_v10  ;;  %v5356_v12 = vsub.f32 %v5202_v0, %v2603_v10  ;;  %v2704_v18 = vadd.f32 %v2662_v20, %v2661_v57 }
 0x5aa   : > { %v2583_v59 = vpop.xlane.xlu1 %2582 }
 0x5ab   : > { %v2604_v50 = vmul.f32 0.00390625, %v2583_v59  ;;  %2705 = vadd.xlane.f32.xlu1 %v2704_v18  ;;  %v2663_v7 = vmul.f32 %v5353_v55, %v5353_v55  ;;  %v2664_v46 = vmul.f32 %v5356_v12, %v5356_v12  ;;  %v2540_v18 = vld [vmem:[%s5537_s5] sm:$0x3] }
 0x5ac   : > { %v2541_v59 = vld [vmem:[%s5538_s6] sm:$0x3] }
 0x5ad   : > { %v5363_v6 = vsub.f32 %v5209_v3, %v2604_v50  ;;  %v5366_v41 = vsub.f32 %v5211_v14, %v2604_v50  ;;  %v2707_v39 = vadd.f32 %v2664_v46, %v2663_v7  ;;  %v5399_v46 = vrot.slane %v2540_v18, %v5612_v23 }
 0x5ae   : > { %v2586_v60 = vpop.xlane.xlu0 %2585 }
 0x5af   : > { %v2605_v0 = vmul.f32 0.00390625, %v2586_v60  ;;  %2708 = vadd.xlane.f32.xlu0 %v2707_v39  ;;  %v2665_v35 = vmul.f32 %v5363_v6, %v5363_v6  ;;  %v2666_v63 = vmul.f32 %v5366_v41, %v5366_v41  ;;  %v5402_v39 = vrot.slane %v2540_v18, %v5613_v40 }
 0x5b1   : > { %v5373_v13 = vsub.f32 %v5218_v49, %v2605_v0  ;;  %v5376_v52 = vsub.f32 %v5220_v9, %v2605_v0  ;;  %v2710_v3 = vadd.f32 %v2666_v63, %v2665_v35  ;;  %v5405_v35 = vrot.slane %v2541_v59, %v5612_v23 }
 0x5b2   : > { %v2589_v43 = vpop.xlane.xlu1 %2588  ;;  %v5408_v63 = vrot.slane %v2541_v59, %v5613_v40 }
 0x5b3   : > { %v2606_v14 = vmul.f32 0.00390625, %v2589_v43  ;;  %2711 = vadd.xlane.f32.xlu1 %v2710_v3  ;;  %v2667_v51 = vmul.f32 %v5373_v13, %v5373_v13  ;;  %v2668_v32 = vmul.f32 %v5376_v52, %v5376_v52 }
 0x5b5   : > { %v5383_v45 = vsub.f32 %v5226_v8, %v2606_v14  ;;  %v5386_v22 = vsub.f32 %v5228_v33, %v2606_v14  ;;  %v2713_v49 = vadd.f32 %v2668_v32, %v2667_v51 }
 0x5b7   : > { %2714 = vadd.xlane.f32.xlu0 %v2713_v49  ;;  %v2669_v9 = vmul.f32 %v5383_v45, %v5383_v45  ;;  %v2670_v2 = vmul.f32 %v5386_v22, %v5386_v22 }
 0x5b9   : > { %v2716_v48 = vadd.f32 %v2670_v2, %v2669_v9 }
 0x5bb   : > { %2717 = vadd.xlane.f32.xlu1 %v2716_v48 }
 0x608   : > { %v2673_v42 = vpop.xlane.xlu0 %2672 }
 0x609   : > { %v2719_v24 = vmul.f32 0.00390625, %v2673_v42 }
 0x60b   : > { %v2735_v19 = vadd.f32 1e-12, %v2719_v24 }
 0x60c   : > { %v2676_v5 = vpop.xlane.xlu1 %2675 }
 0x60d   : > { %3787 = vrsqrt.f32 %v2735_v19  ;;  %v2720_v8 = vmul.f32 0.00390625, %v2676_v5 }
 0x60f   : > { %v2736_v38 = vadd.f32 1e-12, %v2720_v8 }
 0x610   : > { %v2679_v31 = vpop.xlane.xlu0 %2678 }
 0x611   : > { %3789 = vrsqrt.f32 %v2736_v38  ;;  %v2721_v33 = vmul.f32 0.00390625, %v2679_v31 }
 0x613   : > { %v2737_v10 = vadd.f32 1e-12, %v2721_v33 }
 0x614   : > { %v2682_v57 = vpop.xlane.xlu1 %2681 }
 0x615   : > { %3791 = vrsqrt.f32 %v2737_v10  ;;  %v2722_v20 = vmul.f32 0.00390625, %v2682_v57 }
 0x617   : > { %v2738_v50 = vadd.f32 1e-12, %v2722_v20 }
 0x618   : > { %v2685_v7 = vpop.xlane.xlu0 %2684 }
 0x619   : > { %3793 = vrsqrt.f32 %v2738_v50  ;;  %v2723_v60 = vmul.f32 0.00390625, %v2685_v7 }
 0x61a   : > { %v3788_v0 = vpop.eup %3787 }
 0x61b   : > { %v2767_v3 = vmul.f32 %v3788_v0, %v5233_v21  ;;  %v2768_v43 = vmul.f32 %v3788_v0, %v5236_v47  ;;  %v2739_v14 = vadd.f32 1e-12, %v2723_v60 }
 0x61c   : > { %v2688_v51 = vpop.xlane.xlu1 %2687 }
 0x61d   : > { %v2810_v32 = vmul.f32 %v5399_v46, %v2767_v3  ;;  %v2811_v49 = vmul.f32 %v5402_v39, %v2768_v43  ;;  %3795 = vrsqrt.f32 %v2739_v14  ;;  %v2724_v9 = vmul.f32 0.00390625, %v2688_v51 }
 0x61e   : > { %v3790_v2 = vpop.eup %3789 }
 0x61f   : > { %v2853_v48 = vadd.f32 %v5405_v35, %v2810_v32  ;;  %v2854_v23 = vadd.f32 %v5408_v63, %v2811_v49  ;;  %v2769_v40 = vmul.f32 %v3790_v2, %v5243_v28  ;;  %v2770_v42 = vmul.f32 %v3790_v2, %v5246_v25 }
 0x620   : > { %v2740_v21 = vadd.f32 1e-12, %v2724_v9  ;;  %v2691_v47 = vpop.xlane.xlu0 %2690 }
 0x621   : > { %v3235_v24 = vpack.c.bf16 %v2854_v23, %v2853_v48  ;;  %v2812_v19 = vmul.f32 %v5399_v46, %v2769_v40  ;;  %v2813_v5 = vmul.f32 %v5402_v39, %v2770_v42  ;;  %v2725_v8 = vmul.f32 0.00390625, %v2691_v47 }
 0x622   : > { %v3792_v38 = vpop.eup %3791  ;;  %3797 = vrsqrt.f32 %v2740_v21 }
 0x623   : > { %2981 = vst [vmem:[%s5423_s25] sm:$0xff] %v3235_v24  ;;  %v2855_v28 = vadd.f32 %v5405_v35, %v2812_v19  ;;  %v2856_v25 = vadd.f32 %v5408_v63, %v2813_v5  ;;  %v2771_v31 = vmul.f32 %v3792_v38, %v5253_v17  ;;  %v2772_v33 = vmul.f32 %v3792_v38, %v5256_v16 }
 0x624   : > { %v2741_v10 = vadd.f32 1e-12, %v2725_v8  ;;  %v2694_v57 = vpop.xlane.xlu1 %2693 }
 0x625   : > { %v3236_v20 = vpack.c.bf16 %v2856_v25, %v2855_v28  ;;  %v2814_v18 = vmul.f32 %v5399_v46, %v2771_v31  ;;  %v2815_v59 = vmul.f32 %v5402_v39, %v2772_v33  ;;  %v2726_v50 = vmul.f32 0.00390625, %v2694_v57 }
 0x626   : > { %v3794_v7 = vpop.eup %3793  ;;  %3799 = vrsqrt.f32 %v2741_v10 }
 0x627   : > { %2982 = vst [vmem:[%s5423_s25 + $0x8] sm:$0xff] %v3236_v20  ;;  %v2857_v60 = vadd.f32 %v5405_v35, %v2814_v18  ;;  %v2858_v0 = vadd.f32 %v5408_v63, %v2815_v59  ;;  %v2773_v17 = vmul.f32 %v3794_v7, %v5263_v27  ;;  %v2774_v16 = vmul.f32 %v3794_v7, %v5266_v61 }
 0x628   : > { %v2742_v3 = vadd.f32 1e-12, %v2726_v50  ;;  %v2697_v43 = vpop.xlane.xlu0 %2696 }
 0x629   : > { %v3237_v14 = vpack.c.bf16 %v2858_v0, %v2857_v60  ;;  %v2816_v51 = vmul.f32 %v5399_v46, %v2773_v17  ;;  %v2817_v32 = vmul.f32 %v5402_v39, %v2774_v16  ;;  %v2727_v49 = vmul.f32 0.00390625, %v2697_v43 }
 0x62a   : > { %v3796_v9 = vpop.eup %3795  ;;  %3801 = vrsqrt.f32 %v2742_v3 }
 0x62b   : > { %2983 = vst [vmem:[%s5423_s25 + $0x10] sm:$0xff] %v3237_v14  ;;  %v2859_v2 = vadd.f32 %v5405_v35, %v2816_v51  ;;  %v2860_v48 = vadd.f32 %v5408_v63, %v2817_v32  ;;  %v2775_v27 = vmul.f32 %v3796_v9, %v5273_v34  ;;  %v2776_v61 = vmul.f32 %v3796_v9, %v5276_v53 }
 0x62c   : > { %v2743_v23 = vadd.f32 1e-12, %v2727_v49  ;;  %v2700_v40 = vpop.xlane.xlu1 %2699 }
 0x62d   : > { %v3238_v42 = vpack.c.bf16 %v2860_v48, %v2859_v2  ;;  %v2818_v21 = vmul.f32 %v5399_v46, %v2775_v27  ;;  %v2819_v47 = vmul.f32 %v5402_v39, %v2776_v61  ;;  %v2728_v24 = vmul.f32 0.00390625, %v2700_v40 }
 0x62e   : > { %3803 = vrsqrt.f32 %v2743_v23 }
 0x62f   : > { %v3798_v19 = vpop.eup %3797  ;;  %2984 = vst [vmem:[%s5423_s25 + $0x18] sm:$0xff] %v3238_v42  ;;  %v2861_v5 = vadd.f32 %v5405_v35, %v2818_v21  ;;  %v2862_v8 = vadd.f32 %v5408_v63, %v2819_v47  ;;  %v2744_v38 = vadd.f32 1e-12, %v2728_v24 }
 0x630   : > { %v2777_v34 = vmul.f32 %v3798_v19, %v5283_v56  ;;  %v2778_v53 = vmul.f32 %v3798_v19, %v5286_v4  ;;  %v2703_v28 = vpop.xlane.xlu0 %2702 }
 0x631   : > { %v3239_v25 = vpack.c.bf16 %v2862_v8, %v2861_v5  ;;  %3805 = vrsqrt.f32 %v2744_v38  ;;  %v2729_v31 = vmul.f32 0.00390625, %v2703_v28 }
 0x632   : > { %v2820_v33 = vmul.f32 %v5399_v46, %v2777_v34  ;;  %v2821_v10 = vmul.f32 %v5402_v39, %v2778_v53 }
 0x633   : > { %v3800_v57 = vpop.eup %3799  ;;  %2985 = vst [vmem:[%s5423_s25 + $0x20] sm:$0xff] %v3239_v25  ;;  %v2745_v20 = vadd.f32 1e-12, %v2729_v31 }
 0x634   : > { %v2863_v18 = vadd.f32 %v5405_v35, %v2820_v33  ;;  %v2864_v59 = vadd.f32 %v5408_v63, %v2821_v10  ;;  %v2779_v56 = vmul.f32 %v3800_v57, %v5293_v62  ;;  %v2780_v4 = vmul.f32 %v3800_v57, %v5296_v29  ;;  %v2706_v50 = vpop.xlane.xlu1 %2705 }
 0x635   : > { %3807 = vrsqrt.f32 %v2745_v20  ;;  %v2730_v7 = vmul.f32 0.00390625, %v2706_v50 }
 0x636   : > { %v3240_v60 = vpack.c.bf16 %v2864_v59, %v2863_v18  ;;  %v2822_v0 = vmul.f32 %v5399_v46, %v2779_v56  ;;  %v2823_v17 = vmul.f32 %v5402_v39, %v2780_v4 }
 0x637   : > { %v3802_v16 = vpop.eup %3801  ;;  %v2746_v3 = vadd.f32 1e-12, %v2730_v7 }
 0x638   : > { %2986 = vst [vmem:[%s5423_s25 + $0x28] sm:$0xff] %v3240_v60  ;;  %v2865_v43 = vadd.f32 %v5405_v35, %v2822_v0  ;;  %v2866_v14 = vadd.f32 %v5408_v63, %v2823_v17  ;;  %v2781_v62 = vmul.f32 %v3802_v16, %v5303_v1  ;;  %v2782_v29 = vmul.f32 %v3802_v16, %v5306_v15  ;;  %v2709_v51 = vpop.xlane.xlu0 %2708 }
 0x639   : > { %3809 = vrsqrt.f32 %v2746_v3  ;;  %v2731_v32 = vmul.f32 0.00390625, %v2709_v51 }
 0x63a   : > { %v3241_v49 = vpack.c.bf16 %v2866_v14, %v2865_v43  ;;  %v2824_v9 = vmul.f32 %v5399_v46, %v2781_v62  ;;  %v2825_v2 = vmul.f32 %v5402_v39, %v2782_v29 }
 0x63b   : > { %v3804_v48 = vpop.eup %3803  ;;  %v2747_v27 = vadd.f32 1e-12, %v2731_v32 }
 0x63c   : > { %2987 = vst [vmem:[%s5423_s25 + $0x30] sm:$0xff] %v3241_v49  ;;  %v2867_v61 = vadd.f32 %v5405_v35, %v2824_v9  ;;  %v2868_v23 = vadd.f32 %v5408_v63, %v2825_v2  ;;  %v2783_v1 = vmul.f32 %v3804_v48, %v5313_v37  ;;  %v2784_v15 = vmul.f32 %v3804_v48, %v5316_v11  ;;  %v2712_v40 = vpop.xlane.xlu1 %2711 }
 0x63d   : > { %3811 = vrsqrt.f32 %v2747_v27  ;;  %v2732_v42 = vmul.f32 0.00390625, %v2712_v40 }
 0x63e   : > { %v3806_v21 = vpop.eup %3805  ;;  %v3242_v47 = vpack.c.bf16 %v2868_v23, %v2867_v61  ;;  %v2826_v24 = vmul.f32 %v5399_v46, %v2783_v1  ;;  %v2827_v19 = vmul.f32 %v5402_v39, %v2784_v15 }
 0x63f   : > { %v2785_v5 = vmul.f32 %v3806_v21, %v5323_v58  ;;  %v2786_v8 = vmul.f32 %v3806_v21, %v5326_v54  ;;  %v2748_v38 = vadd.f32 1e-12, %v2732_v42 }
 0x640   : > { %2988 = vst [vmem:[%s5423_s25 + $0x38] sm:$0xff] %v3242_v47  ;;  %v2869_v37 = vadd.f32 %v5405_v35, %v2826_v24  ;;  %v2870_v11 = vadd.f32 %v5408_v63, %v2827_v19  ;;  %v2715_v34 = vpop.xlane.xlu0 %2714 }
 0x641   : > { %v2828_v53 = vmul.f32 %v5399_v46, %v2785_v5  ;;  %v2829_v28 = vmul.f32 %v5402_v39, %v2786_v8  ;;  %3813 = vrsqrt.f32 %v2748_v38  ;;  %v2733_v25 = vmul.f32 0.00390625, %v2715_v34 }
 0x642   : > { %v3808_v31 = vpop.eup %3807  ;;  %v3243_v33 = vpack.c.bf16 %v2870_v11, %v2869_v37 }
 0x643   : > { %v2871_v58 = vadd.f32 %v5405_v35, %v2828_v53  ;;  %v2872_v54 = vadd.f32 %v5408_v63, %v2829_v28  ;;  %v2787_v10 = vmul.f32 %v3808_v31, %v5333_v44  ;;  %v2788_v57 = vmul.f32 %v3808_v31, %v5336_v36 }
 0x644   : > { %2989 = vst [vmem:[%s5423_s25 + $0x40] sm:$0xff] %v3243_v33  ;;  %v2749_v20 = vadd.f32 1e-12, %v2733_v25  ;;  %v2718_v18 = vpop.xlane.xlu1 %2717 }
 0x645   : > { %v3244_v59 = vpack.c.bf16 %v2872_v54, %v2871_v58  ;;  %v2830_v56 = vmul.f32 %v5399_v46, %v2787_v10  ;;  %v2831_v4 = vmul.f32 %v5402_v39, %v2788_v57  ;;  %v2734_v50 = vmul.f32 0.00390625, %v2718_v18 }
 0x646   : > { %v3810_v7 = vpop.eup %3809  ;;  %3815 = vrsqrt.f32 %v2749_v20 }
 0x647   : > { %2990 = vst [vmem:[%s5423_s25 + $0x48] sm:$0xff] %v3244_v59  ;;  %v2873_v60 = vadd.f32 %v5405_v35, %v2830_v56  ;;  %v2874_v0 = vadd.f32 %v5408_v63, %v2831_v4  ;;  %v2789_v44 = vmul.f32 %v3810_v7, %v5343_v30  ;;  %v2790_v36 = vmul.f32 %v3810_v7, %v5346_v26 }
 0x648   : > { %v2750_v17 = vadd.f32 1e-12, %v2734_v50 }
 0x649   : > { %v3245_v16 = vpack.c.bf16 %v2874_v0, %v2873_v60  ;;  %v2832_v3 = vmul.f32 %v5399_v46, %v2789_v44  ;;  %v2833_v43 = vmul.f32 %v5402_v39, %v2790_v36 }
 0x64a   : > { %v3812_v14 = vpop.eup %3811  ;;  %3817 = vrsqrt.f32 %v2750_v17 }
 0x64b   : > { %2991 = vst [vmem:[%s5423_s25 + $0x50] sm:$0xff] %v3245_v16  ;;  %v2875_v62 = vadd.f32 %v5405_v35, %v2832_v3  ;;  %v2876_v29 = vadd.f32 %v5408_v63, %v2833_v43  ;;  %v2791_v51 = vmul.f32 %v3812_v14, %v5353_v55  ;;  %v2792_v30 = vmul.f32 %v3812_v14, %v5356_v12 }
 0x64d   : > { %v3246_v26 = vpack.c.bf16 %v2876_v29, %v2875_v62  ;;  %v2834_v32 = vmul.f32 %v5399_v46, %v2791_v51  ;;  %v2835_v49 = vmul.f32 %v5402_v39, %v2792_v30 }
 0x64e   : > { %v3814_v9 = vpop.eup %3813 }
 0x64f   : > { %2992 = vst [vmem:[%s5423_s25 + $0x58] sm:$0xff] %v3246_v26  ;;  %v2877_v2 = vadd.f32 %v5405_v35, %v2834_v32  ;;  %v2878_v48 = vadd.f32 %v5408_v63, %v2835_v49  ;;  %v2793_v27 = vmul.f32 %v3814_v9, %v5363_v6  ;;  %v2794_v61 = vmul.f32 %v3814_v9, %v5366_v41 }
 0x651   : > { %v3247_v23 = vpack.c.bf16 %v2878_v48, %v2877_v2  ;;  %v2836_v55 = vmul.f32 %v5399_v46, %v2793_v27  ;;  %v2837_v12 = vmul.f32 %v5402_v39, %v2794_v61 }
 0x653   : > { %v3816_v1 = vpop.eup %3815  ;;  %2993 = vst [vmem:[%s5423_s25 + $0x60] sm:$0xff] %v3247_v23  ;;  %v2879_v15 = vadd.f32 %v5405_v35, %v2836_v55  ;;  %v2880_v40 = vadd.f32 %v5408_v63, %v2837_v12 }
 0x654   : > { %v2795_v42 = vmul.f32 %v3816_v1, %v5373_v13  ;;  %v2796_v21 = vmul.f32 %v3816_v1, %v5376_v52 }
 0x655   : > { %v3248_v47 = vpack.c.bf16 %v2880_v40, %v2879_v15 }
 0x656   : > { %v2838_v6 = vmul.f32 %v5399_v46, %v2795_v42  ;;  %v2839_v41 = vmul.f32 %v5402_v39, %v2796_v21 }
 0x657   : > { %v3818_v24 = vpop.eup %3817  ;;  %2994 = vst [vmem:[%s5423_s25 + $0x68] sm:$0xff] %v3248_v47 }
 0x658   : > { %v2881_v19 = vadd.f32 %v5405_v35, %v2838_v6  ;;  %v2882_v5 = vadd.f32 %v5408_v63, %v2839_v41  ;;  %v2797_v8 = vmul.f32 %v3818_v24, %v5383_v45  ;;  %v2798_v38 = vmul.f32 %v3818_v24, %v5386_v22 }
 0x65a   : > { %v3249_v37 = vpack.c.bf16 %v2882_v5, %v2881_v19  ;;  %v2840_v13 = vmul.f32 %v5399_v46, %v2797_v8  ;;  %v2841_v52 = vmul.f32 %v5402_v39, %v2798_v38 }
 0x65c   : > { %2995 = vst [vmem:[%s5423_s25 + $0x70] sm:$0xff] %v3249_v37  ;;  %v2883_v11 = vadd.f32 %v5405_v35, %v2840_v13  ;;  %v2884_v34 = vadd.f32 %v5408_v63, %v2841_v52 }
 0x65e   : > { %v3250_v53 = vpack.c.bf16 %v2884_v34, %v2883_v11 }
 0x660   : > { %2996 = vst [vmem:[%s5423_s25 + $0x78] sm:$0xff] %v3250_v53 }
 0x661 PF: > { %s18_s27 = sadd.s32 1, %s3841_s27  }
 0x662   : > { %p15_p4 = scmp.ge.s32.totalorder %s18_s27, 4  }
 0x664   :  { %17 = sbr.rel (!%p15_p4) target bundleno = 1 (0x1), region = 85 }

// kernel: wrapper_forward.5
= control target key start
LH: loop header
LB: loop body
LE: loop exit
PB: predicated region body
PF: predicated region fallthrough
CT: control target
= control target key end

     0   :  { %s3256_s30 = smov 0   ;;  %s4580_s0 = inlined_call_operand.vmem [shape: bf16[2,128,256], index: 0, kind: input, shape index: {}]   ;;  %s4581_s1 = inlined_call_operand.vmem [shape: bf16[256,512], index: 1, kind: input, shape index: {}]   ;;  %s4582_s2 = inlined_call_operand.vmem [shape: f32[1,512], index: 2, kind: input, shape index: {}]   ;;  %s4583_s3 = inlined_call_operand.vmem [shape: bf16[512,256], index: 3, kind: input, shape index: {}]   ;;  %s4584_s4 = inlined_call_operand.vmem [shape: f32[1,256], index: 4, kind: input, shape index: {}]   ;;  %s4585_s5 = inlined_call_operand.vmem [shape: f32[1,256], index: 5, kind: input, shape index: {}]   ;;  %s4586_s6 = inlined_call_operand.vmem [shape: f32[1,256], index: 6, kind: input, shape index: {}]   ;;  %s4587_s7 = inlined_call_operand.vmem [shape: bf16[256,256], index: 7, kind: input, shape index: {}]   ;;  %s4588_s8 = inlined_call_operand.vmem [shape: f32[1,256], index: 8, kind: input, shape index: {}]   ;;  %s4589_s9 = inlined_call_operand.vmem [shape: f32[2,1,256], index: 9, kind: output, shape index: {}]  }
   0x1 LB: > { %s2603_s10 = sadd.s32 4294967295, %s3203_s30   ;;  %p2607_p0 = scmp.ge.s32.totalorder %s3203_s30, 1  ;;  %s3203_s30 = sphi %s3256_s30, %s19_s30  }
   0x2   : > { %p287_p1 = scmp.lt.s32.totalorder %s3203_s30, 3 }
   0x4   : > { %p288_p2 = pnand %p2607_p0, %p287_p1 }
   0x6   : > { %291 = sbr.rel (%p288_p2) target bundleno = 1041 (0x411), region = 56 }
   0xb   : > { %v2799_v0 = vld [vmem:[%s4581_s1 + $0xe4] ss:$16 sps:$4 sm:$0xff]   ;;  %v2801_v1 = vld [vmem:[%s4581_s1 + $0xec] ss:$16 sps:$4 sm:$0xff]   ;;  %v2803_v2 = vld [vmem:[%s4581_s1 + $0xe0] ss:$16 sps:$4 sm:$0xff]  }
   0xc   : > { %833 = vmatprep.subr.bf16.mxu0 %v2799_v0  ;;  %v2804_v3 = vld [vmem:[%s4581_s1 + $0xe8] ss:$16 sps:$4 sm:$0xff]   ;;  %946 = vmatprep.subr.bf16.mxu1 %v2801_v1  ;;  %v2805_v4 = vld [vmem:[%s4581_s1 + $0xc4] ss:$16 sps:$4 sm:$0xff]   ;;  %v2807_v5 = vld [vmem:[%s4581_s1 + $0xcc] ss:$16 sps:$4 sm:$0xff]  }
   0xd   : > { %834 = vmatpush1.bf16.msra.mxu0 %v2803_v2  ;;  %947 = vmatpush1.bf16.msra.mxu1 %v2804_v3  ;;  %v2809_v6 = vld [vmem:[%s4581_s1 + $0xc0] ss:$16 sps:$4 sm:$0xff]   ;;  %v2810_v7 = vld [vmem:[%s4581_s1 + $0xc8] ss:$16 sps:$4 sm:$0xff]   ;;  %v2811_v8 = vld [vmem:[%s4581_s1 + $0xa4] ss:$16 sps:$4 sm:$0xff]  }
   0xe   : > { %835 = vmatprep.subr.bf16.mxu0 %v2805_v4  ;;  %948 = vmatprep.subr.bf16.mxu1 %v2807_v5  ;;  %v2813_v9 = vld [vmem:[%s4581_s1 + $0xac] ss:$16 sps:$4 sm:$0xff]   ;;  %v2815_v10 = vld [vmem:[%s4581_s1 + $0xa0] ss:$16 sps:$4 sm:$0xff]   ;;  %v2816_v11 = vld [vmem:[%s4581_s1 + $0xa8] ss:$16 sps:$4 sm:$0xff]  }
   0xf   : > { %v2817_v12 = vld [vmem:[%s4581_s1 + $0x84] ss:$16 sps:$4 sm:$0xff]   ;;  %v2819_v13 = vld [vmem:[%s4581_s1 + $0x8c] ss:$16 sps:$4 sm:$0xff]   ;;  %v2821_v14 = vld [vmem:[%s4581_s1 + $0x80] ss:$16 sps:$4 sm:$0xff]  }
  0x10   : > { %v2822_v15 = vld [vmem:[%s4581_s1 + $0x88] ss:$16 sps:$4 sm:$0xff]   ;;  %v2823_v16 = vld [vmem:[%s4581_s1 + $0x64] ss:$16 sps:$4 sm:$0xff]   ;;  %v2825_v17 = vld [vmem:[%s4581_s1 + $0x6c] ss:$16 sps:$4 sm:$0xff]  }
  0x11   : > { %836 = vmatpush1.bf16.msra.mxu0 %v2809_v6  ;;  %949 = vmatpush1.bf16.msra.mxu1 %v2810_v7  ;;  %v2827_v18 = vld [vmem:[%s4581_s1 + $0x60] ss:$16 sps:$4 sm:$0xff]   ;;  %v2828_v19 = vld [vmem:[%s4581_s1 + $0x68] ss:$16 sps:$4 sm:$0xff]   ;;  %v2829_v20 = vld [vmem:[%s4581_s1 + $0x44] ss:$16 sps:$4 sm:$0xff]  }
  0x12   : > { %837 = vmatprep.subr.bf16.mxu0 %v2811_v8  ;;  %950 = vmatprep.subr.bf16.mxu1 %v2813_v9  ;;  %v2831_v21 = vld [vmem:[%s4581_s1 + $0x4c] ss:$16 sps:$4 sm:$0xff]   ;;  %v2833_v22 = vld [vmem:[%s4581_s1 + $0x40] ss:$16 sps:$4 sm:$0xff]   ;;  %v2834_v23 = vld [vmem:[%s4581_s1 + $0x48] ss:$16 sps:$4 sm:$0xff]  }
  0x13   : > { %v2835_v24 = vld [vmem:[%s4581_s1 + $0x24] ss:$16 sps:$4 sm:$0xff]   ;;  %v2837_v25 = vld [vmem:[%s4581_s1 + $0x2c] ss:$16 sps:$4 sm:$0xff]   ;;  %v2839_v26 = vld [vmem:[%s4581_s1 + $0x20] ss:$16 sps:$4 sm:$0xff]  }
  0x14   : > { %v2840_v27 = vld [vmem:[%s4581_s1 + $0x28] ss:$16 sps:$4 sm:$0xff]   ;;  %v2841_v28 = vld [vmem:[%s4581_s1 + $0x4] ss:$16 sps:$4 sm:$0xff]   ;;  %v2843_v29 = vld [vmem:[%s4581_s1 + $0xc] ss:$16 sps:$4 sm:$0xff]  }
  0x15   : > { %838 = vmatpush1.bf16.msra.mxu0 %v2815_v10  ;;  %951 = vmatpush1.bf16.msra.mxu1 %v2816_v11  ;;  %v2845_v30 = vld [vmem:[%s4581_s1] ss:$16 sps:$4 sm:$0xff]   ;;  %v2846_v31 = vld [vmem:[%s4581_s1 + $0x8] ss:$16 sps:$4 sm:$0xff]   ;;  %v2847_v32 = vld [vmem:[%s4581_s1 + $0x1e4] ss:$16 sps:$4 sm:$0xff]  }
  0x16   : > { %839 = vmatprep.subr.bf16.mxu0 %v2817_v12  ;;  %952 = vmatprep.subr.bf16.mxu1 %v2819_v13  ;;  %p322_p3 = scmp.lt.s32.totalorder %s2603_s10, 1  ;;  %v2849_v33 = vld [vmem:[%s4581_s1 + $0x1ec] ss:$16 sps:$4 sm:$0xff]   ;;  %v2851_v34 = vld [vmem:[%s4581_s1 + $0x1e0] ss:$16 sps:$4 sm:$0xff]  }
  0x17   : > { %v2852_v35 = vld [vmem:[%s4581_s1 + $0x1e8] ss:$16 sps:$4 sm:$0xff]   ;;  %v2853_v36 = vld [vmem:[%s4581_s1 + $0x1c4] ss:$16 sps:$4 sm:$0xff]   ;;  %v2855_v37 = vld [vmem:[%s4581_s1 + $0x1cc] ss:$16 sps:$4 sm:$0xff]  }
  0x18   : > { %s4752_s10 = smov (!%p322_p3, %s2603_s10), 1  ;;  %v2857_v38 = vld [vmem:[%s4581_s1 + $0x1c0] ss:$16 sps:$4 sm:$0xff]   ;;  %v2858_v39 = vld [vmem:[%s4581_s1 + $0x1c8] ss:$16 sps:$4 sm:$0xff]  }
  0x19   : > { %840 = vmatpush1.bf16.msra.mxu0 %v2821_v14  ;;  %953 = vmatpush1.bf16.msra.mxu1 %v2822_v15  ;;  %v2859_v40 = vld [vmem:[%s4581_s1 + $0x1a4] ss:$16 sps:$4 sm:$0xff]   ;;  %s2789_s17 = sshll.u32 %s4752_s10, 7  ;;  %v2861_v41 = vld [vmem:[%s4581_s1 + $0x1ac] ss:$16 sps:$4 sm:$0xff]   ;;  %s2610_s12 = sshll.u32 %s4752_s10, 1 }
  0x1a   : > { %841 = vmatprep.subr.bf16.mxu0 %v2823_v16  ;;  %954 = vmatprep.subr.bf16.mxu1 %v2825_v17  ;;  %v2863_v42 = vld [vmem:[%s4581_s1 + $0x1a0] ss:$16 sps:$4 sm:$0xff]   ;;  %v2864_v43 = vld [vmem:[%s4581_s1 + $0x1a8] ss:$16 sps:$4 sm:$0xff]   ;;  %s3406_s26 = scalar_lea.vmem %s4580_s0, %s2789_s17  ;;  %v2865_v44 = vld [vmem:[%s4581_s1 + $0x184] ss:$16 sps:$4 sm:$0xff]   ;;  %s330_s15 = scalar_lea.vmem %s4589_s9, %s2610_s12 }
  0x1b   : > { %v2867_v45 = vld [vmem:[%s4581_s1 + $0x18c] ss:$16 sps:$4 sm:$0xff]   ;;  %v331_v46 = vld [vmem:[%s3406_s26] sm:$0xff]  ;;  %v2870_v49 = vld [vmem:[%s4581_s1 + $0x188] ss:$16 sps:$4 sm:$0xff]  }
  0x1c   : > { %v332_v47 = vld [vmem:[%s3406_s26 + $0x8] sm:$0xff]  ;;  %v2869_v48 = vld [vmem:[%s4581_s1 + $0x180] ss:$16 sps:$4 sm:$0xff]   ;;  %v2871_v51 = vld [vmem:[%s4581_s1 + $0x164] ss:$16 sps:$4 sm:$0xff]  }
  0x1d   : > { %842 = vmatpush1.bf16.msra.mxu0 %v2827_v18  ;;  %955 = vmatpush1.bf16.msra.mxu1 %v2828_v19  ;;  %v2612_v50 = vcombine.high %v331_v46, %v332_v47  ;;  %v2873_v52 = vld [vmem:[%s4581_s1 + $0x16c] ss:$16 sps:$4 sm:$0xff]   ;;  %v2875_v53 = vld [vmem:[%s4581_s1 + $0x160] ss:$16 sps:$4 sm:$0xff]   ;;  %v2876_v54 = vld [vmem:[%s4581_s1 + $0x168] ss:$16 sps:$4 sm:$0xff]   ;;  %v2611_v5 = vcombine.low %v331_v46, %v332_v47 }
  0x1e   : > { %843 = vmatprep.subr.bf16.mxu0 %v2829_v20  ;;  %956 = vmatprep.subr.bf16.mxu1 %v2831_v21  ;;  %v2877_v55 = vld [vmem:[%s4581_s1 + $0x144] ss:$16 sps:$4 sm:$0xff]   ;;  %v2879_v56 = vld [vmem:[%s4581_s1 + $0x14c] ss:$16 sps:$4 sm:$0xff]   ;;  %v2881_v57 = vld [vmem:[%s4581_s1 + $0x140] ss:$16 sps:$4 sm:$0xff]  }
  0x1f   : > { %865 = vmatprep.mubr.bf16.mxu0 %v2612_v50  ;;  %978 = vmatprep.mubr.bf16.mxu1 %v2612_v50  ;;  %v2882_v58 = vld [vmem:[%s4581_s1 + $0x148] ss:$16 sps:$4 sm:$0xff]   ;;  %v2883_v59 = vld [vmem:[%s4581_s1 + $0x124] ss:$16 sps:$4 sm:$0xff]   ;;  %v2885_v60 = vld [vmem:[%s4581_s1 + $0x12c] ss:$16 sps:$4 sm:$0xff]  }
  0x20   : > { %v2887_v61 = vld [vmem:[%s4581_s1 + $0x120] ss:$16 sps:$4 sm:$0xff]   ;;  %v2888_v62 = vld [vmem:[%s4581_s1 + $0x128] ss:$16 sps:$4 sm:$0xff]   ;;  %v2889_v63 = vld [vmem:[%s4581_s1 + $0x104] ss:$16 sps:$4 sm:$0xff]  }
  0x21   : > { %844 = vmatpush1.bf16.msra.mxu0 %v2833_v22  ;;  %957 = vmatpush1.bf16.msra.mxu1 %v2834_v23  ;;  %v2891_v0 = vld [vmem:[%s4581_s1 + $0x10c] ss:$16 sps:$4 sm:$0xff]   ;;  %v2893_v1 = vld [vmem:[%s4581_s1 + $0x100] ss:$16 sps:$4 sm:$0xff]   ;;  %v2894_v2 = vld [vmem:[%s4581_s1 + $0x108] ss:$16 sps:$4 sm:$0xff]  }
  0x22   : > { %845 = vmatprep.subr.bf16.mxu0 %v2835_v24  ;;  %958 = vmatprep.subr.bf16.mxu1 %v2837_v25  ;;  %v2911_v3 = vld [vmem:[%s4583_s3 + $0x74] ss:$8 sps:$4 sm:$0xff]   ;;  %v2909_v7 = vld [vmem:[%s4583_s3 + $0x70] ss:$8 sps:$4 sm:$0xff]   ;;  %v2920_v9 = vld [vmem:[%s4583_s3 + $0x64] ss:$8 sps:$4 sm:$0xff]  }
  0x23   : > { %v2914_v4 = vld [vmem:[%s4583_s3 + $0x174] ss:$8 sps:$4 sm:$0xff]   ;;  %v2912_v8 = vld [vmem:[%s4583_s3 + $0x170] ss:$8 sps:$4 sm:$0xff]   ;;  %v2923_v10 = vld [vmem:[%s4583_s3 + $0x164] ss:$8 sps:$4 sm:$0xff]  }
  0x24   : > { %v2897_v6 = vld [vmem:[%s3406_s26 + $0x14] ss:$8 sps:$4 sm:$0xff]   ;;  %v2918_v11 = vld [vmem:[%s4583_s3 + $0x60] ss:$8 sps:$4 sm:$0xff]   ;;  %v2899_v12 = vld [vmem:[%s3406_s26 + $0x10] ss:$8 sps:$4 sm:$0xff]  }
  0x25   : > { %846 = vmatpush1.bf16.msra.mxu0 %v2839_v26  ;;  %959 = vmatpush1.bf16.msra.mxu1 %v2840_v27  ;;  %v2921_v13 = vld [vmem:[%s4583_s3 + $0x160] ss:$8 sps:$4 sm:$0xff]   ;;  %v2926_v14 = vld [vmem:[%s4583_s3 + $0x54] ss:$8 sps:$4 sm:$0xff]   ;;  %v2900_v15 = vld [vmem:[%s3406_s26 + $0x24] ss:$8 sps:$4 sm:$0xff]  }
  0x26   : > { %847 = vmatprep.subr.bf16.mxu0 %v2841_v28  ;;  %960 = vmatprep.subr.bf16.mxu1 %v2843_v29  ;;  %v2929_v16 = vld [vmem:[%s4583_s3 + $0x154] ss:$8 sps:$4 sm:$0xff]   ;;  %v2924_v17 = vld [vmem:[%s4583_s3 + $0x50] ss:$8 sps:$4 sm:$0xff]   ;;  %v2935_v19 = vld [vmem:[%s4583_s3 + $0x44] ss:$8 sps:$4 sm:$0xff]  }
  0x27   : > { %v2927_v18 = vld [vmem:[%s4583_s3 + $0x150] ss:$8 sps:$4 sm:$0xff]   ;;  %v2938_v20 = vld [vmem:[%s4583_s3 + $0x144] ss:$8 sps:$4 sm:$0xff]   ;;  %v2933_v21 = vld [vmem:[%s4583_s3 + $0x40] ss:$8 sps:$4 sm:$0xff]  }
  0x28   : > { %v2936_v22 = vld [vmem:[%s4583_s3 + $0x140] ss:$8 sps:$4 sm:$0xff]   ;;  %v2941_v23 = vld [vmem:[%s4583_s3 + $0x34] ss:$8 sps:$4 sm:$0xff]   ;;  %v2939_v27 = vld [vmem:[%s4583_s3 + $0x30] ss:$8 sps:$4 sm:$0xff]  }
  0x29   : > { %848 = vmatpush1.bf16.msra.mxu0 %v2845_v30  ;;  %961 = vmatpush1.bf16.msra.mxu1 %v2846_v31  ;;  %v2944_v24 = vld [vmem:[%s4583_s3 + $0x134] ss:$8 sps:$4 sm:$0xff]   ;;  %v2902_v25 = vld [vmem:[%s3406_s26 + $0x20] ss:$8 sps:$4 sm:$0xff]   ;;  %v2942_v28 = vld [vmem:[%s4583_s3 + $0x130] ss:$8 sps:$4 sm:$0xff]  }
  0x2a   : > { %849 = vmatprep.subr.bf16.mxu0 %v2847_v32  ;;  %962 = vmatprep.subr.bf16.mxu1 %v2849_v33  ;;  %v2903_v26 = vld [vmem:[%s3406_s26 + $0x34] ss:$8 sps:$4 sm:$0xff]   ;;  %v2950_v29 = vld [vmem:[%s4583_s3 + $0x24] ss:$8 sps:$4 sm:$0xff]   ;;  %v2948_v31 = vld [vmem:[%s4583_s3 + $0x20] ss:$8 sps:$4 sm:$0xff]  }
  0x2b   : > { %v2953_v30 = vld [vmem:[%s4583_s3 + $0x124] ss:$8 sps:$4 sm:$0xff]   ;;  %v2951_v32 = vld [vmem:[%s4583_s3 + $0x120] ss:$8 sps:$4 sm:$0xff]   ;;  %v2956_v33 = vld [vmem:[%s4583_s3 + $0x14] ss:$8 sps:$4 sm:$0xff]  }
  0x2c   : > { %v2962_v46 = vld [vmem:[%s4583_s3 + $0x4] ss:$8 sps:$4 sm:$0xff]   ;;  %v2968_v50 = vld [vmem:[%s4583_s3 + $0xf4] ss:$8 sps:$4 sm:$0xff]  }
  0x2d   : > { %850 = vmatpush2.bf16.msra.mxu0 %v2851_v34  ;;  %963 = vmatpush2.bf16.msra.mxu1 %v2852_v35  ;;  %v2905_v34 = vld [vmem:[%s3406_s26 + $0x30] ss:$8 sps:$4 sm:$0xff]   ;;  %v2906_v35 = vld [vmem:[%s3406_s26 + $0x44] ss:$8 sps:$4 sm:$0xff]  }
  0x2e   : > { %851 = vmatprep.subr.bf16.mxu0 %v2853_v36  ;;  %964 = vmatprep.subr.bf16.mxu1 %v2855_v37  ;;  %v2954_v36 = vld [vmem:[%s4583_s3 + $0x10] ss:$8 sps:$4 sm:$0xff]   ;;  %v2908_v37 = vld [vmem:[%s3406_s26 + $0x40] ss:$8 sps:$4 sm:$0xff]   ;;  %v2965_v47 = vld [vmem:[%s4583_s3 + $0x104] ss:$8 sps:$4 sm:$0xff]  }
  0x31   : > { %852 = vmatpush2.bf16.msra.mxu0 %v2857_v38  ;;  %965 = vmatpush2.bf16.msra.mxu1 %v2858_v39  ;;  %v2915_v38 = vld [vmem:[%s3406_s26 + $0x54] ss:$8 sps:$4 sm:$0xff]   ;;  %v2917_v39 = vld [vmem:[%s3406_s26 + $0x50] ss:$8 sps:$4 sm:$0xff]  }
  0x32   : > { %853 = vmatprep.subr.bf16.mxu0 %v2859_v40  ;;  %966 = vmatprep.subr.bf16.mxu1 %v2861_v41  ;;  %v2930_v40 = vld [vmem:[%s3406_s26 + $0x64] ss:$8 sps:$4 sm:$0xff]   ;;  %v2932_v41 = vld [vmem:[%s3406_s26 + $0x60] ss:$8 sps:$4 sm:$0xff]  }
  0x35   : > { %854 = vmatpush2.bf16.msra.mxu0 %v2863_v42  ;;  %967 = vmatpush2.bf16.msra.mxu1 %v2864_v43  ;;  %v2945_v42 = vld [vmem:[%s3406_s26 + $0x74] ss:$8 sps:$4 sm:$0xff]   ;;  %v2947_v43 = vld [vmem:[%s3406_s26 + $0x70] ss:$8 sps:$4 sm:$0xff]  }
  0x36   : > { %855 = vmatprep.subr.bf16.mxu0 %v2865_v44  ;;  %968 = vmatprep.subr.bf16.mxu1 %v2867_v45  ;;  %v2959_v44 = vld [vmem:[%s4583_s3 + $0x114] ss:$8 sps:$4 sm:$0xff]   ;;  %v2957_v45 = vld [vmem:[%s4583_s3 + $0x110] ss:$8 sps:$4 sm:$0xff]  }
  0x39   : > { %856 = vmatpush2.bf16.msra.mxu0 %v2869_v48  ;;  %969 = vmatpush2.bf16.msra.mxu1 %v2870_v49  ;;  %v2960_v48 = vld [vmem:[%s4583_s3] ss:$8 sps:$4 sm:$0xff]  }
  0x3a   : > { %857 = vmatprep.subr.bf16.mxu0 %v2871_v51  ;;  %970 = vmatprep.subr.bf16.mxu1 %v2873_v52  ;;  %v2963_v49 = vld [vmem:[%s4583_s3 + $0x100] ss:$8 sps:$4 sm:$0xff]   ;;  %v2971_v51 = vld [vmem:[%s4583_s3 + $0x1f4] ss:$8 sps:$4 sm:$0xff]   ;;  %v2966_v52 = vld [vmem:[%s4583_s3 + $0xf0] ss:$8 sps:$4 sm:$0xff]  }
  0x3d   : > { %858 = vmatpush2.bf16.msra.mxu0 %v2875_v53  ;;  %971 = vmatpush2.bf16.msra.mxu1 %v2876_v54  ;;  %v2969_v53 = vld [vmem:[%s4583_s3 + $0x1f0] ss:$8 sps:$4 sm:$0xff]   ;;  %v2974_v54 = vld [vmem:[%s4583_s3 + $0xe4] ss:$8 sps:$4 sm:$0xff]  }
  0x3e   : > { %859 = vmatprep.subr.bf16.mxu0 %v2877_v55  ;;  %972 = vmatprep.subr.bf16.mxu1 %v2879_v56  ;;  %v2977_v55 = vld [vmem:[%s4583_s3 + $0x1e4] ss:$8 sps:$4 sm:$0xff]   ;;  %v2972_v56 = vld [vmem:[%s4583_s3 + $0xe0] ss:$8 sps:$4 sm:$0xff]  }
  0x41   : > { %860 = vmatpush2.bf16.msra.mxu0 %v2881_v57  ;;  %973 = vmatpush2.bf16.msra.mxu1 %v2882_v58  ;;  %v2975_v57 = vld [vmem:[%s4583_s3 + $0x1e0] ss:$8 sps:$4 sm:$0xff]   ;;  %v2980_v58 = vld [vmem:[%s4583_s3 + $0xd4] ss:$8 sps:$4 sm:$0xff]  }
  0x42   : > { %861 = vmatprep.subr.bf16.mxu0 %v2883_v59  ;;  %974 = vmatprep.subr.bf16.mxu1 %v2885_v60  ;;  %v2983_v59 = vld [vmem:[%s4583_s3 + $0x1d4] ss:$8 sps:$4 sm:$0xff]   ;;  %v2978_v60 = vld [vmem:[%s4583_s3 + $0xd0] ss:$8 sps:$4 sm:$0xff]  }
  0x45   : > { %862 = vmatpush2.bf16.msra.mxu0 %v2887_v61  ;;  %975 = vmatpush2.bf16.msra.mxu1 %v2888_v62  ;;  %v2981_v61 = vld [vmem:[%s4583_s3 + $0x1d0] ss:$8 sps:$4 sm:$0xff]   ;;  %v2986_v62 = vld [vmem:[%s4583_s3 + $0xc4] ss:$8 sps:$4 sm:$0xff]  }
  0x46   : > { %863 = vmatprep.subr.bf16.mxu0 %v2889_v63  ;;  %976 = vmatprep.subr.bf16.mxu1 %v2891_v0  ;;  %v2989_v63 = vld [vmem:[%s4583_s3 + $0x1c4] ss:$8 sps:$4 sm:$0xff]   ;;  %v2984_v0 = vld [vmem:[%s4583_s3 + $0xc0] ss:$8 sps:$4 sm:$0xff]  }
  0x49   : > { %864 = vmatpush2.bf16.msra.mxu0 %v2893_v1  ;;  %977 = vmatpush2.bf16.msra.mxu1 %v2894_v2  ;;  %v2987_v1 = vld [vmem:[%s4583_s3 + $0x1c0] ss:$8 sps:$4 sm:$0xff]   ;;  %v2992_v2 = vld [vmem:[%s4583_s3 + $0xb4] ss:$8 sps:$4 sm:$0xff]  }
  0x4a   : > { %2063 = vmatprep.subr.bf16.mxu0 %v2911_v3  ;;  %2146 = vmatprep.subr.bf16.mxu1 %v2914_v4  ;;  %v2995_v3 = vld [vmem:[%s4583_s3 + $0x1b4] ss:$8 sps:$4 sm:$0xff]   ;;  %v2990_v4 = vld [vmem:[%s4583_s3 + $0xb0] ss:$8 sps:$4 sm:$0xff]  }
  0x4c   : > { %866 = vmatmul.mubr.bf16.vlgmr.msra.gmra.mxu0 %v2611_v5  ;;  %979 = vmatmul.mubr.bf16.vlgmr.msra.gmra.mxu1 %v2611_v5  ;;  %v2993_v5 = vld [vmem:[%s4583_s3 + $0x1b0] ss:$8 sps:$4 sm:$0xff]  }
  0x4d   : > { %875 = vmatprep.mubr.bf16.mxu0 %v2897_v6  ;;  %988 = vmatprep.mubr.bf16.mxu1 %v2897_v6  ;;  %v2998_v6 = vld [vmem:[%s4583_s3 + $0xa4] ss:$8 sps:$4 sm:$0xff]  }
  0x4e   : > { %2064 = vmatpush1.bf16.msra.mxu0 %v2909_v7  ;;  %2147 = vmatpush1.bf16.msra.mxu1 %v2912_v8  ;;  %v3001_v7 = vld [vmem:[%s4583_s3 + $0x1a4] ss:$8 sps:$4 sm:$0xff]   ;;  %v2996_v8 = vld [vmem:[%s4583_s3 + $0xa0] ss:$8 sps:$4 sm:$0xff]  }
  0x4f   : > { %2065 = vmatprep.subr.bf16.mxu0 %v2920_v9  ;;  %2148 = vmatprep.subr.bf16.mxu1 %v2923_v10  ;;  %v2999_v9 = vld [vmem:[%s4583_s3 + $0x1a0] ss:$8 sps:$4 sm:$0xff]   ;;  %v3004_v10 = vld [vmem:[%s4583_s3 + $0x94] ss:$8 sps:$4 sm:$0xff]  }
  0x52   : > { %2066 = vmatpush1.bf16.msra.mxu0 %v2918_v11  ;;  %2149 = vmatpush1.bf16.msra.mxu1 %v2921_v13  ;;  %v3007_v11 = vld [vmem:[%s4583_s3 + $0x194] ss:$8 sps:$4 sm:$0xff]   ;;  %v3005_v13 = vld [vmem:[%s4583_s3 + $0x190] ss:$8 sps:$4 sm:$0xff]  }
  0x53   : > { %2067 = vmatprep.subr.bf16.mxu0 %v2926_v14  ;;  %2150 = vmatprep.subr.bf16.mxu1 %v2929_v16  ;;  %v3010_v14 = vld [vmem:[%s4583_s3 + $0x84] ss:$8 sps:$4 sm:$0xff]   ;;  %v3008_v16 = vld [vmem:[%s4583_s3 + $0x80] ss:$8 sps:$4 sm:$0xff]  }
  0x54   : > { %876 = vmatmul.mubr.bf16.gmra.mxu0 %v2899_v12  ;;  %989 = vmatmul.mubr.bf16.gmra.mxu1 %v2899_v12  ;;  %v3002_v12 = vld [vmem:[%s4583_s3 + $0x90] ss:$8 sps:$4 sm:$0xff]  }
  0x55   : > { %885 = vmatprep.mubr.bf16.mxu0 %v2900_v15  ;;  %998 = vmatprep.mubr.bf16.mxu1 %v2900_v15  ;;  %v3013_v15 = vld [vmem:[%s4583_s3 + $0x184] ss:$8 sps:$4 sm:$0xff]  }
  0x56   : > { %2068 = vmatpush1.bf16.msra.mxu0 %v2924_v17  ;;  %2151 = vmatpush1.bf16.msra.mxu1 %v2927_v18  ;;  %v3011_v17 = vld [vmem:[%s4583_s3 + $0x180] ss:$8 sps:$4 sm:$0xff]   ;;  %v4590_v18 = vlaneseq }
  0x57   : > { %2069 = vmatprep.subr.bf16.mxu0 %v2935_v19  ;;  %2152 = vmatprep.subr.bf16.mxu1 %v2938_v20 }
  0x58   : > { %v3677_v19 = vshrl.u32 %v4590_v18, 7 }
  0x5a   : > { %2070 = vmatpush1.bf16.msra.mxu0 %v2933_v21  ;;  %2153 = vmatpush1.bf16.msra.mxu1 %v2936_v22  ;;  %4644 = vst [vmem:[#allocation2_spill] sm:$0xff] %v3677_v19  ;;  %v3680_v20 = vsub.s32 0, %v3677_v19  ;;  %v423_v21 = vsub.s32 2, %v3677_v19  ;;  %v411_v22 = vld [vmem:[%s4582_s2] sm:$0xf] }
  0x5b   : > { %2071 = vmatprep.subr.bf16.mxu0 %v2941_v23  ;;  %2154 = vmatprep.subr.bf16.mxu1 %v2944_v24  ;;  %v3687_v23 = vsub.s32 1, %v3677_v19  ;;  %v427_v24 = vsub.s32 3, %v3677_v19 }
  0x5c   : > { %886 = vmatmul.mubr.bf16.gmra.mxu0 %v2902_v25  ;;  %999 = vmatmul.mubr.bf16.gmra.mxu1 %v2902_v25  ;;  %4645 = vst [vmem:[#allocation3_spill] sm:$0xff] %v3680_v20  ;;  %v3691_v25 = vrot.slane %v411_v22, %v3680_v20 }
  0x5d   : > { %895 = vmatprep.mubr.bf16.mxu0 %v2903_v26  ;;  %1008 = vmatprep.mubr.bf16.mxu1 %v2903_v26  ;;  %4646 = vst [vmem:[#allocation4_spill] sm:$0xff] %v3687_v23  ;;  %v3693_v26 = vrot.slane %v411_v22, %v423_v21 }
  0x5e   : > { %2072 = vmatpush1.bf16.msra.mxu0 %v2939_v27  ;;  %2155 = vmatpush1.bf16.msra.mxu1 %v2942_v28 }
  0x5f   : > { %2073 = vmatprep.subr.bf16.mxu0 %v2950_v29  ;;  %2156 = vmatprep.subr.bf16.mxu1 %v2953_v30  ;;  %v3696_v29 = vrot.slane %v411_v22, %v3687_v23  ;;  %v3698_v30 = vrot.slane %v411_v22, %v427_v24 }
  0x62   : > { %2074 = vmatpush1.bf16.msra.mxu0 %v2948_v31  ;;  %2157 = vmatpush1.bf16.msra.mxu1 %v2951_v32 }
  0x63   : > { %2075 = vmatprep.subr.bf16.mxu0 %v2956_v33  ;;  %2158 = vmatprep.subr.bf16.mxu1 %v2959_v44 }
  0x64   : > { %896 = vmatmul.mubr.bf16.gmra.mxu0 %v2905_v34  ;;  %1009 = vmatmul.mubr.bf16.gmra.mxu1 %v2905_v34 }
  0x65   : > { %905 = vmatprep.mubr.bf16.mxu0 %v2906_v35  ;;  %1018 = vmatprep.mubr.bf16.mxu1 %v2906_v35 }
  0x66   : > { %2076 = vmatpush1.bf16.msra.mxu0 %v2954_v36  ;;  %2159 = vmatpush1.bf16.msra.mxu1 %v2957_v45 }
  0x67   : > { %2077 = vmatprep.subr.bf16.mxu0 %v2962_v46  ;;  %2160 = vmatprep.subr.bf16.mxu1 %v2965_v47 }
  0x6a   : > { %2078 = vmatpush1.bf16.msra.mxu0 %v2960_v48  ;;  %2161 = vmatpush1.bf16.msra.mxu1 %v2963_v49 }
  0x6b   : > { %2079 = vmatprep.subr.bf16.mxu0 %v2968_v50  ;;  %2162 = vmatprep.subr.bf16.mxu1 %v2971_v51 }
  0x6c   : > { %906 = vmatmul.mubr.bf16.gmra.mxu0 %v2908_v37  ;;  %1019 = vmatmul.mubr.bf16.gmra.mxu1 %v2908_v37 }
  0x6d   : > { %915 = vmatprep.mubr.bf16.mxu0 %v2915_v38  ;;  %1028 = vmatprep.mubr.bf16.mxu1 %v2915_v38 }
  0x6e   : > { %2080 = vmatpush2.bf16.msra.mxu0 %v2966_v52  ;;  %2163 = vmatpush2.bf16.msra.mxu1 %v2969_v53 }
  0x6f   : > { %2081 = vmatprep.subr.bf16.mxu0 %v2974_v54  ;;  %2164 = vmatprep.subr.bf16.mxu1 %v2977_v55 }
  0x72   : > { %2082 = vmatpush2.bf16.msra.mxu0 %v2972_v56  ;;  %2165 = vmatpush2.bf16.msra.mxu1 %v2975_v57 }
  0x73   : > { %2083 = vmatprep.subr.bf16.mxu0 %v2980_v58  ;;  %2166 = vmatprep.subr.bf16.mxu1 %v2983_v59 }
  0x74   : > { %916 = vmatmul.mubr.bf16.gmra.mxu0 %v2917_v39  ;;  %1029 = vmatmul.mubr.bf16.gmra.mxu1 %v2917_v39 }
  0x75   : > { %925 = vmatprep.mubr.bf16.mxu0 %v2930_v40  ;;  %1038 = vmatprep.mubr.bf16.mxu1 %v2930_v40 }
  0x76   : > { %2084 = vmatpush2.bf16.msra.mxu0 %v2978_v60  ;;  %2167 = vmatpush2.bf16.msra.mxu1 %v2981_v61 }
  0x77   : > { %2085 = vmatprep.subr.bf16.mxu0 %v2986_v62  ;;  %2168 = vmatprep.subr.bf16.mxu1 %v2989_v63 }
  0x7a   : > { %2086 = vmatpush2.bf16.msra.mxu0 %v2984_v0  ;;  %2169 = vmatpush2.bf16.msra.mxu1 %v2987_v1 }
  0x7b   : > { %2087 = vmatprep.subr.bf16.mxu0 %v2992_v2  ;;  %2170 = vmatprep.subr.bf16.mxu1 %v2995_v3 }
  0x7c   : > { %926 = vmatmul.mubr.bf16.gmra.mxu0 %v2932_v41  ;;  %1039 = vmatmul.mubr.bf16.gmra.mxu1 %v2932_v41 }
  0x7d   : > { %935 = vmatprep.mubr.bf16.mxu0 %v2945_v42  ;;  %1048 = vmatprep.mubr.bf16.mxu1 %v2945_v42 }
  0x7e   : > { %2088 = vmatpush2.bf16.msra.mxu0 %v2990_v4  ;;  %2171 = vmatpush2.bf16.msra.mxu1 %v2993_v5 }
  0x7f   : > { %2089 = vmatprep.subr.bf16.mxu0 %v2998_v6  ;;  %2172 = vmatprep.subr.bf16.mxu1 %v3001_v7 }
  0x82   : > { %2090 = vmatpush2.bf16.msra.mxu0 %v2996_v8  ;;  %2173 = vmatpush2.bf16.msra.mxu1 %v2999_v9 }
  0x83   : > { %2091 = vmatprep.subr.bf16.mxu0 %v3004_v10  ;;  %2174 = vmatprep.subr.bf16.mxu1 %v3007_v11 }
  0x84   : > { %936 = vmatmul.mubr.bf16.gmra.mxu0 %v2947_v43  ;;  %1049 = vmatmul.mubr.bf16.gmra.mxu1 %v2947_v43 }
  0x86   : > { %2092 = vmatpush2.bf16.msra.mxu0 %v3002_v12  ;;  %2175 = vmatpush2.bf16.msra.mxu1 %v3005_v13 }
  0x87   : > { %2093 = vmatprep.subr.bf16.mxu0 %v3010_v14  ;;  %2176 = vmatprep.subr.bf16.mxu1 %v3013_v15 }
  0x8a   : > { %2094 = vmatpush2.bf16.msra.mxu0 %v3008_v16  ;;  %2177 = vmatpush2.bf16.msra.mxu1 %v3011_v17 }
 0x10c   : > { %v867_v27 = vpop.f32.mrf.mxu0  ;;  %v980_v28 = vpop.f32.mrf.mxu1 }
 0x10d   : > { %v3701_v31 = vadd.f32 %v867_v27, %v3691_v25  ;;  %v3704_v32 = vadd.f32 %v980_v28, %v3693_v26 }
 0x10e   : > { %v869_v33 = vpop.f32.mrf.mxu0  ;;  %v982_v34 = vpop.f32.mrf.mxu1 }
 0x10f   : > { %v1123_v35 = vmul.f32 0.044715, %v3701_v31  ;;  %v1125_v36 = vmul.f32 0.044715, %v3704_v32  ;;  %v3709_v37 = vadd.f32 %v869_v33, %v3696_v29  ;;  %v3712_v38 = vadd.f32 %v982_v34, %v3698_v30 }
 0x110   : > { %v871_v39 = vpop.f32.mrf.mxu0  ;;  %v984_v40 = vpop.f32.mrf.mxu1 }
 0x111   : > { %v1187_v41 = vmul.f32 %v1123_v35, %v3701_v31  ;;  %v1189_v42 = vmul.f32 %v1125_v36, %v3704_v32  ;;  %v3717_v43 = vadd.f32 %v871_v39, %v3691_v25  ;;  %v3720_v44 = vadd.f32 %v984_v40, %v3693_v26 }
 0x112   : > { %v1124_v45 = vmul.f32 0.044715, %v3709_v37  ;;  %v1126_v46 = vmul.f32 0.044715, %v3712_v38  ;;  %v873_v47 = vpop.f32.mrf.mxu0  ;;  %v986_v48 = vpop.f32.mrf.mxu1 }
 0x113   : > { %v1251_v49 = vmul.f32 %v1187_v41, %v3701_v31  ;;  %v1253_v50 = vmul.f32 %v1189_v42, %v3704_v32  ;;  %v1127_v51 = vmul.f32 0.044715, %v3717_v43  ;;  %v1129_v54 = vmul.f32 0.044715, %v3720_v44 }
 0x114   : > { %v1188_v52 = vmul.f32 %v1124_v45, %v3709_v37  ;;  %v1190_v53 = vmul.f32 %v1126_v46, %v3712_v38  ;;  %v877_v55 = vpop.f32.mrf.mxu0  ;;  %v990_v56 = vpop.f32.mrf.mxu1  ;;  %v3734_v60 = vadd.f32 %v873_v47, %v3696_v29  ;;  %v3740_v0 = vadd.f32 %v986_v48, %v3698_v30 }
 0x115   : > { %v1315_v57 = vadd.f32 %v1251_v49, %v3701_v31  ;;  %v1317_v58 = vadd.f32 %v1253_v50, %v3704_v32  ;;  %v1191_v59 = vmul.f32 %v1127_v51, %v3717_v43  ;;  %v1193_v63 = vmul.f32 %v1129_v54, %v3720_v44 }
 0x116   : > { %v1252_v61 = vmul.f32 %v1188_v52, %v3709_v37  ;;  %v1254_v62 = vmul.f32 %v1190_v53, %v3712_v38  ;;  %v879_v1 = vpop.f32.mrf.mxu0  ;;  %v992_v2 = vpop.f32.mrf.mxu1  ;;  %v1128_v6 = vmul.f32 0.044715, %v3734_v60  ;;  %v1130_v8 = vmul.f32 0.044715, %v3740_v0 }
 0x117   : > { %v1379_v3 = vmul.f32 0.7978846, %v1315_v57  ;;  %v1381_v4 = vmul.f32 0.7978846, %v1317_v58  ;;  %v1255_v5 = vmul.f32 %v1191_v59, %v3717_v43  ;;  %v1257_v7 = vmul.f32 %v1193_v63, %v3720_v44 }
 0x118   : > { %v1316_v9 = vadd.f32 %v1252_v61, %v3709_v37  ;;  %v881_v10 = vpop.f32.mrf.mxu0  ;;  %v994_v11 = vpop.f32.mrf.mxu1  ;;  %v1192_v13 = vmul.f32 %v1128_v6, %v3734_v60  ;;  %v1194_v15 = vmul.f32 %v1130_v8, %v3740_v0  ;;  %v1318_v27 = vadd.f32 %v1254_v62, %v3712_v38 }
 0x119   : > { %3062 = vtanh.f32 %v1379_v3  ;;  %v1319_v12 = vadd.f32 %v1255_v5, %v3717_v43  ;;  %v1321_v14 = vadd.f32 %v1257_v7, %v3720_v44  ;;  %v3754_v28 = vadd.f32 %v877_v55, %v3691_v25 }
 0x11a   : > { %3064 = vtanh.f32 %v1381_v4  ;;  %v1380_v16 = vmul.f32 0.7978846, %v1316_v9  ;;  %v883_v17 = vpop.f32.mrf.mxu0  ;;  %v996_v21 = vpop.f32.mrf.mxu1  ;;  %v1256_v24 = vmul.f32 %v1192_v13, %v3734_v60  ;;  %v1258_v34 = vmul.f32 %v1194_v15, %v3740_v0 }
 0x11b   : > { %v1383_v22 = vmul.f32 0.7978846, %v1319_v12  ;;  %v1385_v33 = vmul.f32 0.7978846, %v1321_v14  ;;  %v3758_v35 = vadd.f32 %v879_v1, %v3696_v29  ;;  %v1382_v41 = vmul.f32 0.7978846, %v1318_v27 }
 0x11c   : > { %3066 = vtanh.f32 %v1380_v16  ;;  %v887_v36 = vpop.f32.mrf.mxu0  ;;  %v1000_v39 = vpop.f32.mrf.mxu1  ;;  %v1320_v40 = vadd.f32 %v1256_v24, %v3734_v60  ;;  %v1322_v42 = vadd.f32 %v1258_v34, %v3740_v0  ;;  %v3763_v45 = vadd.f32 %v990_v56, %v3693_v26 }
 0x11d   : > { %3068 = vtanh.f32 %v1383_v22  ;;  %v3768_v49 = vadd.f32 %v881_v10, %v3691_v25  ;;  %v1131_v51 = vmul.f32 0.044715, %v3754_v28  ;;  %v1132_v52 = vmul.f32 0.044715, %v3758_v35 }
 0x11e   : > { %3070 = vtanh.f32 %v1385_v33  ;;  %v889_v46 = vpop.f32.mrf.mxu0  ;;  %v3765_v47 = vpop.f32.mrf.mxu1  ;;  %v1384_v48 = vmul.f32 0.7978846, %v1320_v40  ;;  %v1386_v50 = vmul.f32 0.7978846, %v1322_v42  ;;  %v3773_v53 = vadd.f32 %v992_v2, %v3698_v30 }
 0x11f   : > { %3072 = vtanh.f32 %v1382_v41  ;;  %v1133_v56 = vmul.f32 0.044715, %v3763_v45  ;;  %v3779_v57 = vadd.f32 %v883_v17, %v3696_v29  ;;  %v1059_v58 = vmul.f32 0.5, %v3701_v31 }
 0x120   : > { %v891_v54 = vpop.f32.mrf.mxu0  ;;  %v3775_v55 = vpop.f32.mrf.mxu1  ;;  %3074 = vtanh.f32 %v1384_v48  ;;  %v1135_v59 = vmul.f32 0.044715, %v3768_v49  ;;  %v1134_v61 = vmul.f32 0.044715, %v3773_v53  ;;  %v1061_v1 = vmul.f32 0.5, %v3704_v32 }
 0x121   : > { %3076 = vtanh.f32 %v1386_v50  ;;  %v1136_v2 = vmul.f32 0.044715, %v3779_v57  ;;  %v3789_v3 = vadd.f32 %v994_v11, %v3693_v26  ;;  %v3792_v4 = vadd.f32 %v887_v36, %v3691_v25 }
 0x122   : > { %v893_v62 = vpop.f32.mrf.mxu0  ;;  %v3784_v63 = vpop.f32.mrf.mxu1  ;;  %v3795_v31 = vmul.f32 0.5, %v3709_v37  ;;  %v1195_v5 = vmul.f32 %v1131_v51, %v3754_v28  ;;  %v1196_v6 = vmul.f32 %v1132_v52, %v3758_v35  ;;  %v3800_v7 = vadd.f32 %v996_v21, %v3698_v30 }
 0x123   : > { %4647 = vst [vmem:[#allocation5_spill] sm:$0xff] %v3789_v3  ;;  %4648 = vst [vmem:[#allocation6_spill] sm:$0xff] %v3792_v4  ;;  %v3807_v9 = vmul.f32 0.5, %v3712_v38  ;;  %v1197_v10 = vmul.f32 %v1133_v56, %v3763_v45  ;;  %v1137_v11 = vmul.f32 0.044715, %v3789_v3  ;;  %v3812_v37 = vadd.f32 %v889_v46, %v3696_v29 }
 0x124   : > { %v3802_v8 = vpop.f32.mrf.mxu0  ;;  %v3804_v32 = vpop.f32.mrf.mxu1  ;;  %v1063_v13 = vmul.f32 0.5, %v3717_v43  ;;  %v1199_v14 = vmul.f32 %v1135_v59, %v3768_v49  ;;  %v1198_v15 = vmul.f32 %v1134_v61, %v3773_v53  ;;  %v1139_v16 = vmul.f32 0.044715, %v3792_v4 }
 0x125   : > { %v1065_v22 = vmul.f32 0.5, %v3720_v44  ;;  %v1064_v24 = vmul.f32 0.5, %v3734_v60  ;;  %v1200_v27 = vmul.f32 %v1136_v2, %v3779_v57  ;;  %v1138_v33 = vmul.f32 0.044715, %v3800_v7 }
 0x126   : > { %v3063_v12 = vpop.eup %3062  ;;  %v3818_v17 = vpop.f32.mrf.mxu0  ;;  %v1066_v43 = vmul.f32 0.5, %v3740_v0  ;;  %v3828_v34 = vmul.f32 %v1195_v5, %v3754_v28  ;;  %v3831_v36 = vmul.f32 %v1196_v6, %v3758_v35  ;;  %v3834_v40 = vadd.f32 %v1000_v39, %v3693_v26 }
 0x127   : > { %v3820_v38 = vpop.f32.mrf.mxu1  ;;  %v3065_v21 = vpop.eup %3064  ;;  %v1507_v42 = vadd.f32 1.0, %v3063_v12  ;;  %v3841_v46 = vmul.f32 %v1197_v10, %v3763_v45  ;;  %v1201_v0 = vmul.f32 %v1137_v11, %v3789_v3  ;;  %v1140_v48 = vmul.f32 0.044715, %v3812_v37 }
 0x128   : > { %4649 = vst [vmem:[#allocation7_spill] sm:$0xff] %v3834_v40  ;;  %v3836_v41 = vpop.f32.mrf.mxu0  ;;  %v1509_v51 = vadd.f32 1.0, %v3065_v21  ;;  %v3846_v52 = vmul.f32 %v1199_v14, %v3768_v49  ;;  %v3849_v39 = vmul.f32 %v1198_v15, %v3773_v53  ;;  %v1203_v56 = vmul.f32 %v1139_v16, %v3792_v4 }
 0x129   : > { %v3838_v44 = vpop.f32.mrf.mxu1  ;;  %v3067_v60 = vpop.eup %3066  ;;  %v3853_v5 = vmul.f32 %v1200_v27, %v3779_v57  ;;  %v1202_v6 = vmul.f32 %v1138_v33, %v3800_v7  ;;  %v3857_v10 = vadd.f32 %v891_v54, %v3691_v25  ;;  %v1141_v15 = vmul.f32 0.044715, %v3834_v40 }
 0x12a   : > { %v3069_v50 = vpop.eup %3068  ;;  %v903_v59 = vpop.f32.mrf.mxu0  ;;  %v1508_v14 = vadd.f32 1.0, %v3067_v60  ;;  %v3864_v16 = vadd.f32 %v3765_v47, %v3698_v30  ;;  %v1571_v27 = vmul.f32 %v1507_v42, %v1059_v58  ;;  %v3869_v18 = vmul.f32 %v1201_v0, %v3789_v3 }
 0x12b   : > { %v3071_v61 = vpop.eup %3070  ;;  %v1511_v2 = vadd.f32 1.0, %v3069_v50  ;;  %v3859_v11 = vpop.f32.mrf.mxu1  ;;  %v1204_v54 = vmul.f32 %v1140_v48, %v3812_v37  ;;  %v3873_v33 = vadd.f32 %v893_v62, %v3696_v29  ;;  %v3876_v23 = vmul.f32 %v1203_v56, %v3792_v4 }
 0x12c   : > { %v3073_v12 = vpop.eup %3072  ;;  %v1513_v21 = vadd.f32 1.0, %v3071_v61  ;;  %v3866_v50 = vpop.f32.mrf.mxu0  ;;  %4650 = vst [vmem:[#allocation8_spill] sm:$0xff] %v3869_v18  ;;  %v1573_v61 = vmul.f32 %v1509_v51, %v1061_v1  ;;  %v3880_v47 = vadd.f32 %v3775_v55, %v3693_v26  ;;  %v1143_v48 = vmul.f32 0.044715, %v3857_v10 }
 0x12d   : > { %v3075_v19 = vpop.eup %3074  ;;  %v1510_v60 = vadd.f32 1.0, %v3073_v12  ;;  %4651 = vst [vmem:[#allocation9_spill] sm:$0xff] %v3876_v23  ;;  %v1575_v0 = vmul.f32 %v1511_v2, %v1063_v13  ;;  %v3885_v62 = vpop.f32.mrf.mxu1  ;;  %v1572_v12 = vmul.f32 %v1508_v14, %v3795_v31  ;;  %v1205_v51 = vmul.f32 %v1141_v15, %v3834_v40 }
 0x12e   : > { %4652 = vst [vmem:[#allocation10_spill] sm:$0xff] %v3880_v47  ;;  %v3882_v20 = vpop.f32.mrf.mxu0  ;;  %v3077_v58 = vpop.eup %3076  ;;  %v1512_v42 = vadd.f32 1.0, %v3075_v19  ;;  %v1577_v18 = vmul.f32 %v1513_v21, %v1065_v22  ;;  %v1142_v56 = vmul.f32 0.044715, %v3864_v16  ;;  %v1144_v4 = vmul.f32 0.044715, %v3873_v33 }
 0x12f   : > { %v1514_v1 = vadd.f32 1.0, %v3077_v58  ;;  %v3893_v19 = vadd.f32 %v3802_v8, %v3691_v25  ;;  %v3897_v13 = vadd.f32 %v3784_v63, %v3698_v30  ;;  %v1574_v22 = vmul.f32 %v1510_v60, %v3807_v9 }
 0x130   : > { %v911_v23 = vpop.f32.mrf.mxu0  ;;  %v1576_v55 = vmul.f32 %v1512_v42, %v1064_v24  ;;  %v1145_v2 = vmul.f32 0.044715, %v3880_v47  ;;  %v3903_v14 = vadd.f32 %v3818_v17, %v3696_v29  ;;  %v1635_v15 = vpack.c.bf16 %v1575_v0, %v1571_v27  ;;  %v1022_v42 = vpop.f32.mrf.mxu1 }
 0x131   : > { %4653 = vst [vmem:[#allocation11_spill] sm:$0xff] %v3893_v19  ;;  %v1578_v31 = vmul.f32 %v1514_v1, %v1066_v43  ;;  %v1637_v58 = vpack.c.bf16 %v1577_v18, %v1573_v61  ;;  %v1207_v8 = vmul.f32 %v1143_v48, %v3857_v10  ;;  %v1206_v63 = vmul.f32 %v1142_v56, %v3864_v16 }
 0x132   : > { %4654 = vst [vmem:[#allocation12_spill] sm:$0xff] %v3903_v14  ;;  %v913_v24 = vpop.f32.mrf.mxu0  ;;  %v1636_v21 = vpack.c.bf16 %v1576_v55, %v1572_v12  ;;  %v3909_v9 = vadd.f32 %v3804_v32, %v3693_v26  ;;  %v3913_v43 = vadd.f32 %v3836_v41, %v3691_v25  ;;  %v1147_v17 = vmul.f32 0.044715, %v3893_v19  ;;  %v1024_v12 = vpop.f32.mrf.mxu1 }
 0x133   : > { %v1638_v3 = vpack.c.bf16 %v1578_v31, %v1574_v22  ;;  %v1146_v27 = vmul.f32 0.044715, %v3897_v13  ;;  %v3919_v18 = vadd.f32 %v3820_v38, %v3698_v30  ;;  %v3922_v60 = vadd.f32 %v903_v59, %v3696_v29 }
 0x134   : > { %4655 = vst [vmem:[#allocation13_spill] sm:$0xff] %v3909_v9  ;;  %4656 = vst [vmem:[#allocation14_spill] sm:$0xff] %v3913_v43  ;;  %2095 = vmatprep.mubr.bf16.mxu0 %v1636_v21  ;;  %v1208_v32 = vmul.f32 %v1144_v4, %v3873_v33  ;;  %v1209_v61 = vmul.f32 %v1145_v2, %v3880_v47  ;;  %v1148_v41 = vmul.f32 0.044715, %v3903_v14  ;;  %v917_v48 = vpop.f32.mrf.mxu0  ;;  %v1151_v4 = vmul.f32 0.044715, %v3913_v43 }
 0x135   : > { %4657 = vst [vmem:[#allocation15_spill] sm:$0xff] %v3919_v18  ;;  %4658 = vst [vmem:[#allocation16_spill] sm:$0xff] %v3922_v60  ;;  %2178 = vmatprep.mubr.bf16.mxu1 %v1638_v3  ;;  %2096 = vmatmul.mubr.bf16.vlgmr.msra.gmra.mxu0 %v1635_v15  ;;  %v3929_v0 = vadd.f32 %v3838_v44, %v3693_v26  ;;  %v3932_v38 = vmul.f32 %v1202_v6, %v3800_v7  ;;  %v1149_v3 = vmul.f32 0.044715, %v3909_v9 }
 0x136   : > { %2179 = vmatmul.mubr.bf16.vlgmr.msra.gmra.mxu1 %v1637_v58  ;;  %v3935_v59 = vmul.f32 %v1204_v54, %v3812_v37  ;;  %v3940_v1 = vmul.f32 %v1205_v51, %v3834_v40  ;;  %v1150_v56 = vmul.f32 0.044715, %v3919_v18  ;;  %v1152_v44 = vmul.f32 0.044715, %v3922_v60  ;;  %v919_v58 = vpop.f32.mrf.mxu0 }
 0x137   : > { %4659 = vst [vmem:[#allocation17_spill] sm:$0xff] %v3929_v0  ;;  %v1153_v55 = vmul.f32 0.044715, %v3929_v0  ;;  %v3946_v6 = vmul.f32 %v1207_v8, %v3857_v10  ;;  %v3949_v54 = vmul.f32 %v1206_v63, %v3864_v16  ;;  %v1211_v22 = vmul.f32 %v1147_v17, %v3893_v19 }
 0x138   : > { %4660 = vst [vmem:[#allocation18_spill] sm:$0xff] %v3940_v1  ;;  %v1210_v31 = vmul.f32 %v1146_v27, %v3897_v13  ;;  %v3954_v2 = vmul.f32 %v1208_v32, %v3873_v33  ;;  %v3957_v51 = vmul.f32 %v1209_v61, %v3880_v47  ;;  %v1212_v21 = vmul.f32 %v1148_v41, %v3903_v14  ;;  %v1026_v32 = vpop.f32.mrf.mxu1 }
 0x139   : > { %v3962_v15 = vadd.f32 %v3866_v50, %v3691_v25  ;;  %v1213_v8 = vmul.f32 %v1149_v3, %v3909_v9  ;;  %v1215_v63 = vmul.f32 %v1151_v4, %v3913_v43  ;;  %v3968_v17 = vadd.f32 %v3859_v11, %v3698_v30 }
 0x13a   : > { %4661 = vst [vmem:[#allocation19_spill] sm:$0xff] %v3957_v51  ;;  %v3972_v27 = vadd.f32 %v3882_v20, %v3696_v29  ;;  %v1214_v61 = vmul.f32 %v1150_v56, %v3919_v18  ;;  %v1216_v41 = vmul.f32 %v1152_v44, %v3922_v60  ;;  %v1217_v50 = vmul.f32 %v1153_v55, %v3929_v0 }
 0x13b   : > { %v3979_v3 = vadd.f32 %v3885_v62, %v3693_v26  ;;  %v3982_v4 = vmul.f32 %v1211_v22, %v3893_v19  ;;  %v3985_v11 = vmul.f32 %v1210_v31, %v3897_v13  ;;  %v3988_v20 = vadd.f32 %v911_v23, %v3691_v25  ;;  %v921_v22 = vpop.f32.mrf.mxu0 }
 0x13c   : > { %v3991_v51 = vadd.f32 %v1022_v42, %v3698_v30  ;;  %v3994_v56 = vmul.f32 %v1212_v21, %v3903_v14  ;;  %v1155_v44 = vmul.f32 0.044715, %v3962_v15  ;;  %v3998_v62 = vadd.f32 %v913_v24, %v3696_v29 }
 0x13d   : > { %4662 = vst [vmem:[#allocation20_spill] sm:$0xff] %v3979_v3  ;;  %4663 = vst [vmem:[#allocation21_spill] sm:$0xff] %v3982_v4  ;;  %v4001_v55 = vadd.f32 %v1024_v12, %v3693_v26  ;;  %v4004_v31 = vmul.f32 %v1213_v8, %v3909_v9  ;;  %v4007_v23 = vmul.f32 %v1215_v63, %v3913_v43  ;;  %v1154_v42 = vmul.f32 0.044715, %v3968_v17  ;;  %v1030_v4 = vpop.f32.mrf.mxu1 }
 0x13e   : > { %4664 = vst [vmem:[#allocation22_spill] sm:$0xff] %v3994_v56  ;;  %v1156_v21 = vmul.f32 0.044715, %v3972_v27  ;;  %v4012_v19 = vmul.f32 %v1214_v61, %v3919_v18  ;;  %v4015_v24 = vmul.f32 %v1216_v41, %v3922_v60  ;;  %v4018_v12 = vmul.f32 %v1217_v50, %v3929_v0 }
 0x13f   : > { %4665 = vst [vmem:[#allocation23_spill] sm:$0xff] %v4001_v55  ;;  %4666 = vst [vmem:[#allocation24_spill] sm:$0xff] %v4004_v31  ;;  %v1157_v8 = vmul.f32 0.044715, %v3979_v3  ;;  %v1159_v31 = vmul.f32 0.044715, %v3988_v20  ;;  %v4024_v9 = vadd.f32 %v917_v48, %v3691_v25  ;;  %v1219_v61 = vmul.f32 %v1155_v44, %v3962_v15 }
 0x140   : > { %4667 = vst [vmem:[#allocation25_spill] sm:$0xff] %v4007_v23  ;;  %4668 = vst [vmem:[#allocation26_spill] sm:$0xff] %v4012_v19  ;;  %v1158_v63 = vmul.f32 0.044715, %v3991_v51  ;;  %v4027_v23 = vadd.f32 %v1026_v32, %v3698_v30  ;;  %v1160_v41 = vmul.f32 0.044715, %v3998_v62  ;;  %v4033_v50 = vadd.f32 %v919_v58, %v3696_v29  ;;  %v1032_v32 = vpop.f32.mrf.mxu1 }
 0x141   : > { %4669 = vst [vmem:[#allocation27_spill] sm:$0xff] %v4015_v24  ;;  %4670 = vst [vmem:[#allocation28_spill] sm:$0xff] %v4018_v12  ;;  %v1161_v19 = vmul.f32 0.044715, %v4001_v55  ;;  %v923_v12 = vpop.f32.mrf.mxu0  ;;  %v1218_v0 = vmul.f32 %v1154_v42, %v3968_v17  ;;  %v1220_v18 = vmul.f32 %v1156_v21, %v3972_v27  ;;  %v1163_v48 = vmul.f32 0.044715, %v4024_v9 }
 0x142   : > { %4671 = vst [vmem:[#allocation29_spill] sm:$0xff] %v4024_v9  ;;  %v1162_v43 = vmul.f32 0.044715, %v4027_v23  ;;  %v1221_v24 = vmul.f32 %v1157_v8, %v3979_v3  ;;  %v1164_v44 = vmul.f32 0.044715, %v4033_v50  ;;  %v4042_v60 = vadd.f32 %v1030_v4, %v3693_v26 }
 0x143   : > { %v4045_v58 = vadd.f32 %v921_v22, %v3691_v25  ;;  %v1223_v56 = vmul.f32 %v1159_v31, %v3988_v20  ;;  %v1222_v42 = vmul.f32 %v1158_v63, %v3991_v51  ;;  %v4050_v21 = vadd.f32 %v1032_v32, %v3698_v30 }
 0x144   : > { %4672 = vst [vmem:[#allocation30_spill] sm:$0xff] %v4042_v60  ;;  %v4053_v14 = vadd.f32 %v923_v12, %v3696_v29  ;;  %v4056_v8 = vmul.f32 %v1219_v61, %v3962_v15  ;;  %v1224_v47 = vmul.f32 %v1160_v41, %v3998_v62  ;;  %v1225_v4 = vmul.f32 %v1161_v19, %v4001_v55  ;;  %v1034_v12 = vpop.f32.mrf.mxu1 }
 0x145   : > { %4673 = vst [vmem:[#allocation31_spill] sm:$0xff] %v4045_v58  ;;  %4674 = vst [vmem:[#allocation32_spill] sm:$0xff] %v4050_v21  ;;  %v1227_v22 = vmul.f32 %v1163_v48, %v4024_v9  ;;  %v4062_v1 = vmul.f32 %v1218_v0, %v3968_v17  ;;  %v1226_v31 = vmul.f32 %v1162_v43, %v4027_v23  ;;  %v1165_v32 = vmul.f32 0.044715, %v4042_v60 }
 0x146   : > { %4675 = vst [vmem:[#allocation33_spill] sm:$0xff] %v4056_v8  ;;  %v1228_v63 = vmul.f32 %v1164_v44, %v4033_v50  ;;  %v4068_v40 = vmul.f32 %v1220_v18, %v3972_v27  ;;  %v1167_v61 = vmul.f32 0.044715, %v4045_v58  ;;  %v1166_v41 = vmul.f32 0.044715, %v4050_v21 }
 0x147   : > { %v4073_v19 = vadd.f32 %v1034_v12, %v3693_v26  ;;  %v4076_v0 = vmul.f32 %v1221_v24, %v3979_v3  ;;  %v4079_v43 = vmul.f32 %v1223_v56, %v3988_v20  ;;  %v4082_v48 = vmul.f32 %v1222_v42, %v3991_v51 }
 0x148   : > { %v1168_v44 = vmul.f32 0.044715, %v4053_v14  ;;  %v4086_v18 = vmul.f32 %v1224_v47, %v3998_v62  ;;  %v4089_v8 = vmul.f32 %v1225_v4, %v4001_v55  ;;  %v4092_v12 = vmul.f32 %v1227_v22, %v4024_v9  ;;  %v1036_v4 = vpop.f32.mrf.mxu1 }
 0x149   : > { %4676 = vst [vmem:[#allocation34_spill] sm:$0xff] %v4073_v19  ;;  %4677 = vst [vmem:[#allocation35_spill] sm:$0xff] %v4076_v0  ;;  %v1324_v24 = vadd.f32 %v3831_v36, %v3758_v35  ;;  %v927_v0 = vpop.f32.mrf.mxu0  ;;  %v4097_v56 = vmul.f32 %v1226_v31, %v4027_v23  ;;  %v4100_v42 = vmul.f32 %v1228_v63, %v4033_v50 }
 0x14a   : > { %4678 = vst [vmem:[#allocation36_spill] sm:$0xff] %v4089_v8  ;;  %4679 = vst [vmem:[#allocation37_spill] sm:$0xff] %v4092_v12  ;;  %v1229_v3 = vmul.f32 %v1165_v32, %v4042_v60  ;;  %v1328_v47 = vadd.f32 %v3853_v5, %v3779_v57  ;;  %v1231_v8 = vmul.f32 %v1167_v61, %v4045_v58  ;;  %v1169_v12 = vmul.f32 0.044715, %v4073_v19 }
 0x14b   : > { %v1230_v22 = vmul.f32 %v1166_v41, %v4050_v21  ;;  %v1388_v36 = vmul.f32 0.7978846, %v1324_v24  ;;  %v1232_v9 = vmul.f32 %v1168_v44, %v4053_v14  ;;  %v4110_v55 = vadd.f32 %v927_v0, %v3691_v25  ;;  %v929_v41 = vpop.f32.mrf.mxu0 }
 0x14c   : > { %v1392_v31 = vmul.f32 0.7978846, %v1328_v47  ;;  %v1323_v63 = vadd.f32 %v3828_v34, %v3754_v28  ;;  %v4115_v32 = vmul.f32 0.5, %v3758_v35  ;;  %v4118_v5 = vadd.f32 %v1036_v4, %v3698_v30 }
 0x14d   : > { %4680 = vst [vmem:[#allocation38_spill] sm:$0xff] %v4110_v55  ;;  %3078 = vtanh.f32 %v1388_v36  ;;  %v1327_v61 = vadd.f32 %v3846_v52, %v3768_v49  ;;  %v4123_v44 = vmul.f32 %v1229_v3, %v4042_v60  ;;  %v4126_v0 = vmul.f32 0.5, %v3779_v57  ;;  %v1040_v36 = vpop.f32.mrf.mxu1  ;;  %v4687_v60 = vld [vmem:[#allocation8_spill] sm:$0xff] }
 0x14e   : > { %3080 = vtanh.f32 %v1392_v31  ;;  %v1387_v24 = vmul.f32 0.7978846, %v1323_v63  ;;  %v1233_v34 = vmul.f32 %v1169_v12, %v4073_v19  ;;  %v1326_v47 = vadd.f32 %v3849_v39, %v3773_v53 }
 0x14f   : > { %4681 = vst [vmem:[#allocation39_spill] sm:$0xff] %v4123_v44  ;;  %v1391_v35 = vmul.f32 0.7978846, %v1327_v61  ;;  %v1330_v4 = vadd.f32 %v3932_v38, %v3800_v7  ;;  %v1171_v52 = vmul.f32 0.044715, %v4110_v55  ;;  %v4135_v3 = vadd.f32 %v929_v41, %v3696_v29  ;;  %v931_v61 = vpop.f32.mrf.mxu0  ;;  %v4686_v44 = vld [vmem:[#allocation5_spill] sm:$0xff] }
 0x150   : > { %3082 = vtanh.f32 %v1387_v24  ;;  %v4138_v57 = vadd.f32 %v1040_v36, %v3693_v26  ;;  %v1170_v31 = vmul.f32 0.044715, %v4118_v5  ;;  %v1390_v12 = vmul.f32 0.7978846, %v1326_v47 }
 0x151   : > { %4682 = vst [vmem:[#allocation40_spill] sm:$0xff] %v4135_v3  ;;  %3084 = vtanh.f32 %v1391_v35  ;;  %v1394_v63 = vmul.f32 0.7978846, %v1330_v4  ;;  %v4142_v39 = vmul.f32 %v1231_v8, %v4045_v58  ;;  %v4145_v38 = vmul.f32 %v1230_v22, %v4050_v21  ;;  %v1042_v4 = vpop.f32.mrf.mxu1 }
 0x152   : > { %4683 = vst [vmem:[#allocation41_spill] sm:$0xff] %v4138_v57  ;;  %v1172_v24 = vmul.f32 0.044715, %v4135_v3  ;;  %v1173_v41 = vmul.f32 0.044715, %v4138_v57  ;;  %3086 = vtanh.f32 %v1390_v12  ;;  %v1325_v36 = vadd.f32 %v3841_v46, %v3763_v45 }
 0x153   : > { %4684 = vst [vmem:[#allocation42_spill] sm:$0xff] %v4142_v39  ;;  %4685 = vst [vmem:[#allocation43_spill] sm:$0xff] %v4145_v38  ;;  %v1329_v35 = vadd.f32 %v4687_v60, %v4686_v44  ;;  %v4154_v47 = vadd.f32 %v931_v61, %v3691_v25  ;;  %v4157_v8 = vmul.f32 %v1232_v9, %v4053_v14  ;;  %3088 = vtanh.f32 %v1394_v63  ;;  %v933_v60 = vpop.f32.mrf.mxu0  ;;  %v1044_v63 = vpop.f32.mrf.mxu1 }
 0x154   : > { %v4160_v22 = vmul.f32 %v1233_v34, %v4073_v19  ;;  %v1235_v38 = vmul.f32 %v1171_v52, %v4110_v55  ;;  %v1234_v12 = vmul.f32 %v1170_v31, %v4118_v5  ;;  %v1389_v21 = vmul.f32 0.7978846, %v1325_v36 }
 0x155   : > { %4688 = vst [vmem:[#allocation5_spill] sm:$0xff] %v4154_v47  ;;  %v1393_v46 = vmul.f32 0.7978846, %v1329_v35  ;;  %v4165_v39 = vadd.f32 %v1042_v4, %v3698_v30  ;;  %v1067_v61 = vmul.f32 0.5, %v3754_v28  ;;  %v1071_v58 = vmul.f32 0.5, %v3768_v49 }
 0x156   : > { %4689 = vst [vmem:[#allocation8_spill] sm:$0xff] %v4160_v22  ;;  %v1236_v9 = vmul.f32 %v1172_v24, %v4135_v3  ;;  %v1237_v34 = vmul.f32 %v1173_v41, %v4138_v57  ;;  %v1070_v22 = vmul.f32 0.5, %v3773_v53  ;;  %v4173_v52 = vmul.f32 0.5, %v3800_v7 }
 0x157   : > { %3090 = vtanh.f32 %v1389_v21  ;;  %v1175_v31 = vmul.f32 0.044715, %v4154_v47  ;;  %v4177_v36 = vmul.f32 %v1235_v38, %v4110_v55  ;;  %v4180_v28 = vadd.f32 %v933_v60, %v3696_v29 }
 0x158   : > { %3092 = vtanh.f32 %v1393_v46  ;;  %v4183_v49 = vadd.f32 %v1044_v63, %v3693_v26  ;;  %v4186_v24 = vmul.f32 %v1234_v12, %v4118_v5  ;;  %v1174_v53 = vmul.f32 0.044715, %v4165_v39 }
 0x159   : > { %4690 = vst [vmem:[#allocation44_spill] sm:$0xff] %v4177_v36  ;;  %v1332_v7 = vadd.f32 %v3935_v59, %v3812_v37  ;;  %v1336_v21 = vadd.f32 %v3954_v2, %v3873_v33  ;;  %v4194_v41 = vmul.f32 %v1236_v9, %v4135_v3  ;;  %v4197_v35 = vmul.f32 %v1237_v34, %v4138_v57 }
 0x15a   : > { %4691 = vst [vmem:[#allocation45_spill] sm:$0xff] %v4186_v24  ;;  %v3079_v38 = vpop.eup %3078  ;;  %v4200_v4 = vmul.f32 0.5, %v3763_v45  ;;  %v4203_v12 = vmul.f32 0.5, %v4686_v44  ;;  %v1239_v59 = vmul.f32 %v1175_v31, %v4154_v47  ;;  %v1176_v55 = vmul.f32 0.044715, %v4180_v28 }
 0x15b   : > { %4692 = vst [vmem:[#allocation46_spill] sm:$0xff] %v4194_v41  ;;  %4693 = vst [vmem:[#allocation47_spill] sm:$0xff] %v4197_v35  ;;  %v3081_v46 = vpop.eup %3080  ;;  %v1516_v60 = vadd.f32 1.0, %v3079_v38  ;;  %v1396_v63 = vmul.f32 0.7978846, %v1332_v7  ;;  %v4209_v34 = vmul.f32 0.5, %v3812_v37  ;;  %v937_v35 = vpop.f32.mrf.mxu0  ;;  %v1238_v44 = vmul.f32 %v1174_v53, %v4165_v39 }
 0x15c   : > { %v1400_v36 = vmul.f32 0.7978846, %v1336_v21  ;;  %v1520_v2 = vadd.f32 1.0, %v3081_v46  ;;  %v1177_v9 = vmul.f32 0.044715, %v4183_v49  ;;  %v4214_v38 = vmul.f32 0.5, %v3873_v33  ;;  %v1046_v37 = vpop.f32.mrf.mxu1 }
 0x15d   : > { %v3083_v45 = vpop.eup %3082  ;;  %v1580_v57 = vmul.f32 %v1516_v60, %v4115_v32  ;;  %3094 = vtanh.f32 %v1396_v63  ;;  %v4218_v46 = vadd.f32 %v937_v35, %v3691_v25  ;;  %v4221_v3 = vmul.f32 %v1239_v59, %v4154_v47  ;;  %v4696_v32 = vld [vmem:[#allocation6_spill] sm:$0xff]  ;;  %v4697_v60 = vld [vmem:[#allocation9_spill] sm:$0xff]  ;;  %v939_v35 = vpop.f32.mrf.mxu0 }
 0x15e   : > { %v3085_v31 = vpop.eup %3084  ;;  %v1584_v7 = vmul.f32 %v1520_v2, %v4126_v0  ;;  %v1515_v21 = vadd.f32 1.0, %v3083_v45  ;;  %3096 = vtanh.f32 %v1400_v36  ;;  %v1331_v53 = vadd.f32 %v4697_v60, %v4696_v32 }
 0x15f   : > { %4694 = vst [vmem:[#allocation48_spill] sm:$0xff] %v4218_v46  ;;  %v1519_v41 = vadd.f32 1.0, %v3085_v31  ;;  %4695 = vst [vmem:[#allocation49_spill] sm:$0xff] %v4221_v3  ;;  %v1335_v33 = vadd.f32 %v3946_v6, %v3857_v10  ;;  %v3087_v63 = vpop.eup %3086  ;;  %v1240_v0 = vmul.f32 %v1176_v55, %v4180_v28  ;;  %v1241_v36 = vmul.f32 %v1177_v9, %v4183_v49 }
 0x160   : > { %v1640_v19 = vpack.c.bf16 %v1584_v7, %v1580_v57  ;;  %v1579_v24 = vmul.f32 %v1515_v21, %v1067_v61  ;;  %v3089_v2 = vpop.eup %3088  ;;  %v1518_v31 = vadd.f32 1.0, %v3087_v63  ;;  %v4230_v59 = vadd.f32 %v1046_v37, %v3698_v30  ;;  %v1050_v21 = vpop.f32.mrf.mxu1 }
 0x161   : > { %v1583_v45 = vmul.f32 %v1519_v41, %v1071_v58  ;;  %v1395_v3 = vmul.f32 0.7978846, %v1331_v53  ;;  %v1522_v60 = vadd.f32 1.0, %v3089_v2  ;;  %v1179_v47 = vmul.f32 0.044715, %v4218_v46  ;;  %v941_v37 = vpop.f32.mrf.mxu0 }
 0x162   : > { %2103 = vmatprep.mubr.bf16.mxu0 %v1640_v19  ;;  %v1399_v6 = vmul.f32 0.7978846, %v1335_v33  ;;  %v1334_v57 = vadd.f32 %v3949_v54, %v3864_v16  ;;  %v1582_v55 = vmul.f32 %v1518_v31, %v1070_v22  ;;  %v1338_v9 = vadd.f32 %v3985_v11, %v3897_v13 }
 0x163   : > { %v1639_v61 = vpack.c.bf16 %v1583_v45, %v1579_v24  ;;  %3098 = vtanh.f32 %v1395_v3  ;;  %v1586_v41 = vmul.f32 %v1522_v60, %v4173_v52  ;;  %v4239_v19 = vadd.f32 %v939_v35, %v3696_v29  ;;  %v4699_v60 = vld [vmem:[#allocation7_spill] sm:$0xff] }
 0x164   : > { %v3091_v58 = vpop.eup %3090  ;;  %3100 = vtanh.f32 %v1399_v6  ;;  %v1398_v7 = vmul.f32 0.7978846, %v1334_v57  ;;  %v1178_v54 = vmul.f32 0.044715, %v4230_v59  ;;  %v1402_v22 = vmul.f32 0.7978846, %v1338_v9  ;;  %v943_v9 = vpop.f32.mrf.mxu0 }
 0x165   : > { %v3093_v53 = vpop.eup %3092  ;;  %2104 = vmatmul.mubr.bf16.gmra.mxu0 %v1639_v61  ;;  %v1517_v33 = vadd.f32 1.0, %v3091_v58  ;;  %v4243_v3 = vadd.f32 %v1050_v21, %v3693_v26  ;;  %v1642_v11 = vpack.c.bf16 %v1586_v41, %v1582_v55  ;;  %v4246_v52 = vmul.f32 %v1238_v44, %v4165_v39  ;;  %v4700_v6 = vld [vmem:[#allocation18_spill] sm:$0xff]  ;;  %v4702_v44 = vld [vmem:[#allocation19_spill] sm:$0xff] }
 0x166   : > { %v1521_v24 = vadd.f32 1.0, %v3093_v53  ;;  %3102 = vtanh.f32 %v1398_v7  ;;  %v4250_v35 = vmul.f32 %v1240_v0, %v4180_v28  ;;  %v1243_v2 = vmul.f32 %v1179_v47, %v4218_v46  ;;  %v4701_v61 = vld [vmem:[#allocation10_spill] sm:$0xff] }
 0x167   : > { %4698 = vst [vmem:[#allocation6_spill] sm:$0xff] %v4243_v3  ;;  %v1581_v63 = vmul.f32 %v1517_v33, %v4200_v4  ;;  %3104 = vtanh.f32 %v1402_v22  ;;  %2186 = vmatprep.mubr.bf16.mxu1 %v1642_v11  ;;  %v1180_v31 = vmul.f32 0.044715, %v4239_v19  ;;  %v1333_v57 = vadd.f32 %v4700_v6, %v4699_v60 }
 0x168   : > { %v1585_v45 = vmul.f32 %v1521_v24, %v4203_v12  ;;  %v1337_v55 = vadd.f32 %v4702_v44, %v4701_v61  ;;  %v4260_v4 = vmul.f32 %v1241_v36, %v4183_v49  ;;  %v1242_v0 = vmul.f32 %v1178_v54, %v4230_v59  ;;  %v1052_v12 = vpop.f32.mrf.mxu1 }
 0x169   : > { %v1181_v47 = vmul.f32 0.044715, %v4243_v3  ;;  %v4265_v58 = vadd.f32 %v941_v37, %v3691_v25  ;;  %v1397_v21 = vmul.f32 0.7978846, %v1333_v57  ;;  %v4268_v33 = vadd.f32 %v1052_v12, %v3698_v30 }
 0x16a   : > { %v3095_v41 = vpop.eup %3094  ;;  %v1641_v7 = vpack.c.bf16 %v1585_v45, %v1581_v63  ;;  %v1401_v53 = vmul.f32 0.7978846, %v1337_v55  ;;  %v1075_v36 = vmul.f32 0.5, %v4696_v32  ;;  %v1079_v24 = vmul.f32 0.5, %v3857_v10  ;;  %v4704_v55 = vld [vmem:[#allocation12_spill] sm:$0xff] }
 0x16b   : > { %v3097_v22 = vpop.eup %3096  ;;  %v1524_v11 = vadd.f32 1.0, %v3095_v41  ;;  %v4273_v54 = vadd.f32 %v943_v9, %v3696_v29  ;;  %v4276_v37 = vmul.f32 %v1243_v2, %v4218_v46  ;;  %v1244_v63 = vmul.f32 %v1180_v31, %v4239_v19  ;;  %v1054_v41 = vpop.f32.mrf.mxu1  ;;  %v4710_v46 = vld [vmem:[#allocation21_spill] sm:$0xff] }
 0x16c   : > { %2187 = vmatmul.mubr.bf16.gmra.mxu1 %v1641_v7  ;;  %v1528_v25 = vadd.f32 1.0, %v3097_v22  ;;  %3106 = vtanh.f32 %v1397_v21  ;;  %v1078_v6 = vmul.f32 0.5, %v3864_v16  ;;  %v1245_v57 = vmul.f32 %v1181_v47, %v4243_v3  ;;  %v4705_v16 = vld [vmem:[#allocation22_spill] sm:$0xff]  ;;  %v4706_v7 = vld [vmem:[#allocation16_spill] sm:$0xff]  ;;  %v4707_v21 = vld [vmem:[#allocation27_spill] sm:$0xff] }
 0x16d   : > { %4703 = vst [vmem:[#allocation9_spill] sm:$0xff] %v4276_v37  ;;  %v1588_v45 = vmul.f32 %v1524_v11, %v4209_v34  ;;  %3108 = vtanh.f32 %v1401_v53  ;;  %v4284_v29 = vmul.f32 %v1242_v0, %v4230_v59  ;;  %v1183_v32 = vmul.f32 0.044715, %v4265_v58 }
 0x16e   : > { %v1592_v10 = vmul.f32 %v1528_v25, %v4214_v38  ;;  %v1182_v2 = vmul.f32 0.044715, %v4268_v33  ;;  %v1082_v44 = vmul.f32 0.5, %v3897_v13  ;;  %v1077_v31 = vmul.f32 0.5, %v4699_v60 }
 0x16f   : > { %v1184_v34 = vmul.f32 0.044715, %v4273_v54  ;;  %v1340_v9 = vadd.f32 %v4705_v16, %v4704_v55  ;;  %v4294_v38 = vmul.f32 %v1244_v63, %v4239_v19  ;;  %v1081_v0 = vmul.f32 0.5, %v4701_v61 }
 0x170   : > { %v3099_v47 = vpop.eup %3098  ;;  %v1644_v12 = vpack.c.bf16 %v1592_v10, %v1588_v45  ;;  %v1344_v53 = vadd.f32 %v4707_v21, %v4706_v7  ;;  %v4300_v60 = vmul.f32 %v1245_v57, %v4243_v3  ;;  %v4303_v11 = vadd.f32 %v1054_v41, %v3693_v26 }
 0x171   : > { %v3101_v22 = vpop.eup %3100  ;;  %v1523_v13 = vadd.f32 1.0, %v3099_v47  ;;  %v1404_v25 = vmul.f32 0.7978846, %v1340_v9  ;;  %v1247_v63 = vmul.f32 %v1183_v32, %v4265_v58  ;;  %v1246_v10 = vmul.f32 %v1182_v2, %v4268_v33  ;;  %v4709_v47 = vld [vmem:[#allocation11_spill] sm:$0xff]  ;;  %v4711_v9 = vld [vmem:[#allocation14_spill] sm:$0xff] }
 0x172   : > { %4708 = vst [vmem:[#allocation7_spill] sm:$0xff] %v4300_v60  ;;  %2109 = vmatprep.mubr.bf16.mxu0 %v1644_v12  ;;  %v1527_v45 = vadd.f32 1.0, %v3101_v22  ;;  %v1408_v61 = vmul.f32 0.7978846, %v1344_v53  ;;  %v1248_v21 = vmul.f32 %v1184_v34, %v4273_v54  ;;  %v1339_v57 = vadd.f32 %v4710_v46, %v4709_v47  ;;  %v4712_v12 = vld [vmem:[#allocation25_spill] sm:$0xff] }
 0x173   : > { %v3103_v16 = vpop.eup %3102  ;;  %v1587_v37 = vmul.f32 %v1523_v13, %v1075_v36  ;;  %3110 = vtanh.f32 %v1404_v25  ;;  %v1343_v41 = vadd.f32 %v4712_v12, %v4711_v9  ;;  %v1185_v32 = vmul.f32 0.044715, %v4303_v11 }
 0x174   : > { %v3105_v60 = vpop.eup %3104  ;;  %v1591_v3 = vmul.f32 %v1527_v45, %v1079_v24  ;;  %v1526_v26 = vadd.f32 1.0, %v3103_v16  ;;  %3112 = vtanh.f32 %v1408_v61  ;;  %v1084_v2 = vmul.f32 0.5, %v4704_v55  ;;  %v1056_v45 = vpop.f32.mrf.mxu1  ;;  %v4713_v61 = vld [vmem:[#allocation15_spill] sm:$0xff]  ;;  %v4714_v16 = vld [vmem:[#allocation26_spill] sm:$0xff] }
 0x175   : > { %v1530_v22 = vadd.f32 1.0, %v3105_v60  ;;  %v1403_v53 = vmul.f32 0.7978846, %v1339_v57  ;;  %v4315_v34 = vmul.f32 %v1247_v63, %v4265_v58  ;;  %v1407_v25 = vmul.f32 0.7978846, %v1343_v41  ;;  %v4715_v63 = vld [vmem:[#allocation13_spill] sm:$0xff] }
 0x176   : > { %v1643_v36 = vpack.c.bf16 %v1591_v3, %v1587_v37  ;;  %v1590_v13 = vmul.f32 %v1526_v26, %v1078_v6  ;;  %v4318_v24 = vmul.f32 %v1246_v10, %v4268_v33  ;;  %v1342_v60 = vadd.f32 %v4714_v16, %v4713_v61  ;;  %v4716_v10 = vld [vmem:[#allocation24_spill] sm:$0xff]  ;;  %v4717_v26 = vld [vmem:[#allocation17_spill] sm:$0xff] }
 0x177   : > { %v1594_v46 = vmul.f32 %v1530_v22, %v1082_v44  ;;  %3114 = vtanh.f32 %v1403_v53  ;;  %v4323_v12 = vmul.f32 %v1248_v21, %v4273_v54  ;;  %v1088_v3 = vmul.f32 0.5, %v4706_v7  ;;  %v4718_v41 = vld [vmem:[#allocation28_spill] sm:$0xff] }
 0x178   : > { %2110 = vmatmul.mubr.bf16.gmra.mxu0 %v1643_v36  ;;  %3116 = vtanh.f32 %v1407_v25  ;;  %v1346_v37 = vadd.f32 %v4062_v1, %v3968_v17  ;;  %v1406_v55 = vmul.f32 0.7978846, %v1342_v60  ;;  %v1341_v57 = vadd.f32 %v4716_v10, %v4715_v63 }
 0x179   : > { %v3107_v6 = vpop.eup %3106  ;;  %v1646_v44 = vpack.c.bf16 %v1594_v46, %v1590_v13  ;;  %v1345_v22 = vadd.f32 %v4718_v41, %v4717_v26  ;;  %v4333_v21 = vmul.f32 %v1185_v32, %v4303_v11  ;;  %v4336_v7 = vadd.f32 %v1056_v45, %v3698_v30 }
 0x17a   : > { %v3109_v53 = vpop.eup %3108  ;;  %v1525_v36 = vadd.f32 1.0, %v3107_v6  ;;  %v1410_v25 = vmul.f32 0.7978846, %v1346_v37  ;;  %3118 = vtanh.f32 %v1406_v55  ;;  %v1405_v13 = vmul.f32 0.7978846, %v1341_v57 }
 0x17b   : > { %2192 = vmatprep.mubr.bf16.mxu1 %v1646_v44  ;;  %v1529_v1 = vadd.f32 1.0, %v3109_v53  ;;  %v1409_v46 = vmul.f32 0.7978846, %v1345_v22  ;;  %v1348_v60 = vadd.f32 %v4068_v40, %v3972_v27  ;;  %v1352_v6 = vadd.f32 %v4086_v18, %v3998_v62  ;;  %v4719_v44 = vld [vmem:[#allocation33_spill] sm:$0xff] }
 0x17c   : > { %v1589_v16 = vmul.f32 %v1525_v36, %v1077_v31  ;;  %3120 = vtanh.f32 %v1410_v25  ;;  %v1083_v32 = vmul.f32 0.5, %v4709_v47  ;;  %v1087_v30 = vmul.f32 0.5, %v4711_v9 }
 0x17d   : > { %v1593_v10 = vmul.f32 %v1529_v1, %v1081_v0  ;;  %3122 = vtanh.f32 %v1405_v13  ;;  %v1412_v45 = vmul.f32 0.7978846, %v1348_v60  ;;  %v1416_v37 = vmul.f32 0.7978846, %v1352_v6 }
 0x17e   : > { %3124 = vtanh.f32 %v1409_v46  ;;  %v1347_v55 = vadd.f32 %v4719_v44, %v3962_v15  ;;  %v4347_v57 = vmul.f32 0.044715, %v4336_v7  ;;  %v1086_v40 = vmul.f32 0.5, %v4713_v61 }
 0x17f   : > { %v1645_v31 = vpack.c.bf16 %v1593_v10, %v1589_v16  ;;  %v1351_v18 = vadd.f32 %v4079_v43, %v3988_v20  ;;  %3126 = vtanh.f32 %v1412_v45  ;;  %v1350_v9 = vadd.f32 %v4082_v48, %v3991_v51  ;;  %v4720_v16 = vld [vmem:[#allocation20_spill] sm:$0xff]  ;;  %v4721_v48 = vld [vmem:[#allocation35_spill] sm:$0xff] }
 0x180   : > { %v3111_v0 = vpop.eup %3110  ;;  %v1411_v47 = vmul.f32 0.7978846, %v1347_v55  ;;  %v1354_v41 = vadd.f32 %v4097_v56, %v4027_v23  ;;  %v1090_v36 = vmul.f32 0.5, %v3968_v17  ;;  %3128 = vtanh.f32 %v1416_v37  ;;  %v4722_v45 = vld [vmem:[#allocation23_spill] sm:$0xff]  ;;  %v4723_v17 = vld [vmem:[#allocation36_spill] sm:$0xff] }
 0x181   : > { %v3113_v22 = vpop.eup %3112  ;;  %2193 = vmatmul.mubr.bf16.gmra.mxu1 %v1645_v31  ;;  %v1532_v53 = vadd.f32 1.0, %v3111_v0  ;;  %v1415_v25 = vmul.f32 0.7978846, %v1351_v18  ;;  %v1414_v1 = vmul.f32 0.7978846, %v1350_v9  ;;  %v1085_v46 = vmul.f32 0.5, %v4715_v63 }
 0x182   : > { %v1536_v61 = vadd.f32 1.0, %v3113_v22  ;;  %3130 = vtanh.f32 %v1411_v47  ;;  %v1418_v43 = vmul.f32 0.7978846, %v1354_v41  ;;  %v1349_v60 = vadd.f32 %v4721_v48, %v4720_v16  ;;  %v4727_v48 = vld [vmem:[#allocation42_spill] sm:$0xff] }
 0x183   : > { %v1596_v13 = vmul.f32 %v1532_v53, %v1084_v2  ;;  %3132 = vtanh.f32 %v1415_v25  ;;  %v1089_v10 = vmul.f32 0.5, %v4717_v26  ;;  %v1353_v37 = vadd.f32 %v4723_v17, %v4722_v45 }
 0x184   : > { %v3115_v6 = vpop.eup %3114  ;;  %v1600_v56 = vmul.f32 %v1536_v61, %v1088_v3  ;;  %3134 = vtanh.f32 %v1414_v1  ;;  %v1092_v31 = vmul.f32 0.5, %v3972_v27  ;;  %v1413_v2 = vmul.f32 0.7978846, %v1349_v60 }
 0x185   : > { %v3117_v44 = vpop.eup %3116  ;;  %v1531_v55 = vadd.f32 1.0, %v3115_v6  ;;  %3136 = vtanh.f32 %v1418_v43  ;;  %v1417_v0 = vmul.f32 0.7978846, %v1353_v37  ;;  %v1356_v47 = vadd.f32 %v4100_v42, %v4033_v50  ;;  %v4724_v43 = vld [vmem:[#allocation29_spill] sm:$0xff] }
 0x186   : > { %v1648_v18 = vpack.c.bf16 %v1600_v56, %v1596_v13  ;;  %v1535_v63 = vadd.f32 1.0, %v3117_v44  ;;  %v1096_v3 = vmul.f32 0.5, %v3998_v62  ;;  %3138 = vtanh.f32 %v1413_v2  ;;  %v4725_v13 = vld [vmem:[#allocation37_spill] sm:$0xff] }
 0x187   : > { %v1595_v9 = vmul.f32 %v1531_v55, %v1083_v32  ;;  %v1360_v26 = vadd.f32 %v4157_v8, %v4053_v14  ;;  %v3119_v41 = vpop.eup %3118  ;;  %v1091_v27 = vmul.f32 0.5, %v3962_v15  ;;  %3140 = vtanh.f32 %v1417_v0  ;;  %v4726_v32 = vld [vmem:[#allocation31_spill] sm:$0xff] }
 0x188   : > { %2115 = vmatprep.mubr.bf16.mxu0 %v1648_v18  ;;  %v1599_v22 = vmul.f32 %v1535_v63, %v1087_v30  ;;  %v1420_v53 = vmul.f32 0.7978846, %v1356_v47  ;;  %v1534_v61 = vadd.f32 1.0, %v3119_v41  ;;  %v1355_v42 = vadd.f32 %v4725_v13, %v4724_v43  ;;  %v4728_v47 = vld [vmem:[#allocation32_spill] sm:$0xff] }
 0x189   : > { %v3121_v25 = vpop.eup %3120  ;;  %v1424_v1 = vmul.f32 0.7978846, %v1360_v26  ;;  %v1359_v62 = vadd.f32 %v4727_v48, %v4726_v32  ;;  %v1095_v8 = vmul.f32 0.5, %v3988_v20  ;;  %v1094_v2 = vmul.f32 0.5, %v3991_v51  ;;  %v4730_v20 = vld [vmem:[#allocation45_spill] sm:$0xff] }
 0x18a   : > { %v3123_v60 = vpop.eup %3122  ;;  %v1647_v6 = vpack.c.bf16 %v1599_v22, %v1595_v9  ;;  %v1538_v56 = vadd.f32 1.0, %v3121_v25  ;;  %3142 = vtanh.f32 %v1420_v53  ;;  %v1598_v17 = vmul.f32 %v1534_v61, %v1086_v40  ;;  %v4729_v9 = vld [vmem:[#allocation43_spill] sm:$0xff] }
 0x18b   : > { %v3125_v30 = vpop.eup %3124  ;;  %v1533_v15 = vadd.f32 1.0, %v3123_v60  ;;  %3144 = vtanh.f32 %v1424_v1  ;;  %v1419_v37 = vmul.f32 0.7978846, %v1355_v42  ;;  %v1423_v18 = vmul.f32 0.7978846, %v1359_v62 }
 0x18c   : > { %2116 = vmatmul.mubr.bf16.gmra.mxu0 %v1647_v6  ;;  %v1602_v44 = vmul.f32 %v1538_v56, %v1090_v36  ;;  %v1537_v55 = vadd.f32 1.0, %v3125_v30  ;;  %v3127_v63 = vpop.eup %3126  ;;  %v1358_v26 = vadd.f32 %v4729_v9, %v4728_v47  ;;  %v1362_v41 = vadd.f32 %v4730_v20, %v4118_v5 }
 0x18d   : > { %v1597_v0 = vmul.f32 %v1533_v15, %v1085_v46  ;;  %3146 = vtanh.f32 %v1419_v37  ;;  %v3129_v22 = vpop.eup %3128  ;;  %v1540_v25 = vadd.f32 1.0, %v3127_v63  ;;  %v1098_v1 = vmul.f32 0.5, %v4027_v23 }
 0x18e   : > { %v1650_v40 = vpack.c.bf16 %v1602_v44, %v1598_v17  ;;  %v1601_v53 = vmul.f32 %v1537_v55, %v1089_v10  ;;  %3148 = vtanh.f32 %v1423_v18  ;;  %v1544_v36 = vadd.f32 1.0, %v3129_v22  ;;  %v4731_v10 = vld [vmem:[#allocation30_spill] sm:$0xff]  ;;  %v4732_v17 = vld [vmem:[#allocation39_spill] sm:$0xff]  ;;  %v4734_v18 = vld [vmem:[#allocation8_spill] sm:$0xff] }
 0x18f   : > { %v3131_v61 = vpop.eup %3130  ;;  %v1422_v51 = vmul.f32 0.7978846, %v1358_v26  ;;  %v1426_v13 = vmul.f32 0.7978846, %v1362_v41  ;;  %v1604_v48 = vmul.f32 %v1540_v25, %v1092_v31  ;;  %v1093_v60 = vmul.f32 0.5, %v4720_v16  ;;  %v4733_v55 = vld [vmem:[#allocation34_spill] sm:$0xff] }
 0x190   : > { %v3133_v42 = vpop.eup %3132  ;;  %2198 = vmatprep.mubr.bf16.mxu1 %v1650_v40  ;;  %v1649_v46 = vpack.c.bf16 %v1601_v53, %v1597_v0  ;;  %v1539_v62 = vadd.f32 1.0, %v3131_v61  ;;  %v1608_v56 = vmul.f32 %v1544_v36, %v1096_v3  ;;  %v1357_v15 = vadd.f32 %v4732_v17, %v4731_v10  ;;  %v4735_v36 = vld [vmem:[#allocation40_spill] sm:$0xff] }
 0x191   : > { %v3135_v6 = vpop.eup %3134  ;;  %v1543_v30 = vadd.f32 1.0, %v3133_v42  ;;  %3150 = vtanh.f32 %v1422_v51  ;;  %v1361_v63 = vadd.f32 %v4734_v18, %v4733_v55  ;;  %v1097_v3 = vmul.f32 0.5, %v4722_v45  ;;  %v4736_v51 = vld [vmem:[#allocation46_spill] sm:$0xff] }
 0x192   : > { %v3137_v37 = vpop.eup %3136  ;;  %2199 = vmatmul.mubr.bf16.gmra.mxu1 %v1649_v46  ;;  %v1603_v44 = vmul.f32 %v1539_v62, %v1091_v27  ;;  %v1542_v23 = vadd.f32 1.0, %v3135_v6  ;;  %3152 = vtanh.f32 %v1426_v13  ;;  %v1652_v0 = vpack.c.bf16 %v1608_v56, %v1604_v48 }
 0x193   : > { %v1607_v31 = vmul.f32 %v1543_v30, %v1095_v8  ;;  %v1546_v9 = vadd.f32 1.0, %v3137_v37  ;;  %v1421_v26 = vmul.f32 0.7978846, %v1357_v15  ;;  %v3139_v16 = vpop.eup %3138  ;;  %v1100_v41 = vmul.f32 0.5, %v4033_v50  ;;  %v4737_v15 = vld [vmem:[#allocation38_spill] sm:$0xff]  ;;  %v4738_v37 = vld [vmem:[#allocation44_spill] sm:$0xff] }
 0x194   : > { %v1606_v20 = vmul.f32 %v1542_v23, %v1094_v2  ;;  %v1425_v22 = vmul.f32 0.7978846, %v1361_v63  ;;  %v3141_v40 = vpop.eup %3140  ;;  %2121 = vmatprep.mubr.bf16.mxu0 %v1652_v0  ;;  %v1541_v25 = vadd.f32 1.0, %v3139_v16  ;;  %v1364_v8 = vadd.f32 %v4736_v51, %v4735_v36  ;;  %v4740_v23 = vld [vmem:[#allocation49_spill] sm:$0xff] }
 0x195   : > { %v1651_v53 = vpack.c.bf16 %v1607_v31, %v1603_v44  ;;  %v1610_v27 = vmul.f32 %v1546_v9, %v1098_v1  ;;  %3154 = vtanh.f32 %v1421_v26  ;;  %v1545_v61 = vadd.f32 1.0, %v3141_v40  ;;  %v4739_v44 = vld [vmem:[#allocation5_spill] sm:$0xff] }
 0x196   : > { %3156 = vtanh.f32 %v1425_v22  ;;  %v1368_v13 = vadd.f32 %v4250_v35, %v4180_v28  ;;  %v1605_v42 = vmul.f32 %v1541_v25, %v1093_v60  ;;  %v1104_v50 = vmul.f32 0.5, %v4053_v14 }
 0x197   : > { %v3143_v2 = vpop.eup %3142  ;;  %2122 = vmatmul.mubr.bf16.gmra.mxu0 %v1651_v53  ;;  %v1654_v45 = vpack.c.bf16 %v1610_v27, %v1606_v20  ;;  %v1099_v46 = vmul.f32 0.5, %v4724_v43  ;;  %v1609_v1 = vmul.f32 %v1545_v61, %v1097_v3  ;;  %v1428_v6 = vmul.f32 0.7978846, %v1364_v8 }
 0x198   : > { %v3145_v48 = vpop.eup %3144  ;;  %v1548_v62 = vadd.f32 1.0, %v3143_v2  ;;  %v1432_v56 = vmul.f32 0.7978846, %v1368_v13  ;;  %v1103_v17 = vmul.f32 0.5, %v4726_v32  ;;  %v1363_v35 = vadd.f32 %v4738_v37, %v4737_v15  ;;  %v4742_v13 = vld [vmem:[#allocation47_spill] sm:$0xff] }
 0x199   : > { %2204 = vmatprep.mubr.bf16.mxu1 %v1654_v45  ;;  %v1552_v30 = vadd.f32 1.0, %v3145_v48  ;;  %v1367_v18 = vadd.f32 %v4740_v23, %v4739_v44  ;;  %v1653_v63 = vpack.c.bf16 %v1609_v1, %v1605_v42  ;;  %v1102_v43 = vmul.f32 0.5, %v4728_v47 }
 0x19a   : > { %v3147_v60 = vpop.eup %3146  ;;  %v1612_v14 = vmul.f32 %v1548_v62, %v1100_v41  ;;  %3158 = vtanh.f32 %v1428_v6  ;;  %v1427_v26 = vmul.f32 0.7978846, %v1363_v35  ;;  %v1366_v20 = vadd.f32 %v4246_v52, %v4165_v39  ;;  %v4741_v52 = vld [vmem:[#allocation41_spill] sm:$0xff] }
 0x19b   : > { %v3149_v0 = vpop.eup %3148  ;;  %v1616_v31 = vmul.f32 %v1552_v30, %v1104_v50  ;;  %v1547_v9 = vadd.f32 1.0, %v3147_v60  ;;  %3160 = vtanh.f32 %v1432_v56  ;;  %2205 = vmatmul.mubr.bf16.gmra.mxu1 %v1653_v63  ;;  %v1431_v32 = vmul.f32 0.7978846, %v1367_v18  ;;  %v4743_v60 = vld [vmem:[#allocation48_spill] sm:$0xff]  ;;  %v4744_v63 = vld [vmem:[#allocation9_spill] sm:$0xff] }
 0x19c   : > { %v1551_v16 = vadd.f32 1.0, %v3149_v0  ;;  %v1370_v3 = vadd.f32 %v4284_v29, %v4230_v59  ;;  %v1106_v41 = vmul.f32 0.5, %v4118_v5  ;;  %3162 = vtanh.f32 %v1427_v26 }
 0x19d   : > { %v1656_v22 = vpack.c.bf16 %v1616_v31, %v1612_v14  ;;  %v1611_v40 = vmul.f32 %v1547_v9, %v1099_v46  ;;  %3164 = vtanh.f32 %v1431_v32  ;;  %v1430_v27 = vmul.f32 0.7978846, %v1366_v20 }
 0x19e   : > { %v3151_v47 = vpop.eup %3150  ;;  %v1615_v53 = vmul.f32 %v1551_v16, %v1103_v17  ;;  %v1434_v25 = vmul.f32 0.7978846, %v1370_v3  ;;  %v1250_v51 = vmul.f32 %v4347_v57, %v4336_v7  ;;  %v1365_v2 = vadd.f32 %v4742_v13, %v4741_v52 }
 0x19f   : > { %v3153_v61 = vpop.eup %3152  ;;  %2127 = vmatprep.mubr.bf16.mxu0 %v1656_v22  ;;  %v1550_v8 = vadd.f32 1.0, %v3151_v47  ;;  %v1369_v29 = vadd.f32 %v4260_v4, %v4183_v49  ;;  %v1101_v42 = vmul.f32 0.5, %v4731_v10  ;;  %3166 = vtanh.f32 %v1430_v27  ;;  %v4746_v27 = vld [vmem:[#allocation7_spill] sm:$0xff] }
 0x1a0   : > { %v1655_v45 = vpack.c.bf16 %v1615_v53, %v1611_v40  ;;  %v1554_v5 = vadd.f32 1.0, %v3153_v61  ;;  %3168 = vtanh.f32 %v1434_v25  ;;  %v1429_v46 = vmul.f32 0.7978846, %v1365_v2  ;;  %v4745_v53 = vld [vmem:[#allocation6_spill] sm:$0xff] }
 0x1a1   : > { %v1614_v50 = vmul.f32 %v1550_v8, %v1102_v43  ;;  %v1433_v48 = vmul.f32 0.7978846, %v1369_v29  ;;  %v1105_v62 = vmul.f32 0.5, %v4733_v55  ;;  %v1372_v6 = vadd.f32 %v4294_v38, %v4239_v19 }
 0x1a2   : > { %v3155_v1 = vpop.eup %3154  ;;  %2128 = vmatmul.mubr.bf16.gmra.mxu0 %v1655_v45  ;;  %v1618_v57 = vmul.f32 %v1554_v5, %v1106_v41  ;;  %v1376_v4 = vadd.f32 %v4323_v12, %v4273_v54  ;;  %v1313_v10 = vmul.f32 %v4333_v21, %v4303_v11  ;;  %v1314_v30 = vmul.f32 %v1250_v51, %v4336_v7 }
 0x1a3   : > { %v3157_v56 = vpop.eup %3156  ;;  %v1549_v17 = vadd.f32 1.0, %v3155_v1  ;;  %3170 = vtanh.f32 %v1429_v46  ;;  %v1436_v23 = vmul.f32 0.7978846, %v1372_v6  ;;  %v1371_v38 = vadd.f32 %v4744_v63, %v4743_v60 }
 0x1a4   : > { %v1658_v37 = vpack.c.bf16 %v1618_v57, %v1614_v50  ;;  %v1553_v35 = vadd.f32 1.0, %v3157_v56  ;;  %3172 = vtanh.f32 %v1433_v48  ;;  %v1440_v55 = vmul.f32 0.7978846, %v1376_v4 }
 0x1a5   : > { %v1613_v18 = vmul.f32 %v1549_v17, %v1101_v42  ;;  %v1375_v12 = vadd.f32 %v4315_v34, %v4265_v58  ;;  %v1108_v21 = vmul.f32 0.5, %v4735_v36  ;;  %v1112_v43 = vmul.f32 0.5, %v4180_v28 }
 0x1a6   : > { %2210 = vmatprep.mubr.bf16.mxu1 %v1658_v37  ;;  %v1617_v14 = vmul.f32 %v1553_v35, %v1105_v62  ;;  %3174 = vtanh.f32 %v1436_v23  ;;  %v1435_v31 = vmul.f32 0.7978846, %v1371_v38  ;;  %v1374_v26 = vadd.f32 %v4318_v24, %v4268_v33 }
 0x1a7   : > { %v3159_v0 = vpop.eup %3158  ;;  %3176 = vtanh.f32 %v1440_v55  ;;  %v1439_v9 = vmul.f32 0.7978846, %v1375_v12  ;;  %v1107_v3 = vmul.f32 0.5, %v4737_v15  ;;  %v1378_v34 = vadd.f32 %v1314_v30, %v4336_v7 }
 0x1a8   : > { %v3161_v16 = vpop.eup %3160  ;;  %v1657_v32 = vpack.c.bf16 %v1617_v14, %v1613_v18  ;;  %v1556_v20 = vadd.f32 1.0, %v3159_v0  ;;  %v1111_v36 = vmul.f32 0.5, %v4739_v44  ;;  %3178 = vtanh.f32 %v1435_v31 }
 0x1a9   : > { %v1560_v22 = vadd.f32 1.0, %v3161_v16  ;;  %v1438_v28 = vmul.f32 0.7978846, %v1374_v26  ;;  %v3163_v40 = vpop.eup %3162  ;;  %3180 = vtanh.f32 %v1439_v9  ;;  %v1442_v47 = vmul.f32 0.7978846, %v1378_v34 }
 0x1aa   : > { %2211 = vmatmul.mubr.bf16.gmra.mxu1 %v1657_v32  ;;  %v1620_v41 = vmul.f32 %v1556_v20, %v1108_v21  ;;  %v1373_v24 = vadd.f32 %v4746_v27, %v4745_v53  ;;  %v3165_v25 = vpop.eup %3164  ;;  %v1555_v51 = vadd.f32 1.0, %v3163_v40  ;;  %v1377_v15 = vadd.f32 %v1313_v10, %v4303_v11 }
 0x1ab   : > { %v1624_v61 = vmul.f32 %v1560_v22, %v1112_v43  ;;  %3182 = vtanh.f32 %v1438_v28  ;;  %v1559_v8 = vadd.f32 1.0, %v3165_v25  ;;  %v1110_v13 = vmul.f32 0.5, %v4165_v39 }
 0x1ac   : > { %3184 = vtanh.f32 %v1442_v47  ;;  %v1437_v44 = vmul.f32 0.7978846, %v1373_v24  ;;  %v3167_v2 = vpop.eup %3166  ;;  %v1619_v45 = vmul.f32 %v1555_v51, %v1107_v3  ;;  %v1114_v5 = vmul.f32 0.5, %v4230_v59 }
 0x1ad   : > { %v1660_v29 = vpack.c.bf16 %v1624_v61, %v1620_v41  ;;  %v1441_v42 = vmul.f32 0.7978846, %v1377_v15  ;;  %v3169_v50 = vpop.eup %3168  ;;  %v1623_v46 = vmul.f32 %v1559_v8, %v1111_v36  ;;  %v1558_v48 = vadd.f32 1.0, %v3167_v2  ;;  %v4747_v15 = vld [vmem:[#allocation3_spill] sm:$0xff] }
 0x1ae   : > { %3186 = vtanh.f32 %v1437_v44  ;;  %v1562_v1 = vadd.f32 1.0, %v3169_v50  ;;  %v1109_v57 = vmul.f32 0.5, %v4741_v52  ;;  %v1113_v4 = vmul.f32 0.5, %v4183_v49 }
 0x1af   : > { %2133 = vmatprep.mubr.bf16.mxu0 %v1660_v29  ;;  %3188 = vtanh.f32 %v1441_v42  ;;  %v1659_v6 = vpack.c.bf16 %v1623_v46, %v1619_v45  ;;  %v1622_v39 = vmul.f32 %v1558_v48, %v1110_v13  ;;  %v1116_v17 = vmul.f32 0.5, %v4239_v19  ;;  %v3196_v46 = vld [vmem:[%s3406_s26] sm:$0xff] }
 0x1b0   : > { %v3171_v62 = vpop.eup %3170  ;;  %v1626_v10 = vmul.f32 %v1562_v1, %v1114_v5  ;;  %v1120_v18 = vmul.f32 0.5, %v4273_v54  ;;  %v1115_v12 = vmul.f32 0.5, %v4743_v60  ;;  %v1119_v43 = vmul.f32 0.5, %v4265_v58 }
 0x1b1   : > { %v3173_v56 = vpop.eup %3172  ;;  %v1557_v30 = vadd.f32 1.0, %v3171_v62  ;;  %2134 = vmatmul.mubr.bf16.gmra.mxu0 %v1659_v6  ;;  %v1118_v9 = vmul.f32 0.5, %v4268_v33  ;;  %v1122_v16 = vmul.f32 0.5, %v4336_v7  ;;  %v1117_v36 = vmul.f32 0.5, %v4745_v53  ;;  %v1731_v53 = vld [vmem:[%s4584_s4] sm:$0x3] }
 0x1b2   : > { %v1561_v59 = vadd.f32 1.0, %v3173_v56  ;;  %v1662_v35 = vpack.c.bf16 %v1626_v10, %v1622_v39  ;;  %v1121_v40 = vmul.f32 0.5, %v4303_v11  ;;  %v1736_v8 = vrot.slane %v1731_v53, %v4747_v15  ;;  %v4748_v11 = vld [vmem:[#allocation4_spill] sm:$0xff] }
 0x1b3   : > { %v3175_v37 = vpop.eup %3174  ;;  %v1621_v23 = vmul.f32 %v1557_v30, %v1109_v57  ;;  %v1740_v13 = vrot.slane %v1731_v53, %v4748_v11  ;;  %v2229_v48 = vunpack.c.l.bf16 %v3196_v46  ;;  %v2230_v1 = vunpack.c.h.bf16 %v3196_v46 }
 0x1b4   : > { %v3177_v55 = vpop.eup %3176  ;;  %v1625_v52 = vmul.f32 %v1561_v59, %v1113_v4  ;;  %v1564_v63 = vadd.f32 1.0, %v3175_v37  ;;  %2216 = vmatprep.mubr.bf16.mxu1 %v1662_v35  ;;  %v3014_v59 = vld [vmem:[%s4587_s7 + $0x70] ss:$8 sps:$4 sm:$0xff]   ;;  %v3019_v37 = vld [vmem:[%s4587_s7 + $0x64] ss:$8 sps:$4 sm:$0xff]  }
 0x1b5   : > { %v1568_v38 = vadd.f32 1.0, %v3177_v55  ;;  %v3179_v49 = vpop.eup %3178  ;;  %v3017_v35 = vld [vmem:[%s4587_s7 + $0x60] ss:$8 sps:$4 sm:$0xff]   ;;  %v3025_v55 = vld [vmem:[%s4587_s7 + $0x44] ss:$8 sps:$4 sm:$0xff]  }
 0x1b6   : > { %v1661_v14 = vpack.c.bf16 %v1625_v52, %v1621_v23  ;;  %v1628_v21 = vmul.f32 %v1564_v63, %v1116_v17  ;;  %v3181_v0 = vpop.eup %3180  ;;  %v1563_v19 = vadd.f32 1.0, %v3179_v49  ;;  %v3016_v17 = vld [vmem:[%s4587_s7 + $0x74] ss:$8 sps:$4 sm:$0xff]   ;;  %v3023_v52 = vld [vmem:[%s4587_s7 + $0x40] ss:$8 sps:$4 sm:$0xff]  }
 0x1b7   : > { %v1632_v31 = vmul.f32 %v1568_v38, %v1120_v18  ;;  %v1567_v54 = vadd.f32 1.0, %v3181_v0  ;;  %2484 = vmatprep.subr.bf16.mxu0 %v3016_v17  ;;  %v3022_v23 = vld [vmem:[%s4587_s7 + $0x54] ss:$8 sps:$4 sm:$0xff]   ;;  %v3020_v18 = vld [vmem:[%s4587_s7 + $0x50] ss:$8 sps:$4 sm:$0xff]  }
 0x1b8   : > { %v3183_v26 = vpop.eup %3182  ;;  %2217 = vmatmul.mubr.bf16.gmra.mxu1 %v1661_v14  ;;  %v1627_v3 = vmul.f32 %v1563_v19, %v1115_v12  ;;  %2485 = vmatpush1.bf16.msra.mxu0 %v3014_v59  ;;  %v3028_v63 = vld [vmem:[%s4587_s7 + $0x34] ss:$8 sps:$4 sm:$0xff]   ;;  %v3026_v38 = vld [vmem:[%s4587_s7 + $0x30] ss:$8 sps:$4 sm:$0xff]   ;;  %v3031_v12 = vld [vmem:[%s4587_s7 + $0x24] ss:$8 sps:$4 sm:$0xff]  }
 0x1b9   : > { %v3185_v32 = vpop.eup %3184  ;;  %v1664_v20 = vpack.c.bf16 %v1632_v31, %v1628_v21  ;;  %v1566_v34 = vadd.f32 1.0, %v3183_v26  ;;  %v1631_v60 = vmul.f32 %v1567_v54, %v1119_v43  ;;  %2486 = vmatprep.subr.bf16.mxu0 %v3019_v37  ;;  %v3029_v14 = vld [vmem:[%s4587_s7 + $0x20] ss:$8 sps:$4 sm:$0xff]   ;;  %v3034_v21 = vld [vmem:[%s4587_s7 + $0x14] ss:$8 sps:$4 sm:$0xff]  }
 0x1ba   : > { %v1570_v22 = vadd.f32 1.0, %v3185_v32  ;;  %v3032_v31 = vld [vmem:[%s4587_s7 + $0x10] ss:$8 sps:$4 sm:$0xff]   ;;  %v3037_v19 = vld [vmem:[%s4587_s7 + $0x4] ss:$8 sps:$4 sm:$0xff]  }
 0x1bb   : > { %v3187_v28 = vpop.eup %3186  ;;  %2139 = vmatprep.mubr.bf16.mxu0 %v1664_v20  ;;  %v1630_v58 = vmul.f32 %v1566_v34, %v1118_v9  ;;  %v1663_v33 = vpack.c.bf16 %v1631_v60, %v1627_v3  ;;  %v3035_v54 = vld [vmem:[%s4587_s7] ss:$8 sps:$4 sm:$0xff]   ;;  %v3040_v32 = vld [vmem:[%s4587_s7 + $0xf4] ss:$8 sps:$4 sm:$0xff]   ;;  %v3038_v3 = vld [vmem:[%s4587_s7 + $0xf0] ss:$8 sps:$4 sm:$0xff]  }
 0x1bc   : > { %v3189_v41 = vpop.eup %3188  ;;  %v1634_v47 = vmul.f32 %v1570_v22, %v1122_v16  ;;  %v1565_v27 = vadd.f32 1.0, %v3187_v28  ;;  %2487 = vmatpush1.bf16.msra.mxu0 %v3017_v35  ;;  %v3043_v60 = vld [vmem:[%s4587_s7 + $0xe4] ss:$8 sps:$4 sm:$0xff]   ;;  %v3041_v22 = vld [vmem:[%s4587_s7 + $0xe0] ss:$8 sps:$4 sm:$0xff]  }
 0x1bd   : > { %v1569_v24 = vadd.f32 1.0, %v3189_v41  ;;  %2140 = vmatmul.mubr.bf16.gmra.mxu0 %v1663_v33  ;;  %2488 = vmatprep.subr.bf16.mxu0 %v3022_v23 }
 0x1be   : > { %v1666_v7 = vpack.c.bf16 %v1634_v47, %v1630_v58  ;;  %v1629_v25 = vmul.f32 %v1565_v27, %v1117_v36 }
 0x1bf   : > { %v1633_v61 = vmul.f32 %v1569_v24, %v1121_v40 }
 0x1c0   : > { %2222 = vmatprep.mubr.bf16.mxu1 %v1666_v7  ;;  %2489 = vmatpush1.bf16.msra.mxu0 %v3020_v18 }
 0x1c1   : > { %v1665_v51 = vpack.c.bf16 %v1633_v61, %v1629_v25  ;;  %2490 = vmatprep.subr.bf16.mxu0 %v3025_v55 }
 0x1c3   : > { %2223 = vmatmul.mubr.bf16.gmra.mxu1 %v1665_v51 }
 0x1c4   : > { %2491 = vmatpush1.bf16.msra.mxu0 %v3023_v52 }
 0x1c5   : > { %2492 = vmatprep.subr.bf16.mxu0 %v3028_v63 }
 0x1c8   : > { %2493 = vmatpush1.bf16.msra.mxu0 %v3026_v38 }
 0x1c9   : > { %2494 = vmatprep.subr.bf16.mxu0 %v3031_v12 }
 0x1cc   : > { %2495 = vmatpush1.bf16.msra.mxu0 %v3029_v14 }
 0x1cd   : > { %2496 = vmatprep.subr.bf16.mxu0 %v3034_v21 }
 0x1d0   : > { %2497 = vmatpush1.bf16.msra.mxu0 %v3032_v31 }
 0x1d1   : > { %2498 = vmatprep.subr.bf16.mxu0 %v3037_v19 }
 0x1d4   : > { %2499 = vmatpush1.bf16.msra.mxu0 %v3035_v54 }
 0x1d5   : > { %2500 = vmatprep.subr.bf16.mxu0 %v3040_v32 }
 0x1d8   : > { %2501 = vmatpush2.bf16.msra.mxu0 %v3038_v3  ;;  %v3044_v3 = vld [vmem:[%s4587_s7 + $0xd0] ss:$8 sps:$4 sm:$0xff]  }
 0x1d9   : > { %2502 = vmatprep.subr.bf16.mxu0 %v3043_v60  ;;  %v3050_v60 = vld [vmem:[%s4587_s7 + $0xb0] ss:$8 sps:$4 sm:$0xff]  }
 0x1dc   : > { %2503 = vmatpush2.bf16.msra.mxu0 %v3041_v22  ;;  %v3055_v22 = vld [vmem:[%s4587_s7 + $0xa4] ss:$8 sps:$4 sm:$0xff]  }
 0x1f5   : > { %v2097_v44 = vpop.f32.mrf.mxu0 }
 0x1f6   : > { %v2098_v2 = vadd.f32 %v2097_v44, %v1736_v8  ;;  %v2180_v29 = vpop.f32.mrf.mxu1 }
 0x1f7   : > { %v2099_v45 = vpop.f32.mrf.mxu0 }
 0x1f8   : > { %v2181_v5 = vadd.f32 %v2180_v29, %v2098_v2  ;;  %v2100_v42 = vadd.f32 %v2099_v45, %v1740_v13  ;;  %v2182_v50 = vpop.f32.mrf.mxu1 }
 0x1f9   : > { %v2101_v57 = vpop.f32.mrf.mxu0 }
 0x1fa   : > { %v2183_v62 = vadd.f32 %v2182_v50, %v2100_v42  ;;  %v2184_v6 = vpop.f32.mrf.mxu1  ;;  %v4452_v56 = vadd.f32 %v2229_v48, %v2181_v5 }
 0x1fb   : > { %v2102_v39 = vpop.f32.mrf.mxu0 }
 0x1fc   : > { %v2185_v4 = vpop.f32.mrf.mxu1  ;;  %v4454_v10 = vadd.f32 %v2230_v1, %v2183_v62 }
 0x1fe   : > { %v2235_v30 = vadd.f32 %v4454_v10, %v4452_v56 }
 0x200   : > { %2236 = vadd.xlane.f32.xlu0 %v2235_v30 }
 0x225   : > { %v2105_v49 = vpop.f32.mrf.mxu0 }
 0x227   : > { %v2106_v43 = vpop.f32.mrf.mxu0 }
 0x229   : > { %v2107_v0 = vpop.f32.mrf.mxu0 }
 0x22b   : > { %v2108_v9 = vpop.f32.mrf.mxu0 }
 0x22c   : > { %v2188_v26 = vpop.f32.mrf.mxu1 }
 0x22e   : > { %v2189_v16 = vpop.f32.mrf.mxu1 }
 0x230   : > { %v2190_v20 = vpop.f32.mrf.mxu1 }
 0x231   : > { %v3046_v20 = vld [vmem:[%s4587_s7 + $0xd4] ss:$8 sps:$4 sm:$0xff]  }
 0x232   : > { %v2191_v34 = vpop.f32.mrf.mxu1  ;;  %2504 = vmatprep.subr.bf16.mxu0 %v3046_v20 }
 0x233   : > { %v3049_v34 = vld [vmem:[%s4587_s7 + $0xc4] ss:$8 sps:$4 sm:$0xff]   ;;  %2505 = vmatpush2.bf16.msra.mxu0 %v3044_v3 }
 0x234   : > { %2506 = vmatprep.subr.bf16.mxu0 %v3049_v34 }
 0x238   : > { %v2111_v36 = vpop.f32.mrf.mxu0 }
 0x239   : > { %v3053_v36 = vld [vmem:[%s4587_s7 + $0xa0] ss:$8 sps:$4 sm:$0xff]  }
 0x23a   : > { %v2112_v28 = vpop.f32.mrf.mxu0 }
 0x23b   : > { %v3058_v28 = vld [vmem:[%s4587_s7 + $0x94] ss:$8 sps:$4 sm:$0xff]  }
 0x23c   : > { %v2113_v58 = vpop.f32.mrf.mxu0 }
 0x23d   : > { %v3056_v58 = vld [vmem:[%s4587_s7 + $0x90] ss:$8 sps:$4 sm:$0xff]  }
 0x23e   : > { %v2114_v40 = vpop.f32.mrf.mxu0 }
 0x23f   : > { %v3061_v40 = vld [vmem:[%s4587_s7 + $0x84] ss:$8 sps:$4 sm:$0xff]  }
 0x241   : > { %v2194_v41 = vpop.f32.mrf.mxu1 }
 0x242   : > { %v3059_v41 = vld [vmem:[%s4587_s7 + $0x80] ss:$8 sps:$4 sm:$0xff]  }
 0x243   : > { %v2195_v33 = vpop.f32.mrf.mxu1 }
 0x245   : > { %v2196_v47 = vpop.f32.mrf.mxu1 }
 0x247   : > { %v2197_v27 = vpop.f32.mrf.mxu1 }
 0x24c   : > { %v2117_v24 = vpop.f32.mrf.mxu0 }
 0x24d   : > { %v2233_v24 = vld [vmem:[%s4585_s5] sm:$0x3] }
 0x24e   : > { %v2118_v7 = vpop.f32.mrf.mxu0 }
 0x24f   : > { %v2234_v7 = vld [vmem:[%s4586_s6] sm:$0x3] }
 0x250   : > { %v2119_v25 = vpop.f32.mrf.mxu0 }
 0x251   : > { %v2256_v25 = vrot.slane %v2233_v24, %v4747_v15 }
 0x252   : > { %v2200_v61 = vpop.f32.mrf.mxu1  ;;  %v2120_v51 = vpop.f32.mrf.mxu0 }
 0x253   : > { %v2260_v61 = vrot.slane %v2233_v24, %v4748_v11 }
 0x254   : > { %v2201_v53 = vpop.f32.mrf.mxu1 }
 0x256   : > { %v2202_v8 = vpop.f32.mrf.mxu1 }
 0x257   : > { %v2123_v13 = vpop.f32.mrf.mxu0 }
 0x258   : > { %v2203_v44 = vpop.f32.mrf.mxu1  ;;  %v2269_v13 = vrot.slane %v2234_v7, %v4747_v15 }
 0x259   : > { %v2124_v2 = vpop.f32.mrf.mxu0  ;;  %v2273_v44 = vrot.slane %v2234_v7, %v4748_v11 }
 0x25b   : > { %v2125_v29 = vpop.f32.mrf.mxu0  ;;  %v2206_v45 = vpop.f32.mrf.mxu1 }
 0x25d   : > { %v2126_v5 = vpop.f32.mrf.mxu0  ;;  %v2207_v42 = vpop.f32.mrf.mxu1 }
 0x25f   : > { %v2208_v50 = vpop.f32.mrf.mxu1 }
 0x261   : > { %v2209_v48 = vpop.f32.mrf.mxu1 }
 0x262   : > { %v2129_v46 = vpop.f32.mrf.mxu0 }
 0x263   : > { %v2312_v46 = vld [vmem:[%s4588_s8] sm:$0x3] }
 0x264   : > { %v2130_v1 = vpop.f32.mrf.mxu0  ;;  %v2477_v48 = vrot.slane %v2312_v46, %v4747_v15 }
 0x265   : > { %v2481_v1 = vrot.slane %v2312_v46, %v4748_v11  ;;  %v4750_v11 = vlaneseq }
 0x266   : > { %v2131_v57 = vpop.f32.mrf.mxu0 }
 0x267   : > { %vm2547_vm0 = vcmp.lt.s32.totalorder %v4750_v11, 256 }
 0x268   : > { %v2132_v62 = vpop.f32.mrf.mxu0 }
 0x26a   : > { %v2212_v6 = vpop.f32.mrf.mxu1 }
 0x26c   : > { %v2213_v39 = vpop.f32.mrf.mxu1 }
 0x26e   : > { %v2214_v4 = vpop.f32.mrf.mxu1 }
 0x270   : > { %v2215_v30 = vpop.f32.mrf.mxu1 }
 0x271   : > { %v2135_v59 = vpop.f32.mrf.mxu0 }
 0x272   : > { %v3205_v59 = vmov 1966171168  }
 0x273   : > { %v2136_v17 = vpop.f32.mrf.mxu0 }
 0x274   : > { %v2531_v17 = vunpack.c.l.s4 %v3205_v59 }
 0x275   : > { %v2137_v37 = vpop.f32.mrf.mxu0 }
 0x276   : > { %v2532_v37 = vunpack.c.0.s8 %v2531_v17 }
 0x277   : > { %v2138_v23 = vpop.f32.mrf.mxu0 }
 0x278   : > { %v2218_v35 = vpop.f32.mrf.mxu1  ;;  %v4749_v23 = vld [vmem:[#allocation2_spill] sm:$0xff] }
 0x27a   : > { %v2219_v18 = vpop.f32.mrf.mxu1 }
 0x27b   : > { %v2535_v18 = vsub.s32 %v2532_v37, %v4749_v23 }
 0x27c   : > { %v2220_v55 = vpop.f32.mrf.mxu1 }
 0x27d   : > { %v2141_v52 = vpop.f32.mrf.mxu0 }
 0x27e   : > { %v2221_v63 = vpop.f32.mrf.mxu1 }
 0x27f   : > { %v2142_v38 = vpop.f32.mrf.mxu0 }
 0x281   : > { %v2143_v12 = vpop.f32.mrf.mxu0 }
 0x283   : > { %v2224_v49 = vpop.f32.mrf.mxu1  ;;  %v2144_v14 = vpop.f32.mrf.mxu0 }
 0x285   : > { %v2225_v21 = vpop.f32.mrf.mxu1 }
 0x287   : > { %v2226_v43 = vpop.f32.mrf.mxu1 }
 0x289   : > { %v2237_v0 = vpop.xlane.xlu0 %2236  ;;  %v2227_v31 = vpop.f32.mrf.mxu1 }
 0x28a   : > { %v2239_v19 = vmul.f32 0.00390625, %v2237_v0 }
 0x28c   : > { %v2240_v9 = vsub.f32 %v4452_v56, %v2239_v19  ;;  %v2241_v26 = vsub.f32 %v4454_v10, %v2239_v19  ;;  %v3047_v56 = vld [vmem:[%s4587_s7 + $0xc0] ss:$8 sps:$4 sm:$0xff]   ;;  %v3052_v10 = vld [vmem:[%s4587_s7 + $0xb4] ss:$8 sps:$4 sm:$0xff]  }
 0x28d   : > { %2507 = vmatpush2.bf16.msra.mxu0 %v3047_v56 }
 0x28e   : > { %v2242_v54 = vmul.f32 %v2240_v9, %v2240_v9  ;;  %v2243_v16 = vmul.f32 %v2241_v26, %v2241_v26  ;;  %2508 = vmatprep.subr.bf16.mxu0 %v3052_v10 }
 0x290   : > { %v2244_v32 = vadd.f32 %v2243_v16, %v2242_v54 }
 0x291   : > { %2509 = vmatpush2.bf16.msra.mxu0 %v3050_v60 }
 0x292   : > { %2245 = vadd.xlane.f32.xlu0 %v2244_v32  ;;  %2510 = vmatprep.subr.bf16.mxu0 %v3055_v22 }
 0x295   : > { %2511 = vmatpush2.bf16.msra.mxu0 %v3053_v36 }
 0x296   : > { %2512 = vmatprep.subr.bf16.mxu0 %v3058_v28 }
 0x299   : > { %2513 = vmatpush2.bf16.msra.mxu0 %v3056_v58 }
 0x29a   : > { %2514 = vmatprep.subr.bf16.mxu0 %v3061_v40 }
 0x29d   : > { %2515 = vmatpush2.bf16.msra.mxu0 %v3059_v41 }
 0x31b   : > { %v2246_v33 = vpop.xlane.xlu0 %2245 }
 0x31c   : > { %v2247_v47 = vmul.f32 0.00390625, %v2246_v33 }
 0x31e   : > { %v2248_v27 = vadd.f32 1e-12, %v2247_v47 }
 0x320   : > { %3190 = vrsqrt.f32 %v2248_v27 }
 0x32d   : > { %v3191_v51 = vpop.eup %3190 }
 0x32e   : > { %v2250_v53 = vmul.f32 %v3191_v51, %v2240_v9  ;;  %v2251_v8 = vmul.f32 %v3191_v51, %v2241_v26 }
 0x330   : > { %v2263_v2 = vmul.f32 %v2256_v25, %v2250_v53  ;;  %v2264_v29 = vmul.f32 %v2260_v61, %v2251_v8 }
 0x332   : > { %v2276_v45 = vadd.f32 %v2269_v13, %v2263_v2  ;;  %v2277_v5 = vadd.f32 %v2273_v44, %v2264_v29 }
 0x334   : > { %v2278_v42 = vpack.c.bf16 %v2276_v45, %v2276_v45  ;;  %v2279_v50 = vpack.c.bf16 %v2277_v5, %v2277_v5 }
 0x336   : > { %2516 = vmatprep.mubr.bf16.mxu0 %v2279_v50 }
 0x337   : > { %2517 = vmatmul.mubr.bf16.vlgmr.msra.gmra.mxu0 %v2278_v42 }
 0x3f7   : > { %v2518_v57 = vpop.f32.mrf.mxu0 }
 0x3f8   : > { %v2519_v62 = vadd.f32 %v2518_v57, %v2477_v48 }
 0x3f9   : > { %v2520_v6 = vpop.f32.mrf.mxu0 }
 0x3fa   : > { %v2521_v39 = vadd.f32 %v2520_v6, %v2481_v1  ;;  %3192 = vtanh.f32 %v2519_v62 }
 0x3fb   : > { %v2522_v4 = vpop.f32.mrf.mxu0 }
 0x3fc   : > { %3194 = vtanh.f32 %v2521_v39 }
 0x3fd   : > { %v2523_v30 = vpop.f32.mrf.mxu0 }
 0x407   : > { %v3193_v35 = vpop.eup %3192 }
 0x409   : > { %v3195_v55 = vpop.eup %3194 }
 0x40a   : > { %v2529_v15 = vcombine.low %v3193_v35, %v3195_v55 }
 0x40c   : > { %v2536_v52 = vrot.slane %v2529_v15, %v2535_v18 }
 0x40e   : > { %v2543_v63 = vrot.slane %v2536_v52, %v2535_v18 }
 0x410   : > { %2549 = vst.msk [vmem:[%s330_s15] sm:$0x3] %vm2547_vm0, %v2543_v63 }
 0x411 PF: > { %s19_s30 = sadd.s32 1, %s3203_s30  }
 0x412   : > { %p16_p4 = scmp.ge.s32.totalorder %s19_s30, 4  }
 0x414   :  { %18 = sbr.rel (!%p16_p4) target bundleno = 1 (0x1), region = 86 }

</bundles_post_ra>
